<compile_context>
chip_gen: v7x
topology: tpu7x:2x2x1
jax: 0.10.0
libtpu: 0.0.40
codegen_flags: <defaults>
</compile_context>

<pallas_src>
import functools

import jax
import jax.numpy as jnp
from jax import lax
from jax.experimental import pallas as pl
from jax.experimental.pallas import tpu as pltpu

LANE = 128                     # TPU lane width; channel dim padded to this
CONV_DTYPE = jnp.bfloat16      # MXU operand dtype (accumulation stays float32)


# ------------------------- fused Pallas kernel -------------------------

def _fused_block_kernel(eidx_ref,                        # scalar-prefetch (SMEM), unused in body
                        x_ref,                           # (TH+4, W+2, CP)  CONV_DTYPE window w/ halo
                        w1_ref, s1_ref, b1_ref, a1_ref,  # selected expert's conv1/BN1/PReLU1
                        w2_ref, s2_ref, b2_ref, a2_ref,  # selected expert's conv2/BN2/PReLU2
                        scale_ref,                       # (N,) f32 in SMEM: gate*scale per sample
                        o_ref,                           # (TH, W, CP) f32 output tile
                        out1_ref,                        # VMEM scratch (TH+2, W+2, CP) f32
                        *, H, W, TH, CP):
    del eidx_ref                      # only consumed by the index_maps
    n = pl.program_id(0)
    t = pl.program_id(1)
    R1 = TH + 2                       # out1 rows incl. a 1-row halo on each side

    # ---- conv1 as 9 shifted matmuls (MXU, f32 accumulation) ----
    acc = jnp.zeros((R1 * W, CP), jnp.float32)
    for dy in range(3):
        for dx in range(3):
            lhs = x_ref[dy:dy + R1, dx:dx + W, :].reshape(R1 * W, CP)
            acc += jnp.dot(lhs, w1_ref[dy * 3 + dx],
                           preferred_element_type=jnp.float32)

    y = acc * s1_ref[...] + b1_ref[...]                   # folded BatchNorm1
    y = jnp.where(y > 0, y, a1_ref[...] * y)              # PReLU1
    res = x_ref[1:1 + R1, 1:1 + W, :].astype(jnp.float32).reshape(R1 * W, CP)
    out1 = (y + res).reshape(R1, W, CP)

    # halo rows outside the image are conv2's zero padding, not conv1 output
    row = t * TH - 1 + lax.broadcasted_iota(jnp.int32, (R1, 1, 1), 0)
    out1 = jnp.where((row >= 0) & (row < H), out1, 0.0)

    # stash out1 (with zero column borders) in VMEM -- it never touches HBM
    out1_ref[...] = jnp.zeros_like(out1_ref)
    out1_ref[:, 1:1 + W, :] = out1

    # ---- conv2 on the VMEM-resident out1 ----
    acc2 = jnp.zeros((TH * W, CP), jnp.float32)
    for dy in range(3):
        for dx in range(3):
            lhs = out1_ref[dy:dy + TH, dx:dx + W, :].astype(CONV_DTYPE)
            acc2 += jnp.dot(lhs.reshape(TH * W, CP), w2_ref[dy * 3 + dx],
                            preferred_element_type=jnp.float32)

    y2 = acc2 * s2_ref[...] + b2_ref[...]                 # folded BatchNorm2
    y2 = jnp.where(y2 > 0, y2, a2_ref[...] * y2)          # PReLU2
    skip = out1_ref[1:1 + TH, 1:1 + W, :].reshape(TH * W, CP)
    out_new = y2 + skip

    o_ref[...] = (scale_ref[n] * out_new).reshape(TH, W, CP)


# ------------------------- wrapper -------------------------

def basic_block_forward(x_nchw, params, tile_h=8):
    N, C, H, W = x_nchw.shape
    B, _, CP, _ = params["w1m"].shape            # (B, 9, CP, CP), CP = lane-padded channels
    if H % tile_h != 0:
        tile_h = H                               # fall back to one row tile
    nT = H // tile_h

    x_nhwc = jnp.transpose(x_nchw, (0, 2, 3, 1))             # (N, H, W, C)

    # --- gating in plain JAX: avg-pool -> fc -> argmax -----------------------
    # TODO(synk): BinarySoftActivation is not defined in the provided source;
    # its forward is assumed to be a hard one-hot of the argmax (straight-
    # through).  argmax(softmax(z)) == argmax(z), so softmax is skipped.
    avg = jnp.mean(x_nhwc, axis=(1, 2))                       # (N, C)
    logits = avg @ params["wfc"].T + params["bfc_vec"]        # (N, B)
    eidx = jnp.argmax(logits, axis=-1).astype(jnp.int32)      # (N,) chosen expert
    samp_scale = params["scales_vec"][eidx].astype(jnp.float32)   # gate[n,e]*scale_e

    # --- lane-pad channels, halo-pad spatially, cut row-tile windows ---------
    # Windows carry a 4-row halo so conv1/conv2 halos are recomputed per tile;
    # duplication factor (TH+4)/TH is negligible vs. the 9x im2col it replaces.
    xq = x_nhwc.astype(CONV_DTYPE)
    x_pad = jnp.pad(xq, ((0, 0), (2, 2), (1, 1), (0, CP - C)))   # (N, H+4, W+2, CP)
    x_win = jnp.stack(
        [x_pad[:, t * tile_h: t * tile_h + tile_h + 4] for t in range(nT)],
        axis=1)                                               # (N, nT, TH+4, W+2, CP)

    kernel = functools.partial(_fused_block_kernel, H=H, W=W, TH=tile_h, CP=CP)

    w_map = lambda n, t, e: (e[n], 0, 0, 0)     # expert-selected weights (scalar prefetch)
    c_map = lambda n, t, e: (e[n], 0, 0)        # expert-selected per-channel vectors

    out = pl.pallas_call(
        kernel,
        out_shape=jax.ShapeDtypeStruct((N, H, W, CP), jnp.float32),
        grid_spec=pltpu.PrefetchScalarGridSpec(
            num_scalar_prefetch=1,
            grid=(N, nT),                        # t innermost -> expert weights stay resident per n
            in_specs=[
                pl.BlockSpec((None, None, tile_h + 4, W + 2, CP),
                             lambda n, t, e: (n, t, 0, 0, 0)),
                pl.BlockSpec((None, 9, CP, CP), w_map),       # w1 (chosen expert)
                pl.BlockSpec((None, 1, CP), c_map),           # bn1 scale
                pl.BlockSpec((None, 1, CP), c_map),           # bn1 bias
                pl.BlockSpec((None, 1, CP), c_map),           # prelu1 alpha
                pl.BlockSpec((None, 9, CP, CP), w_map),       # w2 (chosen expert)
                pl.BlockSpec((None, 1, CP), c_map),           # bn2 scale
                pl.BlockSpec((None, 1, CP), c_map),           # bn2 bias
                pl.BlockSpec((None, 1, CP), c_map),           # prelu2 alpha
                pl.BlockSpec(memory_space=pltpu.MemorySpace.SMEM),  # per-sample scale
            ],
            out_specs=pl.BlockSpec((None, tile_h, W, CP),
                                   lambda n, t, e: (n, t, 0, 0)),
            scratch_shapes=[pltpu.VMEM((tile_h + 2, W + 2, CP), jnp.float32)],
        ),
        compiler_params=pltpu.CompilerParams(
            # both axes independent -> megacore/2-TC sharding on v7x, free elsewhere
            dimension_semantics=("parallel", "parallel"),
            vmem_limit_bytes=32 * 1024 * 1024,   # safe on v5e/v6e/v7x; usage ~2 MiB here
        ),
    )(eidx, x_win, params["w1m"], params["s1"], params["b1"], params["a1"],
      params["w2m"], params["s2"], params["b2"], params["a2"], samp_scale)

    out = out[..., :C]                           # drop lane padding
    return jnp.transpose(out, (0, 3, 1, 2))      # back to NCHW


# ------------------------- deterministic parameters -------------------------

def make_params(key, num_bases, planes, lane=LANE):
    B, C = num_bases, planes
    CP = ((C + lane - 1) // lane) * lane
    ks = jax.random.split(key, 13)
    eps = 1e-5
    # conv weights in PyTorch layout (expert, Cout, Cin, kh, kw)
    w1 = jax.random.normal(ks[0], (B, C, C, 3, 3), jnp.float32) * 0.1
    w2 = jax.random.normal(ks[1], (B, C, C, 3, 3), jnp.float32) * 0.1
    g1 = jax.random.uniform(ks[2], (B, C), minval=0.5, maxval=1.5)
    be1 = jax.random.normal(ks[3], (B, C)) * 0.1
    mu1 = jax.random.normal(ks[4], (B, C)) * 0.1
    v1 = jax.random.uniform(ks[5], (B, C), minval=0.5, maxval=1.5)
    g2 = jax.random.uniform(ks[6], (B, C), minval=0.5, maxval=1.5)
    be2 = jax.random.normal(ks[7], (B, C)) * 0.1
    mu2 = jax.random.normal(ks[8], (B, C)) * 0.1
    v2 = jax.random.uniform(ks[9], (B, C), minval=0.5, maxval=1.5)
    a1 = jnp.full((B, C), 0.25, jnp.float32)      # PReLU default slope
    a2 = jnp.full((B, C), 0.25, jnp.float32)
    scales = jax.random.uniform(ks[10], (B,))     # torch.rand(1) per expert
    wfc = jax.random.normal(ks[11], (B, C)) * 0.1
    bfc = jax.random.normal(ks[12], (B,)) * 0.1

    # fold BatchNorm (inference): y = x*s + b
    s1 = g1 / jnp.sqrt(v1 + eps); b1 = be1 - mu1 * s1
    s2 = g2 / jnp.sqrt(v2 + eps); b2 = be2 - mu2 * s2

    def pack_w(w):   # (B,Co,Ci,3,3) -> (B, 9, CP, CP), tap order (dy,dx), zero lane pad
        wt = jnp.transpose(w, (0, 3, 4, 2, 1)).reshape(B, 9, C, C)
        return jnp.pad(wt, ((0, 0), (0, 0), (0, CP - C), (0, CP - C))).astype(CONV_DTYPE)

    def pack_c(v):   # (B, C) -> (B, 1, CP)
        return jnp.pad(v, ((0, 0), (0, CP - C))).reshape(B, 1, CP).astype(jnp.float32)

    return dict(
        # reference-layout params
        w1=w1, w2=w2, s1_vec=s1, b1_vec=b1, s2_vec=s2, b2_vec=b2,
        a1_vec=a1, a2_vec=a2, scales_vec=scales, wfc=wfc, bfc_vec=bfc,
        # kernel-layout params (lane-padded, MXU dtype)
        w1m=pack_w(w1), w2m=pack_w(w2),
        s1=pack_c(s1), b1=pack_c(b1), a1=pack_c(a1),
        s2=pack_c(s2), b2=pack_c(b2), a2=pack_c(a2),
    )


# ------------------------- pure-JAX reference (for validation) -------------------------

def reference_forward(x, p):
    N, C, H, W = x.shape
    B = p["w1"].shape[0]
    avg = jnp.mean(x, axis=(2, 3))
    logits = avg @ p["wfc"].T + p["bfc_vec"]
    eidx = jnp.argmax(logits, axis=-1)            # one-hot(argmax(softmax)) winner

    def conv(inp, w):                              # bf16 operands, f32 accumulation (as kernel)
        return lax.conv_general_dilated(
            inp.astype(CONV_DTYPE), w.astype(CONV_DTYPE), (1, 1), ((1, 1), (1, 1)),
            dimension_numbers=("NCHW", "OIHW", "NCHW"),
            preferred_element_type=jnp.float32)

    xq = x.astype(CONV_DTYPE).astype(jnp.float32)  # kernel's residual path is bf16-rounded x
    outs = []
    for i in range(B):
        ch = lambda v: v[i][None, :, None, None]
        out = conv(x, p["w1"][i]) * ch(p["s1_vec"]) + ch(p["b1_vec"])
        out = jnp.where(out > 0, out, ch(p["a1_vec"]) * out) + xq
        out_new = conv(out, p["w2"][i]) * ch(p["s2_vec"]) + ch(p["b2_vec"])
        out_new = jnp.where(out_new > 0, out_new, ch(p["a2_vec"]) * out_new) + out
        outs.append(p["scales_vec"][i] * out_new)
    stacked = jnp.stack(outs)                      # (B, N, C, H, W)
    return stacked[eidx, jnp.arange(N)]            # hard one-hot gated selection


# ------------------------- main -------------------------

if __name__ == "__main__":
    N, C, H, W, B = 2, 8, 16, 16, 2   # batch, inplanes=planes, spatial, num_bases
    key = jax.random.PRNGKey(0)
    kx, kp = jax.random.split(key)
    x = jax.random.normal(kx, (N, C, H, W), jnp.float32)
    params = make_params(kp, B, C)

    out = jax.jit(basic_block_forward)(x, params)
    out = jax.block_until_ready(out)

    ref = reference_forward(x, params)
    assert out.shape == (N, C, H, W), out.shape
    max_err = float(jnp.max(jnp.abs(out - ref)))
    # conv operands are bf16 on both sides (f32 accumulation / epilogue); allow
    # for bf16 rounding-boundary + accumulation-order differences.
    assert max_err < 2e-2, f"mismatch vs reference: {max_err}"
    print("KERNEL_OK")
</pallas_src>

<mosaic_0001>
module attributes {stable_mosaic.version = 11 : i64} {
  func.func @_fused_block_kernel(%arg0: i32, %arg1: i32, %arg2: memref<2xi32, #tpu.memory_space<smem>>, %arg3: memref<1x1x12x18x128xbf16, #tpu.memory_space<vmem>>, %arg4: memref<1x9x128x128xbf16, #tpu.memory_space<vmem>>, %arg5: memref<1x1x128xf32, #tpu.memory_space<vmem>>, %arg6: memref<1x1x128xf32, #tpu.memory_space<vmem>>, %arg7: memref<1x1x128xf32, #tpu.memory_space<vmem>>, %arg8: memref<1x9x128x128xbf16, #tpu.memory_space<vmem>>, %arg9: memref<1x1x128xf32, #tpu.memory_space<vmem>>, %arg10: memref<1x1x128xf32, #tpu.memory_space<vmem>>, %arg11: memref<1x1x128xf32, #tpu.memory_space<vmem>>, %arg12: memref<2xf32, #tpu.memory_space<smem>>, %arg13: memref<1x8x16x128xf32, #tpu.memory_space<vmem>>, %arg14: memref<10x18x128xf32, #tpu.memory_space<vmem>>) attributes {dimension_semantics = [#tpu.dimension_semantics<parallel>, #tpu.dimension_semantics<parallel>], iteration_bounds = array<i64: 2, 2>, scalar_prefetch = 1 : i64, scratch_operands = 1 : i64, tpu.core_type = #tpu.core_type<tc>, window_params = [{transform_indices = @transform_0, window_bounds = array<i64: 1, 1, 12, 18, 128>}, {transform_indices = @transform_1, window_bounds = array<i64: 1, 9, 128, 128>}, {transform_indices = @transform_2, window_bounds = array<i64: 1, 1, 128>}, {transform_indices = @transform_3, window_bounds = array<i64: 1, 1, 128>}, {transform_indices = @transform_4, window_bounds = array<i64: 1, 1, 128>}, {transform_indices = @transform_5, window_bounds = array<i64: 1, 9, 128, 128>}, {transform_indices = @transform_6, window_bounds = array<i64: 1, 1, 128>}, {transform_indices = @transform_7, window_bounds = array<i64: 1, 1, 128>}, {transform_indices = @transform_8, window_bounds = array<i64: 1, 1, 128>}, {transform_indices = @transform_9, window_bounds = array<i64: 2>}, {transform_indices = @transform_10, window_bounds = array<i64: 1, 8, 16, 128>}]} {
    %cst = arith.constant 0.000000e+00 : f32
    %0 = vector.broadcast %cst : f32 to vector<160x128xf32>
    %c0 = arith.constant 0 : index
    %c0_0 = arith.constant 0 : index
    %c0_1 = arith.constant 0 : index
    %c0_2 = arith.constant 0 : index
    %c0_3 = arith.constant 0 : index
    %1 = vector.load %arg3[%c0, %c0_0, %c0_1, %c0_2, %c0_3] : memref<1x1x12x18x128xbf16, #tpu.memory_space<vmem>>, vector<1x1x10x16x128xbf16>
    %2 = vector.shape_cast %1 : vector<1x1x10x16x128xbf16> to vector<10x16x128xbf16>
    %3 = vector.shape_cast %2 : vector<10x16x128xbf16> to vector<160x128xbf16>
    %c0_4 = arith.constant 0 : index
    %c0_5 = arith.constant 0 : index
    %c0_6 = arith.constant 0 : index
    %c0_7 = arith.constant 0 : index
    %4 = vector.load %arg4[%c0_4, %c0_5, %c0_6, %c0_7] : memref<1x9x128x128xbf16, #tpu.memory_space<vmem>>, vector<1x1x128x128xbf16>
    %5 = vector.shape_cast %4 : vector<1x1x128x128xbf16> to vector<128x128xbf16>
    %cst_8 = arith.constant dense<0.000000e+00> : vector<160x128xf32>
    %6 = tpu.matmul %3, %5, %cst_8 {dimension_numbers = #tpu.dot_dimension_numbers<[1], [0], [0], [1], [0, 0, 1, 1], [], []>} : vector<160x128xbf16>, vector<128x128xbf16>, vector<160x128xf32> -> vector<160x128xf32>
    %7 = arith.addf %0, %6 : vector<160x128xf32>
    %c0_9 = arith.constant 0 : index
    %c0_10 = arith.constant 0 : index
    %c0_11 = arith.constant 0 : index
    %c1 = arith.constant 1 : index
    %c0_12 = arith.constant 0 : index
    %8 = vector.load %arg3[%c0_9, %c0_10, %c0_11, %c1, %c0_12] : memref<1x1x12x18x128xbf16, #tpu.memory_space<vmem>>, vector<1x1x10x16x128xbf16>
    %9 = vector.shape_cast %8 : vector<1x1x10x16x128xbf16> to vector<10x16x128xbf16>
    %10 = vector.shape_cast %9 : vector<10x16x128xbf16> to vector<160x128xbf16>
    %c0_13 = arith.constant 0 : index
    %c1_14 = arith.constant 1 : index
    %c0_15 = arith.constant 0 : index
    %c0_16 = arith.constant 0 : index
    %11 = vector.load %arg4[%c0_13, %c1_14, %c0_15, %c0_16] : memref<1x9x128x128xbf16, #tpu.memory_space<vmem>>, vector<1x1x128x128xbf16>
    %12 = vector.shape_cast %11 : vector<1x1x128x128xbf16> to vector<128x128xbf16>
    %cst_17 = arith.constant dense<0.000000e+00> : vector<160x128xf32>
    %13 = tpu.matmul %10, %12, %cst_17 {dimension_numbers = #tpu.dot_dimension_numbers<[1], [0], [0], [1], [0, 0, 1, 1], [], []>} : vector<160x128xbf16>, vector<128x128xbf16>, vector<160x128xf32> -> vector<160x128xf32>
    %14 = arith.addf %7, %13 : vector<160x128xf32>
    %c0_18 = arith.constant 0 : index
    %c0_19 = arith.constant 0 : index
    %c0_20 = arith.constant 0 : index
    %c2 = arith.constant 2 : index
    %c0_21 = arith.constant 0 : index
    %15 = vector.load %arg3[%c0_18, %c0_19, %c0_20, %c2, %c0_21] : memref<1x1x12x18x128xbf16, #tpu.memory_space<vmem>>, vector<1x1x10x16x128xbf16>
    %16 = vector.shape_cast %15 : vector<1x1x10x16x128xbf16> to vector<10x16x128xbf16>
    %17 = vector.shape_cast %16 : vector<10x16x128xbf16> to vector<160x128xbf16>
    %c0_22 = arith.constant 0 : index
    %c2_23 = arith.constant 2 : index
    %c0_24 = arith.constant 0 : index
    %c0_25 = arith.constant 0 : index
    %18 = vector.load %arg4[%c0_22, %c2_23, %c0_24, %c0_25] : memref<1x9x128x128xbf16, #tpu.memory_space<vmem>>, vector<1x1x128x128xbf16>
    %19 = vector.shape_cast %18 : vector<1x1x128x128xbf16> to vector<128x128xbf16>
    %cst_26 = arith.constant dense<0.000000e+00> : vector<160x128xf32>
    %20 = tpu.matmul %17, %19, %cst_26 {dimension_numbers = #tpu.dot_dimension_numbers<[1], [0], [0], [1], [0, 0, 1, 1], [], []>} : vector<160x128xbf16>, vector<128x128xbf16>, vector<160x128xf32> -> vector<160x128xf32>
    %21 = arith.addf %14, %20 : vector<160x128xf32>
    %c0_27 = arith.constant 0 : index
    %c0_28 = arith.constant 0 : index
    %c1_29 = arith.constant 1 : index
    %c0_30 = arith.constant 0 : index
    %c0_31 = arith.constant 0 : index
    %22 = vector.load %arg3[%c0_27, %c0_28, %c1_29, %c0_30, %c0_31] : memref<1x1x12x18x128xbf16, #tpu.memory_space<vmem>>, vector<1x1x10x16x128xbf16>
    %23 = vector.shape_cast %22 : vector<1x1x10x16x128xbf16> to vector<10x16x128xbf16>
    %24 = vector.shape_cast %23 : vector<10x16x128xbf16> to vector<160x128xbf16>
    %c0_32 = arith.constant 0 : index
    %c3 = arith.constant 3 : index
    %c0_33 = arith.constant 0 : index
    %c0_34 = arith.constant 0 : index
    %25 = vector.load %arg4[%c0_32, %c3, %c0_33, %c0_34] : memref<1x9x128x128xbf16, #tpu.memory_space<vmem>>, vector<1x1x128x128xbf16>
    %26 = vector.shape_cast %25 : vector<1x1x128x128xbf16> to vector<128x128xbf16>
    %cst_35 = arith.constant dense<0.000000e+00> : vector<160x128xf32>
    %27 = tpu.matmul %24, %26, %cst_35 {dimension_numbers = #tpu.dot_dimension_numbers<[1], [0], [0], [1], [0, 0, 1, 1], [], []>} : vector<160x128xbf16>, vector<128x128xbf16>, vector<160x128xf32> -> vector<160x128xf32>
    %28 = arith.addf %21, %27 : vector<160x128xf32>
    %c0_36 = arith.constant 0 : index
    %c0_37 = arith.constant 0 : index
    %c1_38 = arith.constant 1 : index
    %c1_39 = arith.constant 1 : index
    %c0_40 = arith.constant 0 : index
    %29 = vector.load %arg3[%c0_36, %c0_37, %c1_38, %c1_39, %c0_40] : memref<1x1x12x18x128xbf16, #tpu.memory_space<vmem>>, vector<1x1x10x16x128xbf16>
    %30 = vector.shape_cast %29 : vector<1x1x10x16x128xbf16> to vector<10x16x128xbf16>
    %31 = vector.shape_cast %30 : vector<10x16x128xbf16> to vector<160x128xbf16>
    %c0_41 = arith.constant 0 : index
    %c4 = arith.constant 4 : index
    %c0_42 = arith.constant 0 : index
    %c0_43 = arith.constant 0 : index
    %32 = vector.load %arg4[%c0_41, %c4, %c0_42, %c0_43] : memref<1x9x128x128xbf16, #tpu.memory_space<vmem>>, vector<1x1x128x128xbf16>
    %33 = vector.shape_cast %32 : vector<1x1x128x128xbf16> to vector<128x128xbf16>
    %cst_44 = arith.constant dense<0.000000e+00> : vector<160x128xf32>
    %34 = tpu.matmul %31, %33, %cst_44 {dimension_numbers = #tpu.dot_dimension_numbers<[1], [0], [0], [1], [0, 0, 1, 1], [], []>} : vector<160x128xbf16>, vector<128x128xbf16>, vector<160x128xf32> -> vector<160x128xf32>
    %35 = arith.addf %28, %34 : vector<160x128xf32>
    %c0_45 = arith.constant 0 : index
    %c0_46 = arith.constant 0 : index
    %c1_47 = arith.constant 1 : index
    %c2_48 = arith.constant 2 : index
    %c0_49 = arith.constant 0 : index
    %36 = vector.load %arg3[%c0_45, %c0_46, %c1_47, %c2_48, %c0_49] : memref<1x1x12x18x128xbf16, #tpu.memory_space<vmem>>, vector<1x1x10x16x128xbf16>
    %37 = vector.shape_cast %36 : vector<1x1x10x16x128xbf16> to vector<10x16x128xbf16>
    %38 = vector.shape_cast %37 : vector<10x16x128xbf16> to vector<160x128xbf16>
    %c0_50 = arith.constant 0 : index
    %c5 = arith.constant 5 : index
    %c0_51 = arith.constant 0 : index
    %c0_52 = arith.constant 0 : index
    %39 = vector.load %arg4[%c0_50, %c5, %c0_51, %c0_52] : memref<1x9x128x128xbf16, #tpu.memory_space<vmem>>, vector<1x1x128x128xbf16>
    %40 = vector.shape_cast %39 : vector<1x1x128x128xbf16> to vector<128x128xbf16>
    %cst_53 = arith.constant dense<0.000000e+00> : vector<160x128xf32>
    %41 = tpu.matmul %38, %40, %cst_53 {dimension_numbers = #tpu.dot_dimension_numbers<[1], [0], [0], [1], [0, 0, 1, 1], [], []>} : vector<160x128xbf16>, vector<128x128xbf16>, vector<160x128xf32> -> vector<160x128xf32>
    %42 = arith.addf %35, %41 : vector<160x128xf32>
    %c0_54 = arith.constant 0 : index
    %c0_55 = arith.constant 0 : index
    %c2_56 = arith.constant 2 : index
    %c0_57 = arith.constant 0 : index
    %c0_58 = arith.constant 0 : index
    %43 = vector.load %arg3[%c0_54, %c0_55, %c2_56, %c0_57, %c0_58] : memref<1x1x12x18x128xbf16, #tpu.memory_space<vmem>>, vector<1x1x10x16x128xbf16>
    %44 = vector.shape_cast %43 : vector<1x1x10x16x128xbf16> to vector<10x16x128xbf16>
    %45 = vector.shape_cast %44 : vector<10x16x128xbf16> to vector<160x128xbf16>
    %c0_59 = arith.constant 0 : index
    %c6 = arith.constant 6 : index
    %c0_60 = arith.constant 0 : index
    %c0_61 = arith.constant 0 : index
    %46 = vector.load %arg4[%c0_59, %c6, %c0_60, %c0_61] : memref<1x9x128x128xbf16, #tpu.memory_space<vmem>>, vector<1x1x128x128xbf16>
    %47 = vector.shape_cast %46 : vector<1x1x128x128xbf16> to vector<128x128xbf16>
    %cst_62 = arith.constant dense<0.000000e+00> : vector<160x128xf32>
    %48 = tpu.matmul %45, %47, %cst_62 {dimension_numbers = #tpu.dot_dimension_numbers<[1], [0], [0], [1], [0, 0, 1, 1], [], []>} : vector<160x128xbf16>, vector<128x128xbf16>, vector<160x128xf32> -> vector<160x128xf32>
    %49 = arith.addf %42, %48 : vector<160x128xf32>
    %c0_63 = arith.constant 0 : index
    %c0_64 = arith.constant 0 : index
    %c2_65 = arith.constant 2 : index
    %c1_66 = arith.constant 1 : index
    %c0_67 = arith.constant 0 : index
    %50 = vector.load %arg3[%c0_63, %c0_64, %c2_65, %c1_66, %c0_67] : memref<1x1x12x18x128xbf16, #tpu.memory_space<vmem>>, vector<1x1x10x16x128xbf16>
    %51 = vector.shape_cast %50 : vector<1x1x10x16x128xbf16> to vector<10x16x128xbf16>
    %52 = vector.shape_cast %51 : vector<10x16x128xbf16> to vector<160x128xbf16>
    %c0_68 = arith.constant 0 : index
    %c7 = arith.constant 7 : index
    %c0_69 = arith.constant 0 : index
    %c0_70 = arith.constant 0 : index
    %53 = vector.load %arg4[%c0_68, %c7, %c0_69, %c0_70] : memref<1x9x128x128xbf16, #tpu.memory_space<vmem>>, vector<1x1x128x128xbf16>
    %54 = vector.shape_cast %53 : vector<1x1x128x128xbf16> to vector<128x128xbf16>
    %cst_71 = arith.constant dense<0.000000e+00> : vector<160x128xf32>
    %55 = tpu.matmul %52, %54, %cst_71 {dimension_numbers = #tpu.dot_dimension_numbers<[1], [0], [0], [1], [0, 0, 1, 1], [], []>} : vector<160x128xbf16>, vector<128x128xbf16>, vector<160x128xf32> -> vector<160x128xf32>
    %56 = arith.addf %49, %55 : vector<160x128xf32>
    %c0_72 = arith.constant 0 : index
    %c0_73 = arith.constant 0 : index
    %c2_74 = arith.constant 2 : index
    %c2_75 = arith.constant 2 : index
    %c0_76 = arith.constant 0 : index
    %57 = vector.load %arg3[%c0_72, %c0_73, %c2_74, %c2_75, %c0_76] : memref<1x1x12x18x128xbf16, #tpu.memory_space<vmem>>, vector<1x1x10x16x128xbf16>
    %58 = vector.shape_cast %57 : vector<1x1x10x16x128xbf16> to vector<10x16x128xbf16>
    %59 = vector.shape_cast %58 : vector<10x16x128xbf16> to vector<160x128xbf16>
    %c0_77 = arith.constant 0 : index
    %c8 = arith.constant 8 : index
    %c0_78 = arith.constant 0 : index
    %c0_79 = arith.constant 0 : index
    %60 = vector.load %arg4[%c0_77, %c8, %c0_78, %c0_79] : memref<1x9x128x128xbf16, #tpu.memory_space<vmem>>, vector<1x1x128x128xbf16>
    %61 = vector.shape_cast %60 : vector<1x1x128x128xbf16> to vector<128x128xbf16>
    %cst_80 = arith.constant dense<0.000000e+00> : vector<160x128xf32>
    %62 = tpu.matmul %59, %61, %cst_80 {dimension_numbers = #tpu.dot_dimension_numbers<[1], [0], [0], [1], [0, 0, 1, 1], [], []>} : vector<160x128xbf16>, vector<128x128xbf16>, vector<160x128xf32> -> vector<160x128xf32>
    %63 = arith.addf %56, %62 : vector<160x128xf32>
    %c0_81 = arith.constant 0 : index
    %c0_82 = arith.constant 0 : index
    %c0_83 = arith.constant 0 : index
    %64 = vector.load %arg5[%c0_81, %c0_82, %c0_83] : memref<1x1x128xf32, #tpu.memory_space<vmem>>, vector<1x1x128xf32>
    %65 = vector.shape_cast %64 : vector<1x1x128xf32> to vector<1x128xf32>
    %66 = vector.broadcast %65 : vector<1x128xf32> to vector<160x128xf32>
    %67 = arith.mulf %63, %66 : vector<160x128xf32>
    %c0_84 = arith.constant 0 : index
    %c0_85 = arith.constant 0 : index
    %c0_86 = arith.constant 0 : index
    %68 = vector.load %arg6[%c0_84, %c0_85, %c0_86] : memref<1x1x128xf32, #tpu.memory_space<vmem>>, vector<1x1x128xf32>
    %69 = vector.shape_cast %68 : vector<1x1x128xf32> to vector<1x128xf32>
    %70 = vector.broadcast %69 : vector<1x128xf32> to vector<160x128xf32>
    %71 = arith.addf %67, %70 : vector<160x128xf32>
    %cst_87 = arith.constant 0.000000e+00 : f32
    %72 = vector.broadcast %cst_87 : f32 to vector<160x128xf32>
    %73 = arith.cmpf ogt, %71, %72 : vector<160x128xf32>
    %c0_88 = arith.constant 0 : index
    %c0_89 = arith.constant 0 : index
    %c0_90 = arith.constant 0 : index
    %74 = vector.load %arg7[%c0_88, %c0_89, %c0_90] : memref<1x1x128xf32, #tpu.memory_space<vmem>>, vector<1x1x128xf32>
    %75 = vector.shape_cast %74 : vector<1x1x128xf32> to vector<1x128xf32>
    %76 = vector.broadcast %75 : vector<1x128xf32> to vector<160x128xf32>
    %77 = arith.mulf %76, %71 : vector<160x128xf32>
    %78 = arith.select %73, %71, %77 : vector<160x128xi1>, vector<160x128xf32>
    %c0_91 = arith.constant 0 : index
    %c0_92 = arith.constant 0 : index
    %c1_93 = arith.constant 1 : index
    %c1_94 = arith.constant 1 : index
    %c0_95 = arith.constant 0 : index
    %79 = vector.load %arg3[%c0_91, %c0_92, %c1_93, %c1_94, %c0_95] : memref<1x1x12x18x128xbf16, #tpu.memory_space<vmem>>, vector<1x1x10x16x128xbf16>
    %80 = vector.shape_cast %79 : vector<1x1x10x16x128xbf16> to vector<10x16x128xbf16>
    %81 = arith.extf %80 : vector<10x16x128xbf16> to vector<10x16x128xf32>
    %82 = vector.shape_cast %81 : vector<10x16x128xf32> to vector<160x128xf32>
    %83 = arith.addf %78, %82 : vector<160x128xf32>
    %84 = vector.shape_cast %83 : vector<160x128xf32> to vector<10x16x128xf32>
    %c8_i32 = arith.constant 8 : i32
    %85 = arith.muli %arg1, %c8_i32 : i32
    %c1_i32 = arith.constant 1 : i32
    %86 = arith.subi %85, %c1_i32 : i32
    %87 = tpu.iota {dimensions = array<i32: 0>} : vector<10x1x1xi32>
    %88 = vector.broadcast %86 : i32 to vector<10x1x1xi32>
    %89 = arith.addi %88, %87 : vector<10x1x1xi32>
    %c0_i32 = arith.constant 0 : i32
    %90 = vector.broadcast %c0_i32 : i32 to vector<10x1x1xi32>
    %91 = arith.cmpi sge, %89, %90 : vector<10x1x1xi32>
    %c16_i32 = arith.constant 16 : i32
    %92 = vector.broadcast %c16_i32 : i32 to vector<10x1x1xi32>
    %93 = arith.cmpi slt, %89, %92 : vector<10x1x1xi32>
    %94 = arith.andi %91, %93 : vector<10x1x1xi1>
    %cst_96 = arith.constant 0.000000e+00 : f32
    %95 = vector.shape_cast %94 : vector<10x1x1xi1> to vector<10x1x1xi1>
    %96 = vector.broadcast %95 : vector<10x1x1xi1> to vector<10x16x128xi1>
    %97 = vector.broadcast %cst_96 : f32 to vector<10x16x128xf32>
    %98 = arith.select %96, %84, %97 : vector<10x16x128xi1>, vector<10x16x128xf32>
    %cst_97 = arith.constant 0.000000e+00 : f32
    %99 = vector.broadcast %cst_97 : f32 to vector<10x18x128xf32>
    %c0_98 = arith.constant 0 : index
    %c0_99 = arith.constant 0 : index
    %c0_100 = arith.constant 0 : index
    %100 = vector.load %arg14[%c0_98, %c0_99, %c0_100] : memref<10x18x128xf32, #tpu.memory_space<vmem>>, vector<10x18x128xf32>
    tpu.vector_store %arg14[%c0_98, %c0_99, %c0_100], %99 {strides = array<i32>} : memref<10x18x128xf32, #tpu.memory_space<vmem>>, vector<10x18x128xf32>,
    %c0_101 = arith.constant 0 : index
    %c1_102 = arith.constant 1 : index
    %c0_103 = arith.constant 0 : index
    %101 = vector.load %arg14[%c0_101, %c1_102, %c0_103] : memref<10x18x128xf32, #tpu.memory_space<vmem>>, vector<10x16x128xf32>
    tpu.vector_store %arg14[%c0_101, %c1_102, %c0_103], %98 {strides = array<i32>} : memref<10x18x128xf32, #tpu.memory_space<vmem>>, vector<10x16x128xf32>,
    %cst_104 = arith.constant 0.000000e+00 : f32
    %102 = vector.broadcast %cst_104 : f32 to vector<128x128xf32>
    %c0_105 = arith.constant 0 : index
    %c0_106 = arith.constant 0 : index
    %c0_107 = arith.constant 0 : index
    %103 = vector.load %arg14[%c0_105, %c0_106, %c0_107] : memref<10x18x128xf32, #tpu.memory_space<vmem>>, vector<8x16x128xf32>
    %104 = arith.truncf %103 : vector<8x16x128xf32> to vector<8x16x128xbf16>
    %105 = vector.shape_cast %104 : vector<8x16x128xbf16> to vector<128x128xbf16>
    %c0_108 = arith.constant 0 : index
    %c0_109 = arith.constant 0 : index
    %c0_110 = arith.constant 0 : index
    %c0_111 = arith.constant 0 : index
    %106 = vector.load %arg8[%c0_108, %c0_109, %c0_110, %c0_111] : memref<1x9x128x128xbf16, #tpu.memory_space<vmem>>, vector<1x1x128x128xbf16>
    %107 = vector.shape_cast %106 : vector<1x1x128x128xbf16> to vector<128x128xbf16>
    %cst_112 = arith.constant dense<0.000000e+00> : vector<128x128xf32>
    %108 = tpu.matmul %105, %107, %cst_112 {dimension_numbers = #tpu.dot_dimension_numbers<[1], [0], [0], [1], [0, 0, 1, 1], [], []>} : vector<128x128xbf16>, vector<128x128xbf16>, vector<128x128xf32> -> vector<128x128xf32>
    %109 = arith.addf %102, %108 : vector<128x128xf32>
    %c0_113 = arith.constant 0 : index
    %c1_114 = arith.constant 1 : index
    %c0_115 = arith.constant 0 : index
    %110 = vector.load %arg14[%c0_113, %c1_114, %c0_115] : memref<10x18x128xf32, #tpu.memory_space<vmem>>, vector<8x16x128xf32>
    %111 = arith.truncf %110 : vector<8x16x128xf32> to vector<8x16x128xbf16>
    %112 = vector.shape_cast %111 : vector<8x16x128xbf16> to vector<128x128xbf16>
    %c0_116 = arith.constant 0 : index
    %c1_117 = arith.constant 1 : index
    %c0_118 = arith.constant 0 : index
    %c0_119 = arith.constant 0 : index
    %113 = vector.load %arg8[%c0_116, %c1_117, %c0_118, %c0_119] : memref<1x9x128x128xbf16, #tpu.memory_space<vmem>>, vector<1x1x128x128xbf16>
    %114 = vector.shape_cast %113 : vector<1x1x128x128xbf16> to vector<128x128xbf16>
    %cst_120 = arith.constant dense<0.000000e+00> : vector<128x128xf32>
    %115 = tpu.matmul %112, %114, %cst_120 {dimension_numbers = #tpu.dot_dimension_numbers<[1], [0], [0], [1], [0, 0, 1, 1], [], []>} : vector<128x128xbf16>, vector<128x128xbf16>, vector<128x128xf32> -> vector<128x128xf32>
    %116 = arith.addf %109, %115 : vector<128x128xf32>
    %c0_121 = arith.constant 0 : index
    %c2_122 = arith.constant 2 : index
    %c0_123 = arith.constant 0 : index
    %117 = vector.load %arg14[%c0_121, %c2_122, %c0_123] : memref<10x18x128xf32, #tpu.memory_space<vmem>>, vector<8x16x128xf32>
    %118 = arith.truncf %117 : vector<8x16x128xf32> to vector<8x16x128xbf16>
    %119 = vector.shape_cast %118 : vector<8x16x128xbf16> to vector<128x128xbf16>
    %c0_124 = arith.constant 0 : index
    %c2_125 = arith.constant 2 : index
    %c0_126 = arith.constant 0 : index
    %c0_127 = arith.constant 0 : index
    %120 = vector.load %arg8[%c0_124, %c2_125, %c0_126, %c0_127] : memref<1x9x128x128xbf16, #tpu.memory_space<vmem>>, vector<1x1x128x128xbf16>
    %121 = vector.shape_cast %120 : vector<1x1x128x128xbf16> to vector<128x128xbf16>
    %cst_128 = arith.constant dense<0.000000e+00> : vector<128x128xf32>
    %122 = tpu.matmul %119, %121, %cst_128 {dimension_numbers = #tpu.dot_dimension_numbers<[1], [0], [0], [1], [0, 0, 1, 1], [], []>} : vector<128x128xbf16>, vector<128x128xbf16>, vector<128x128xf32> -> vector<128x128xf32>
    %123 = arith.addf %116, %122 : vector<128x128xf32>
    %c1_129 = arith.constant 1 : index
    %c0_130 = arith.constant 0 : index
    %c0_131 = arith.constant 0 : index
    %124 = vector.load %arg14[%c1_129, %c0_130, %c0_131] : memref<10x18x128xf32, #tpu.memory_space<vmem>>, vector<8x16x128xf32>
    %125 = arith.truncf %124 : vector<8x16x128xf32> to vector<8x16x128xbf16>
    %126 = vector.shape_cast %125 : vector<8x16x128xbf16> to vector<128x128xbf16>
    %c0_132 = arith.constant 0 : index
    %c3_133 = arith.constant 3 : index
    %c0_134 = arith.constant 0 : index
    %c0_135 = arith.constant 0 : index
    %127 = vector.load %arg8[%c0_132, %c3_133, %c0_134, %c0_135] : memref<1x9x128x128xbf16, #tpu.memory_space<vmem>>, vector<1x1x128x128xbf16>
    %128 = vector.shape_cast %127 : vector<1x1x128x128xbf16> to vector<128x128xbf16>
    %cst_136 = arith.constant dense<0.000000e+00> : vector<128x128xf32>
    %129 = tpu.matmul %126, %128, %cst_136 {dimension_numbers = #tpu.dot_dimension_numbers<[1], [0], [0], [1], [0, 0, 1, 1], [], []>} : vector<128x128xbf16>, vector<128x128xbf16>, vector<128x128xf32> -> vector<128x128xf32>
    %130 = arith.addf %123, %129 : vector<128x128xf32>
    %c1_137 = arith.constant 1 : index
    %c1_138 = arith.constant 1 : index
    %c0_139 = arith.constant 0 : index
    %131 = vector.load %arg14[%c1_137, %c1_138, %c0_139] : memref<10x18x128xf32, #tpu.memory_space<vmem>>, vector<8x16x128xf32>
    %132 = arith.truncf %131 : vector<8x16x128xf32> to vector<8x16x128xbf16>
    %133 = vector.shape_cast %132 : vector<8x16x128xbf16> to vector<128x128xbf16>
    %c0_140 = arith.constant 0 : index
    %c4_141 = arith.constant 4 : index
    %c0_142 = arith.constant 0 : index
    %c0_143 = arith.constant 0 : index
    %134 = vector.load %arg8[%c0_140, %c4_141, %c0_142, %c0_143] : memref<1x9x128x128xbf16, #tpu.memory_space<vmem>>, vector<1x1x128x128xbf16>
    %135 = vector.shape_cast %134 : vector<1x1x128x128xbf16> to vector<128x128xbf16>
    %cst_144 = arith.constant dense<0.000000e+00> : vector<128x128xf32>
    %136 = tpu.matmul %133, %135, %cst_144 {dimension_numbers = #tpu.dot_dimension_numbers<[1], [0], [0], [1], [0, 0, 1, 1], [], []>} : vector<128x128xbf16>, vector<128x128xbf16>, vector<128x128xf32> -> vector<128x128xf32>
    %137 = arith.addf %130, %136 : vector<128x128xf32>
    %c1_145 = arith.constant 1 : index
    %c2_146 = arith.constant 2 : index
    %c0_147 = arith.constant 0 : index
    %138 = vector.load %arg14[%c1_145, %c2_146, %c0_147] : memref<10x18x128xf32, #tpu.memory_space<vmem>>, vector<8x16x128xf32>
    %139 = arith.truncf %138 : vector<8x16x128xf32> to vector<8x16x128xbf16>
    %140 = vector.shape_cast %139 : vector<8x16x128xbf16> to vector<128x128xbf16>
    %c0_148 = arith.constant 0 : index
    %c5_149 = arith.constant 5 : index
    %c0_150 = arith.constant 0 : index
    %c0_151 = arith.constant 0 : index
    %141 = vector.load %arg8[%c0_148, %c5_149, %c0_150, %c0_151] : memref<1x9x128x128xbf16, #tpu.memory_space<vmem>>, vector<1x1x128x128xbf16>
    %142 = vector.shape_cast %141 : vector<1x1x128x128xbf16> to vector<128x128xbf16>
    %cst_152 = arith.constant dense<0.000000e+00> : vector<128x128xf32>
    %143 = tpu.matmul %140, %142, %cst_152 {dimension_numbers = #tpu.dot_dimension_numbers<[1], [0], [0], [1], [0, 0, 1, 1], [], []>} : vector<128x128xbf16>, vector<128x128xbf16>, vector<128x128xf32> -> vector<128x128xf32>
    %144 = arith.addf %137, %143 : vector<128x128xf32>
    %c2_153 = arith.constant 2 : index
    %c0_154 = arith.constant 0 : index
    %c0_155 = arith.constant 0 : index
    %145 = vector.load %arg14[%c2_153, %c0_154, %c0_155] : memref<10x18x128xf32, #tpu.memory_space<vmem>>, vector<8x16x128xf32>
    %146 = arith.truncf %145 : vector<8x16x128xf32> to vector<8x16x128xbf16>
    %147 = vector.shape_cast %146 : vector<8x16x128xbf16> to vector<128x128xbf16>
    %c0_156 = arith.constant 0 : index
    %c6_157 = arith.constant 6 : index
    %c0_158 = arith.constant 0 : index
    %c0_159 = arith.constant 0 : index
    %148 = vector.load %arg8[%c0_156, %c6_157, %c0_158, %c0_159] : memref<1x9x128x128xbf16, #tpu.memory_space<vmem>>, vector<1x1x128x128xbf16>
    %149 = vector.shape_cast %148 : vector<1x1x128x128xbf16> to vector<128x128xbf16>
    %cst_160 = arith.constant dense<0.000000e+00> : vector<128x128xf32>
    %150 = tpu.matmul %147, %149, %cst_160 {dimension_numbers = #tpu.dot_dimension_numbers<[1], [0], [0], [1], [0, 0, 1, 1], [], []>} : vector<128x128xbf16>, vector<128x128xbf16>, vector<128x128xf32> -> vector<128x128xf32>
    %151 = arith.addf %144, %150 : vector<128x128xf32>
    %c2_161 = arith.constant 2 : index
    %c1_162 = arith.constant 1 : index
    %c0_163 = arith.constant 0 : index
    %152 = vector.load %arg14[%c2_161, %c1_162, %c0_163] : memref<10x18x128xf32, #tpu.memory_space<vmem>>, vector<8x16x128xf32>
    %153 = arith.truncf %152 : vector<8x16x128xf32> to vector<8x16x128xbf16>
    %154 = vector.shape_cast %153 : vector<8x16x128xbf16> to vector<128x128xbf16>
    %c0_164 = arith.constant 0 : index
    %c7_165 = arith.constant 7 : index
    %c0_166 = arith.constant 0 : index
    %c0_167 = arith.constant 0 : index
    %155 = vector.load %arg8[%c0_164, %c7_165, %c0_166, %c0_167] : memref<1x9x128x128xbf16, #tpu.memory_space<vmem>>, vector<1x1x128x128xbf16>
    %156 = vector.shape_cast %155 : vector<1x1x128x128xbf16> to vector<128x128xbf16>
    %cst_168 = arith.constant dense<0.000000e+00> : vector<128x128xf32>
    %157 = tpu.matmul %154, %156, %cst_168 {dimension_numbers = #tpu.dot_dimension_numbers<[1], [0], [0], [1], [0, 0, 1, 1], [], []>} : vector<128x128xbf16>, vector<128x128xbf16>, vector<128x128xf32> -> vector<128x128xf32>
    %158 = arith.addf %151, %157 : vector<128x128xf32>
    %c2_169 = arith.constant 2 : index
    %c2_170 = arith.constant 2 : index
    %c0_171 = arith.constant 0 : index
    %159 = vector.load %arg14[%c2_169, %c2_170, %c0_171] : memref<10x18x128xf32, #tpu.memory_space<vmem>>, vector<8x16x128xf32>
    %160 = arith.truncf %159 : vector<8x16x128xf32> to vector<8x16x128xbf16>
    %161 = vector.shape_cast %160 : vector<8x16x128xbf16> to vector<128x128xbf16>
    %c0_172 = arith.constant 0 : index
    %c8_173 = arith.constant 8 : index
    %c0_174 = arith.constant 0 : index
    %c0_175 = arith.constant 0 : index
    %162 = vector.load %arg8[%c0_172, %c8_173, %c0_174, %c0_175] : memref<1x9x128x128xbf16, #tpu.memory_space<vmem>>, vector<1x1x128x128xbf16>
    %163 = vector.shape_cast %162 : vector<1x1x128x128xbf16> to vector<128x128xbf16>
    %cst_176 = arith.constant dense<0.000000e+00> : vector<128x128xf32>
    %164 = tpu.matmul %161, %163, %cst_176 {dimension_numbers = #tpu.dot_dimension_numbers<[1], [0], [0], [1], [0, 0, 1, 1], [], []>} : vector<128x128xbf16>, vector<128x128xbf16>, vector<128x128xf32> -> vector<128x128xf32>
    %165 = arith.addf %158, %164 : vector<128x128xf32>
    %c0_177 = arith.constant 0 : index
    %c0_178 = arith.constant 0 : index
    %c0_179 = arith.constant 0 : index
    %166 = vector.load %arg9[%c0_177, %c0_178, %c0_179] : memref<1x1x128xf32, #tpu.memory_space<vmem>>, vector<1x1x128xf32>
    %167 = vector.shape_cast %166 : vector<1x1x128xf32> to vector<1x128xf32>
    %168 = vector.broadcast %167 : vector<1x128xf32> to vector<128x128xf32>
    %169 = arith.mulf %165, %168 : vector<128x128xf32>
    %c0_180 = arith.constant 0 : index
    %c0_181 = arith.constant 0 : index
    %c0_182 = arith.constant 0 : index
    %170 = vector.load %arg10[%c0_180, %c0_181, %c0_182] : memref<1x1x128xf32, #tpu.memory_space<vmem>>, vector<1x1x128xf32>
    %171 = vector.shape_cast %170 : vector<1x1x128xf32> to vector<1x128xf32>
    %172 = vector.broadcast %171 : vector<1x128xf32> to vector<128x128xf32>
    %173 = arith.addf %169, %172 : vector<128x128xf32>
    %cst_183 = arith.constant 0.000000e+00 : f32
    %174 = vector.broadcast %cst_183 : f32 to vector<128x128xf32>
    %175 = arith.cmpf ogt, %173, %174 : vector<128x128xf32>
    %c0_184 = arith.constant 0 : index
    %c0_185 = arith.constant 0 : index
    %c0_186 = arith.constant 0 : index
    %176 = vector.load %arg11[%c0_184, %c0_185, %c0_186] : memref<1x1x128xf32, #tpu.memory_space<vmem>>, vector<1x1x128xf32>
    %177 = vector.shape_cast %176 : vector<1x1x128xf32> to vector<1x128xf32>
    %178 = vector.broadcast %177 : vector<1x128xf32> to vector<128x128xf32>
    %179 = arith.mulf %178, %173 : vector<128x128xf32>
    %180 = arith.select %175, %173, %179 : vector<128x128xi1>, vector<128x128xf32>
    %c1_187 = arith.constant 1 : index
    %c1_188 = arith.constant 1 : index
    %c0_189 = arith.constant 0 : index
    %181 = vector.load %arg14[%c1_187, %c1_188, %c0_189] : memref<10x18x128xf32, #tpu.memory_space<vmem>>, vector<8x16x128xf32>
    %182 = vector.shape_cast %181 : vector<8x16x128xf32> to vector<128x128xf32>
    %183 = arith.addf %180, %182 : vector<128x128xf32>
    %184 = arith.index_cast %arg0 : i32 to index
    %185 = memref.load %arg12[%184] : memref<2xf32, #tpu.memory_space<smem>>
    %186 = vector.broadcast %185 : f32 to vector<128x128xf32>
    %187 = arith.mulf %186, %183 : vector<128x128xf32>
    %188 = vector.shape_cast %187 : vector<128x128xf32> to vector<8x16x128xf32>
    %c0_190 = arith.constant 0 : index
    %c0_191 = arith.constant 0 : index
    %c0_192 = arith.constant 0 : index
    %c0_193 = arith.constant 0 : index
    %189 = vector.load %arg13[%c0_190, %c0_191, %c0_192, %c0_193] : memref<1x8x16x128xf32, #tpu.memory_space<vmem>>, vector<1x8x16x128xf32>
    %190 = vector.shape_cast %189 : vector<1x8x16x128xf32> to vector<8x16x128xf32>
    %191 = vector.shape_cast %188 : vector<8x16x128xf32> to vector<1x8x16x128xf32>
    tpu.vector_store %arg13[%c0_190, %c0_191, %c0_192, %c0_193], %191 {strides = array<i32>} : memref<1x8x16x128xf32, #tpu.memory_space<vmem>>, vector<1x8x16x128xf32>,
    return
  }
  func.func @transform_0(%arg0: i32, %arg1: i32, %arg2: memref<2xi32, #tpu.memory_space<smem>>) -> (i32, i32, i32, i32, i32) {
    %c0_i32 = arith.constant 0 : i32
    %c0_i32_0 = arith.constant 0 : i32
    %c0_i32_1 = arith.constant 0 : i32
    %c0_i32_2 = arith.constant 0 : i32
    return %arg0, %arg1, %c0_i32, %c0_i32_0, %c0_i32_1 : i32, i32, i32, i32, i32
  }
  func.func @transform_1(%arg0: i32, %arg1: i32, %arg2: memref<2xi32, #tpu.memory_space<smem>>) -> (i32, i32, i32, i32) {
    %0 = arith.index_cast %arg0 : i32 to index
    %1 = memref.load %arg2[%0] : memref<2xi32, #tpu.memory_space<smem>>
    %c0_i32 = arith.constant 0 : i32
    %c0_i32_0 = arith.constant 0 : i32
    %c0_i32_1 = arith.constant 0 : i32
    %c0_i32_2 = arith.constant 0 : i32
    return %1, %c0_i32, %c0_i32_0, %c0_i32_1 : i32, i32, i32, i32
  }
  func.func @transform_2(%arg0: i32, %arg1: i32, %arg2: memref<2xi32, #tpu.memory_space<smem>>) -> (i32, i32, i32) {
    %0 = arith.index_cast %arg0 : i32 to index
    %1 = memref.load %arg2[%0] : memref<2xi32, #tpu.memory_space<smem>>
    %c0_i32 = arith.constant 0 : i32
    %c0_i32_0 = arith.constant 0 : i32
    %c0_i32_1 = arith.constant 0 : i32
    return %1, %c0_i32, %c0_i32_0 : i32, i32, i32
  }
  func.func @transform_3(%arg0: i32, %arg1: i32, %arg2: memref<2xi32, #tpu.memory_space<smem>>) -> (i32, i32, i32) {
    %0 = arith.index_cast %arg0 : i32 to index
    %1 = memref.load %arg2[%0] : memref<2xi32, #tpu.memory_space<smem>>
    %c0_i32 = arith.constant 0 : i32
    %c0_i32_0 = arith.constant 0 : i32
    %c0_i32_1 = arith.constant 0 : i32
    return %1, %c0_i32, %c0_i32_0 : i32, i32, i32
  }
  func.func @transform_4(%arg0: i32, %arg1: i32, %arg2: memref<2xi32, #tpu.memory_space<smem>>) -> (i32, i32, i32) {
    %0 = arith.index_cast %arg0 : i32 to index
    %1 = memref.load %arg2[%0] : memref<2xi32, #tpu.memory_space<smem>>
    %c0_i32 = arith.constant 0 : i32
    %c0_i32_0 = arith.constant 0 : i32
    %c0_i32_1 = arith.constant 0 : i32
    return %1, %c0_i32, %c0_i32_0 : i32, i32, i32
  }
  func.func @transform_5(%arg0: i32, %arg1: i32, %arg2: memref<2xi32, #tpu.memory_space<smem>>) -> (i32, i32, i32, i32) {
    %0 = arith.index_cast %arg0 : i32 to index
    %1 = memref.load %arg2[%0] : memref<2xi32, #tpu.memory_space<smem>>
    %c0_i32 = arith.constant 0 : i32
    %c0_i32_0 = arith.constant 0 : i32
    %c0_i32_1 = arith.constant 0 : i32
    %c0_i32_2 = arith.constant 0 : i32
    return %1, %c0_i32, %c0_i32_0, %c0_i32_1 : i32, i32, i32, i32
  }
  func.func @transform_6(%arg0: i32, %arg1: i32, %arg2: memref<2xi32, #tpu.memory_space<smem>>) -> (i32, i32, i32) {
    %0 = arith.index_cast %arg0 : i32 to index
    %1 = memref.load %arg2[%0] : memref<2xi32, #tpu.memory_space<smem>>
    %c0_i32 = arith.constant 0 : i32
    %c0_i32_0 = arith.constant 0 : i32
    %c0_i32_1 = arith.constant 0 : i32
    return %1, %c0_i32, %c0_i32_0 : i32, i32, i32
  }
  func.func @transform_7(%arg0: i32, %arg1: i32, %arg2: memref<2xi32, #tpu.memory_space<smem>>) -> (i32, i32, i32) {
    %0 = arith.index_cast %arg0 : i32 to index
    %1 = memref.load %arg2[%0] : memref<2xi32, #tpu.memory_space<smem>>
    %c0_i32 = arith.constant 0 : i32
    %c0_i32_0 = arith.constant 0 : i32
    %c0_i32_1 = arith.constant 0 : i32
    return %1, %c0_i32, %c0_i32_0 : i32, i32, i32
  }
  func.func @transform_8(%arg0: i32, %arg1: i32, %arg2: memref<2xi32, #tpu.memory_space<smem>>) -> (i32, i32, i32) {
    %0 = arith.index_cast %arg0 : i32 to index
    %1 = memref.load %arg2[%0] : memref<2xi32, #tpu.memory_space<smem>>
    %c0_i32 = arith.constant 0 : i32
    %c0_i32_0 = arith.constant 0 : i32
    %c0_i32_1 = arith.constant 0 : i32
    return %1, %c0_i32, %c0_i32_0 : i32, i32, i32
  }
  func.func @transform_9(%arg0: i32, %arg1: i32, %arg2: memref<2xi32, #tpu.memory_space<smem>>) -> i32 {
    %c0_i32 = arith.constant 0 : i32
    %c0_i32_0 = arith.constant 0 : i32
    return %c0_i32 : i32
  }
  func.func @transform_10(%arg0: i32, %arg1: i32, %arg2: memref<2xi32, #tpu.memory_space<smem>>) -> (i32, i32, i32, i32) {
    %c0_i32 = arith.constant 0 : i32
    %c0_i32_0 = arith.constant 0 : i32
    %c0_i32_1 = arith.constant 0 : i32
    return %arg0, %arg1, %c0_i32, %c0_i32_0 : i32, i32, i32, i32
  }
}

</mosaic_0001>

<bundles_post_ra>
// kernel: basic_block_forward.1
= control target key start
LH: loop header
LB: loop body
LE: loop exit
PB: predicated region body
PF: predicated region fallthrough
CT: control target
= control target key end

     0   :  { %s11049_s0 = inlined_call_operand.vmem [shape: s32[2], index: 0, kind: input, shape index: {}]   ;;  %s11050_s1 = inlined_call_operand.vmem [shape: bf16[2,2,12,18,128], index: 1, kind: input, shape index: {}]   ;;  %s11051_s2 = inlined_call_operand.vmem [shape: bf16[2,9,128,128], index: 2, kind: input, shape index: {}]   ;;  %s11052_s3 = inlined_call_operand.vmem [shape: f32[2,1,128], index: 3, kind: input, shape index: {}]   ;;  %s11053_s4 = inlined_call_operand.vmem [shape: f32[2,1,128], index: 4, kind: input, shape index: {}]   ;;  %s11054_s5 = inlined_call_operand.vmem [shape: f32[2,1,128], index: 5, kind: input, shape index: {}]   ;;  %s11055_s6 = inlined_call_operand.vmem [shape: bf16[2,9,128,128], index: 6, kind: input, shape index: {}]   ;;  %s11056_s7 = inlined_call_operand.vmem [shape: f32[2,1,128], index: 7, kind: input, shape index: {}]   ;;  %s11057_s8 = inlined_call_operand.vmem [shape: f32[2,1,128], index: 8, kind: input, shape index: {}]   ;;  %s11058_s9 = inlined_call_operand.vmem [shape: f32[2,1,128], index: 9, kind: input, shape index: {}]   ;;  %s11059_s10 = inlined_call_operand.vmem [shape: f32[2], index: 10, kind: input, shape index: {}]   ;;  %s11060_s11 = inlined_call_operand.vmem [shape: f32[2,16,16,128], index: 11, kind: output, shape index: {}]  }
   0x1   :  { %11072 = sst [smem:[#allocation40_spill]] %s11050_s1  ;;  %s16_s19 = sshll.u32 %s11049_s0, 4  ;;  %s17_s19 = int_to_ptr.vmem [resolvable:$true] %s16_s19 }
   0x2   :  { %11073 = sst [smem:[#allocation41_spill]] %s11051_s2  ;;  %s8678_s20 = scalar_lea.vmem %s17_s19, 16 }
   0x3   :  { %11074 = sst [smem:[#allocation42_spill]] %s11052_s3  ;;  %p8679_p0 = scmp.ne.s32.totalorder %s17_s19, %s8678_s20 }
   0x4   :  { %p8683_p1 = scmp.lt.s32.totalorder %s17_s19, %s17_s19  ;;  %p8684_p2 = scmp.lt.s32.totalorder %s8678_s20, %s8678_s20 }
   0x6   :  { %p8685_p3 = por %p8684_p2, %p8683_p1 }
   0x8   :  { %p8686_p4 = pnand %p8685_p3, %p8679_p0 }
   0xa   :  { %8689 = shalt.err (!%p8686_p4)  }
   0xb   :  { %s8751_s21 = smov [#allocation4]  }
   0xc   :  { %19 = dma.vmem_to_smem %s17_s19, 16, %s8751_s21, [#allocation3] }
   0xd   :  { %8725 = dma.done.wait [#allocation3], 16 }
   0xe   :  { %8726 = vsyncadd [#allocation3], 4294967280 }
   0xf   :  { %21 = sfence }
  0x10   :  { %22 = vsyncpa [#allocation6], 0  ;;  %s8818_s22 = smov 0   ;;  %s8820_s23 = smov 0  }
  0x11   :  { %s8822_s24 = smov 0   ;;  %s8824_s0 = smov 0  }
  0x12   :  { %s8826_s25 = smov 0  }
  0x13 LB: > { %s6471_s26 = sadd.s32 4294967295, %s8749_s25   ;;  %s37_s27 = sadd.s32 1, %s8741_s24  ;;  %s8749_s25 = sphi %s8826_s25, %s28_s25   ;;  %s8745_s0 = sphi %s8824_s0, %s11194_s0   ;;  %s8741_s24 = sphi %s8822_s24, %s11193_s24   ;;  %s8737_s23 = sphi %s8820_s23, %s11192_s23   ;;  %s8733_s22 = sphi %s8818_s22, %s11191_s22  }
  0x14   : > { %p38_p5 = scmp.ge.s32.totalorder %s37_s27, 2  ;;  %s40_s28 = sadd.s32 1, %s8745_s0 }
  0x15   : > { %p6473_p6 = scmp.ge.s32.totalorder %s8749_s25, 1  ;;  %p346_p7 = scmp.lt.s32.totalorder %s8749_s25, 5 }
  0x16   : > { %s11196_s27 = smov (%p38_p5, %s37_s27), 0  ;;  %s11198_s28 = smov (!%p38_p5, %s40_s28), %s8745_s0 }
  0x17   : > { %p8851_p8 = pnand %p6473_p6, %p346_p7  ;;  %p42_p9 = scmp.ge.s32.totalorder %s11198_s28, 2 }
  0x18   : > { %p8855_p10 = scmp.eq.s32.totalorder %s6471_s26, 0  ;;  %s359_s14 = sshll.u32 %s11059_s10, 4  ;;  %s360_s14 = int_to_ptr.vmem [resolvable:$true] %s359_s14 }
  0x19   : > { %p8349_p11 = pneg %p8851_p8  ;;  %s11200_s28 = smov (%p42_p9, %s11198_s28), 0 }
  0x1a   : > { %s8690_s15 = scalar_lea.vmem %s360_s14, 16  ;;  %p8698_p3 = scmp.lt.s32.totalorder %s360_s14, %s360_s14 }
  0x1b   : > { %p8350_p12 = pnand %p8855_p10, %p8349_p11  ;;  %p8691_p13 = scmp.ne.s32.totalorder %s360_s14, %s8690_s15 }
  0x1c   : > { %p8699_p4 = scmp.lt.s32.totalorder %s8690_s15, %s8690_s15 }
  0x1d   : > { %p8692_p0 = pneg %p8350_p12 }
  0x1e   : > { %p8700_p5 = por %p8699_p4, %p8698_p3 }
  0x1f   : > { %p8693_p1 = pnand %p8692_p0, %p8691_p13 }
  0x21   : > { %p8694_p2 = pneg %p8693_p1 }
  0x23   : > { %p8701_p6 = pnand %p8700_p5, %p8694_p2 }
  0x25   : > { %8704 = shalt.err (!%p8701_p6)
}
  0x26   : > { %s8752_s16 = smov [#allocation5]   ;;  %452 = sbr.rel (%p8851_p8) target bundleno = 1124 (0x464), region = 60 }
  0x27   : > { %8352 = dma.vmem_to_smem (!%p8350_p12), %s360_s14, 16, %s8752_s16, [#allocation6]  }
  0x2d   : > { %8728 = dma.done.wait (%p8855_p10), [#allocation6], 16  }
  0x2e   : > { %8730 = vsyncadd (%p8855_p10), [#allocation6], 4294967280 }
  0x2f   : > { %458 = sfence }
  0x30   : > { %s545_s17 = sld [smem:[#allocation4 + %s8737_s23]]  ;;  %p536_p7 = scmp.lt.s32.totalorder %s8737_s23, 1  ;;  %vm1359_vm0 = vcmask 1042432   ;;  %vm1360_vm1 = vcmask 1046532   ;;  %vm647_vm3 = vsmask.f32 3328 }
  0x31   : > { %p538_p9 = scmp.lt.s32.totalorder %s8733_s22, 1  ;;  %s11077_s1 = sld [smem:[#allocation40_spill]]  ;;  %vm8986_vm2 = vmor %vm1359_vm0, %vm1360_vm1  ;;  %vm648_vm4 = vsmask.f32 7440  ;;  %vm4121_vm6 = vcmask 1046528  }
  0x32   : > { %s8878_s18 = scalar_select %p536_p7, %s8737_s23, 1  ;;  %vm9243_vm5 = vmor %vm647_vm3, %vm648_vm4 }
  0x33   : > { %s539_s19 = scalar_select %p538_p9, %s8733_s22, 1 }
  0x34   : > { %s8342_s20 = smul.u32 72, %s8878_s18  ;;  %s11079_s2 = sld [smem:[#allocation41_spill]] }
  0x35   : > { %s8341_s21 = smul.u32 36, %s539_s19  ;;  %s10162_s12 = sld [smem:[#allocation4 + %s8737_s23]] }
  0x36   : > { %p546_p8 = scmp.lt.s32.totalorder %s545_s17, 1  ;;  %s10169_s13 = sshll.u32 %s8733_s22, 3 }
  0x37   : > { %s542_s26 = sadd.s32 %s8342_s20, %s8341_s21  ;;  %s10172_s15 = sld [smem:[#allocation4 + %s8737_s23]] }
  0x38   : > { %s11202_s17 = smov (!%p546_p8, %s545_s17), 1  ;;  %s6478_s29 = sshll.u32 %s542_s26, 2 }
  0x39   : > { %s8343_s30 = smul.u32 576, %s11202_s17  ;;  %s8885_s14 = scalar_lea.vmem %s11077_s1, %s6478_s29 }
  0x3a   : > { %v8888_v0 = vld [vmem:[%s8885_s14] sm:$0xf]  ;;  %v8891_v1 = vld [vmem:[%s8885_s14 + $0x4] sm:$0xf]  ;;  %v8909_v11 = vld [vmem:[%s8885_s14 + $0xc] sm:$0xf] }
  0x3b   : > { %11078 = vst [vmem:[#allocation9_spill] sm:$0xff] %v8891_v1  ;;  %s8896_s19 = scalar_lea.vmem %s11079_s2, %s8343_s30  ;;  %v6519_v2 = vcombine.low %v8888_v0, %v8891_v1  ;;  %v8912_v12 = vld [vmem:[%s8885_s14 + $0x10] sm:$0xf]  ;;  %v8916_v14 = vld [vmem:[%s8885_s14 + $0x18] sm:$0xf]  ;;  %v1364_v34 = vrot.slane %v8891_v1, 5 }
  0x3c   : > { %v8398_v3 = vld [vmem:[%s8896_s19] sm:$0xff]   ;;  %v8399_v4 = vld [vmem:[%s8896_s19 + $0x8] sm:$0xff]   ;;  %v8400_v5 = vld [vmem:[%s8896_s19 + $0x10] sm:$0xff]   ;;  %11080 = vst [vmem:[#allocation10_spill] sm:$0xff] %v8912_v12  ;;  %v6520_v16 = vcombine.low %v8909_v11, %v8912_v12  ;;  %v1371_v43 = vrot.slane %v8912_v12, 5  ;;  %s9824_s17 = sld [smem:[#allocation4 + %s8737_s23]] }
  0x3d   : > { %7493 = vmatprep.mubr.bf16.mxu0 %v6519_v2  ;;  %7477 = vmatprep.subr.bf16.mxu0 %v8398_v3  ;;  %v8401_v6 = vld [vmem:[%s8896_s19 + $0x18] sm:$0xff]   ;;  %v8402_v7 = vld [vmem:[%s8896_s19 + $0x20] sm:$0xff]   ;;  %v8403_v8 = vld [vmem:[%s8896_s19 + $0x28] sm:$0xff]   ;;  %v1366_v47 = vrot.slane %v1364_v34, 4  ;;  %s10155_s30 = sld [smem:[#allocation4 + %s8737_s23]]  ;;  %s6929_s22 = sadd.s32 4294967295, %s10169_s13 }
  0x3e   : > { %7478 = vmatpush3.bf16.msra.mxu0 %v8398_v3  ;;  %v8404_v9 = vld [vmem:[%s8896_s19 + $0x30] sm:$0xff]   ;;  %v8405_v10 = vld [vmem:[%s8896_s19 + $0x38] sm:$0xff]   ;;  %v8408_v13 = vld [vmem:[%s8896_s19 + $0x80] sm:$0xff]   ;;  %v1373_v61 = vrot.slane %v1371_v43, 4  ;;  %p558_p12 = scmp.lt.s32.totalorder %s10162_s12, 1  ;;  %p563_p13 = scmp.lt.s32.totalorder %s10172_s15, 1 }
  0x3f   : > { %7479 = vmatprep.subr.bf16.mxu0 %v8399_v4  ;;  %v8919_v15 = vld [vmem:[%s8885_s14 + $0x1c] sm:$0xf]  ;;  %v8409_v18 = vld [vmem:[%s8896_s19 + $0x88] sm:$0xff]   ;;  %v8927_v19 = vld [vmem:[%s8885_s14 + $0x24] sm:$0xf]  ;;  %s11162_s3 = sld [smem:[#allocation42_spill]] }
  0x40   : > { %11081 = vst [vmem:[#allocation11_spill] sm:$0xff] %v8919_v15  ;;  %v6521_v17 = vcombine.low %v8916_v14, %v8919_v15  ;;  %v8930_v20 = vld [vmem:[%s8885_s14 + $0x28] sm:$0xf]  ;;  %v8412_v21 = vld [vmem:[%s8896_s19 + $0x90] sm:$0xff]   ;;  %v8414_v26 = vld [vmem:[%s8896_s19 + $0x98] sm:$0xff]   ;;  %v1378_v55 = vrot.slane %v8919_v15, 5 }
  0x41   : > { %11082 = vst [vmem:[#allocation12_spill] sm:$0xff] %v8930_v20  ;;  %v8934_v22 = vld [vmem:[%s8885_s14 + $0x30] sm:$0xf]  ;;  %v8937_v23 = vld [vmem:[%s8885_s14 + $0x34] sm:$0xf]  ;;  %v6522_v24 = vcombine.low %v8927_v19, %v8930_v20  ;;  %v8416_v29 = vld [vmem:[%s8896_s19 + $0xa0] sm:$0xff]  }
  0x42   : > { %7480 = vmatpush3.bf16.msra.mxu0 %v8399_v4  ;;  %11083 = vst [vmem:[#allocation13_spill] sm:$0xff] %v8937_v23  ;;  %v6523_v25 = vcombine.low %v8934_v22, %v8937_v23  ;;  %v8945_v27 = vld [vmem:[%s8885_s14 + $0x3c] sm:$0xf]  ;;  %v8948_v28 = vld [vmem:[%s8885_s14 + $0x40] sm:$0xf]  ;;  %v8419_v35 = vld [vmem:[%s8896_s19 + $0xa8] sm:$0xff]  }
  0x43   : > { %7481 = vmatprep.subr.bf16.mxu0 %v8400_v5  ;;  %11084 = vst [vmem:[#allocation14_spill] sm:$0xff] %v8948_v28  ;;  %v8952_v30 = vld [vmem:[%s8885_s14 + $0x48] sm:$0xf]  ;;  %v8955_v31 = vld [vmem:[%s8885_s14 + $0x4c] sm:$0xf]  ;;  %v6524_v32 = vcombine.low %v8945_v27, %v8948_v28  ;;  %v8420_v38 = vld [vmem:[%s8896_s19 + $0xb0] sm:$0xff]  }
  0x44   : > { %11085 = vst [vmem:[#allocation15_spill] sm:$0xff] %v8955_v31  ;;  %v6525_v33 = vcombine.low %v8952_v30, %v8955_v31  ;;  %v8964_v36 = vld [vmem:[%s8885_s14 + $0x54] sm:$0xf]  ;;  %v8967_v37 = vld [vmem:[%s8885_s14 + $0x58] sm:$0xf]  ;;  %v8424_v54 = vld [vmem:[%s8896_s19 + $0xc0] sm:$0xff]  }
  0x45   : > { %11086 = vst [vmem:[#allocation16_spill] sm:$0xff] %v8967_v37  ;;  %v8971_v39 = vld [vmem:[%s8885_s14 + $0x60] sm:$0xf]  ;;  %v8974_v40 = vld [vmem:[%s8885_s14 + $0x64] sm:$0xf]  ;;  %v6526_v44 = vcombine.low %v8964_v36, %v8967_v37  ;;  %v8423_v46 = vld [vmem:[%s8896_s19 + $0xb8] sm:$0xff]  }
  0x46   : > { %7482 = vmatpush3.bf16.msra.mxu0 %v8400_v5  ;;  %11087 = vst [vmem:[#allocation17_spill] sm:$0xff] %v8974_v40  ;;  %v637_v41 = vld [vmem:[%s8885_s14 + $0x8] sm:$0x1]  ;;  %v1329_v42 = vld [vmem:[%s8885_s14] sm:$0xe]  ;;  %v6527_v45 = vcombine.low %v8971_v39, %v8974_v40  ;;  %v1380_v5 = vrot.slane %v1378_v55, 4 }
  0x47   : > { %7483 = vmatprep.subr.bf16.mxu0 %v8401_v6  ;;  %v6537_v49 = vrot.slane %v1329_v42, 9  ;;  %v1367_v50 = vrot.slane %v637_v41, 5  ;;  %v8991_v51 = vld [vmem:[%s8885_s14 + $0x6c] sm:$0xf]  ;;  %v8994_v52 = vld [vmem:[%s8885_s14 + $0x70] sm:$0xf] }
  0x48   : > { %11090 = vst [vmem:[#allocation18_spill] sm:$0xff] %v8994_v52  ;;  %v638_v53 = vld [vmem:[%s8885_s14 + $0x14] sm:$0x1]  ;;  %v1330_v56 = vld [vmem:[%s8885_s14 + $0xc] sm:$0xe]  ;;  %v6528_v62 = vcombine.low %v8991_v51, %v8994_v52  ;;  %p568_p10 = scmp.lt.s32.totalorder %s9824_s17, 1 }
  0x49   : > { %v1365_v57 = vsel %vm8986_vm2, %v6537_v49, %v1364_v34  ;;  %v1368_v58 = vsel %vm8986_vm2, %v1366_v47, %v1367_v50  ;;  %v639_v59 = vld [vmem:[%s8885_s14 + $0x20] sm:$0x1]  ;;  %v1331_v60 = vld [vmem:[%s8885_s14 + $0x18] sm:$0xe]  ;;  %v6538_v2 = vrot.slane %v1330_v56, 9  ;;  %v1374_v3 = vrot.slane %v638_v53, 5 }
  0x4a   : > { %7484 = vmatpush3.bf16.msra.mxu0 %v8401_v6  ;;  %v6563_v63 = vcombine.low %v1365_v57, %v1368_v58  ;;  %v6539_v4 = vrot.slane %v1331_v60, 9  ;;  %v1381_v6 = vrot.slane %v639_v59, 5  ;;  %v8425_v34 = vld [vmem:[%s8896_s19 + $0xc8] sm:$0xff]   ;;  %v1334_v50 = vld [vmem:[%s8885_s14 + $0x3c] sm:$0xe]  ;;  %v1406_v53 = vrot.slane %v8955_v31, 5 }
  0x4b   : > { %7485 = vmatprep.subr.bf16.mxu0 %v8402_v7  ;;  %v6542_v58 = vrot.slane %v1334_v50, 9  ;;  %v9321_v15 = vld [vmem:[%s8885_s14 + $0x68] sm:$0x1]  ;;  %v6662_v12 = vld [vmem:[%s8885_s14 + $0x78] sm:$0xf]  ;;  %s11204_s17 = smov (!%p568_p10, %s9824_s17), 1 }
  0x4c   : > { %v9341_v1 = vld [vmem:[%s8885_s14 + $0x7c] sm:$0xf]  ;;  %s8344_s20 = smul.u32 576, %s11204_s17  ;;  %p553_p11 = scmp.lt.s32.totalorder %s10155_s30, 1 }
  0x4d   : > { %11113 = vst [vmem:[#allocation39_spill] sm:$0xff] %v9341_v1  ;;  %s11208_s12 = smov (!%p558_p12, %s10162_s12), 1  ;;  %s11210_s15 = smov (!%p563_p13, %s10172_s15), 1 }
  0x4e   : > { %7486 = vmatpush3.bf16.msra.mxu0 %v8402_v7  ;;  %v1372_v7 = vsel %vm8986_vm2, %v6538_v2, %v1371_v43  ;;  %s9903_s29 = scalar_lea.vmem %s11055_s6, %s8344_s20  ;;  %s11206_s30 = smov (!%p553_p11, %s10155_s30), 1 }
  0x4f   : > { %7487 = vmatprep.subr.bf16.mxu0 %v8403_v8  ;;  %v8506_v48 = vld [vmem:[%s9903_s29 + $0x70] sm:$0xff]   ;;  %s555_s17 = scalar_lea.vmem %s11162_s3, %s11206_s30  ;;  %s560_s26 = scalar_lea.vmem %s11053_s4, %s11208_s12 }
  0x50   : > { %p592_p3 = scmp.lt.s32.totalorder %s10169_s13, 15  ;;  %s6248_s1 = sld [smem:[#allocation5 + %s8737_s23]] }
  0x51   : > { %s6483_s3 = sshll.u32 %s8878_s18, 5 }
  0x52   : > { %7488 = vmatpush3.bf16.msra.mxu0 %v8403_v8  ;;  %v1375_v8 = vsel %vm8986_vm2, %v1373_v61, %v1374_v3  ;;  %v8427_v61 = vld [vmem:[%s8896_s19 + $0xd8] sm:$0xff]   ;;  %v651_v3 = vshrl.u32 %v8888_v0, 16  ;;  %s11218_s13 = smov (!%p592_p3, %s10169_s13), 15 }
  0x53   : > { %7489 = vmatprep.subr.bf16.mxu0 %v8404_v9  ;;  %s6482_s2 = sshll.u32 %s11218_s13, 1 }
  0x56   : > { %7490 = vmatpush3.bf16.msra.mxu0 %v8404_v9  ;;  %v640_v9 = vld [vmem:[%s8885_s14 + $0x2c] sm:$0x1] }
  0x57   : > { %7491 = vmatprep.subr.bf16.mxu0 %v8405_v10 }
  0x5a   : > { %7492 = vmatpush3.bf16.msra.mxu0 %v8405_v10  ;;  %v1385_v10 = vrot.slane %v8930_v20, 5 }
  0x5b   : > { %7513 = vmatprep.subr.bf16.mxu0 %v8408_v13 }
  0x5d   : > { %7494 = vmatmul.mubr.bf16.vlgmr.msra.gmra.mrb[0].mxu0 %v6520_v16  ;;  %v1382_v16 = vsel %vm8986_vm2, %v1380_v5, %v1381_v6  ;;  %v8437_v5 = vld [vmem:[%s8885_s14 + $0x30] sm:$0xff]  }
  0x5e   : > { %7514 = vmatpush3.bf16.msra.mxu0 %v8408_v13  ;;  %7497 = vmatprep.mubr.bf16.mxu0 %v6521_v17  ;;  %v1379_v13 = vsel %vm8986_vm2, %v6539_v4, %v1378_v55  ;;  %v1332_v17 = vld [vmem:[%s8885_s14 + $0x24] sm:$0xe]  ;;  %v1335_v55 = vld [vmem:[%s8885_s14 + $0x48] sm:$0xe]  ;;  %v654_v4 = vshll.u32 %v8888_v0, 16 }
  0x5f   : > { %7515 = vmatprep.subr.bf16.mxu0 %v8409_v18 }
  0x62   : > { %7516 = vmatpush3.bf16.msra.mxu0 %v8409_v18  ;;  %v1392_v18 = vrot.slane %v8937_v23, 5 }
  0x63   : > { %7517 = vmatprep.subr.bf16.mxu0 %v8412_v21 }
  0x65   : > { %7498 = vmatmul.mubr.bf16.gmra.mrb[4].mxu0 %v6522_v24  ;;  %v1333_v24 = vld [vmem:[%s8885_s14 + $0x30] sm:$0xe] }
  0x66   : > { %7518 = vmatpush3.bf16.msra.mxu0 %v8412_v21  ;;  %7501 = vmatprep.mubr.bf16.mxu0 %v6523_v25  ;;  %v641_v21 = vld [vmem:[%s8885_s14 + $0x38] sm:$0x1]  ;;  %v6564_v25 = vcombine.low %v1372_v7, %v1375_v8  ;;  %v1413_v8 = vrot.slane %v8967_v37, 5  ;;  %v9216_v37 = vld [vmem:[%s8885_s14 + $0x44] sm:$0x1] }
  0x67   : > { %7519 = vmatprep.subr.bf16.mxu0 %v8414_v26  ;;  %v1395_v41 = vrot.slane %v641_v21, 5  ;;  %v678_v21 = vshll.u32 %v8909_v11, 16 }
  0x6a   : > { %7520 = vmatpush3.bf16.msra.mxu0 %v8414_v26  ;;  %v6565_v26 = vcombine.low %v1379_v13, %v1382_v16  ;;  %v644_v13 = vld [vmem:[%s8885_s14 + $0x5c] sm:$0x1]  ;;  %v1336_v16 = vld [vmem:[%s8885_s14 + $0x54] sm:$0xe] }
  0x6b   : > { %7521 = vmatprep.subr.bf16.mxu0 %v8416_v29 }
  0x6d   : > { %7502 = vmatmul.mubr.bf16.gmra.mrb[8].mxu0 %v6524_v32  ;;  %v1387_v32 = vrot.slane %v1385_v10, 4 }
  0x6e   : > { %7522 = vmatpush3.bf16.msra.mxu0 %v8416_v29  ;;  %7505 = vmatprep.mubr.bf16.mxu0 %v6525_v33  ;;  %v6540_v29 = vrot.slane %v1332_v17, 9  ;;  %v1388_v33 = vrot.slane %v640_v9, 5  ;;  %v8428_v9 = vld [vmem:[%s8896_s19 + $0xe0] sm:$0xff]   ;;  %v1420_v17 = vrot.slane %v8974_v40, 5 }
  0x6f   : > { %7523 = vmatprep.subr.bf16.mxu0 %v8419_v35 }
  0x70   : > { %v1386_v42 = vsel %vm8986_vm2, %v6540_v29, %v1385_v10  ;;  %v1389_v43 = vsel %vm8986_vm2, %v1387_v32, %v1388_v33  ;;  %v699_v29 = vshrl.u32 %v8916_v14, 16  ;;  %v702_v32 = vshll.u32 %v8916_v14, 16 }
  0x71   : > { %v6566_v56 = vcombine.low %v1386_v42, %v1389_v43  ;;  %v8429_v42 = vld [vmem:[%s8896_s19 + $0xe8] sm:$0xff]   ;;  %v723_v14 = vshrl.u32 %v8927_v19, 16 }
  0x72   : > { %7524 = vmatpush3.bf16.msra.mxu0 %v8419_v35  ;;  %v6541_v35 = vrot.slane %v1333_v24, 9  ;;  %v645_v24 = vld [vmem:[%s8885_s14 + $0x68] sm:$0x1]  ;;  %v9072_v50 = vrot.slane %v699_v29, 4 }
  0x73   : > { %7525 = vmatprep.subr.bf16.mxu0 %v8420_v38 }
  0x74   : > { %v1393_v47 = vsel %vm8986_vm2, %v6541_v35, %v1392_v18  ;;  %v6544_v35 = vrot.slane %v1336_v16, 9  ;;  %11095 = vst [vmem:[#allocation23_spill] sm:$0xff] %v9072_v50 }
  0x75   : > { %7506 = vmatmul.mubr.bf16.gmra.mrb[12].mxu0 %v6526_v44  ;;  %v642_v44 = vld [vmem:[%s8885_s14 + $0x44] sm:$0x1] }
  0x76   : > { %7509 = vmatprep.mubr.bf16.mxu0 %v6527_v45  ;;  %7526 = vmatpush3.bf16.msra.mxu0 %v8420_v38  ;;  %v1394_v38 = vrot.slane %v1392_v18, 4  ;;  %v1399_v45 = vrot.slane %v8948_v28, 5  ;;  %v1402_v60 = vrot.slane %v642_v44, 5  ;;  %v675_v18 = vshrl.u32 %v8909_v11, 16 }
  0x77   : > { %7527 = vmatprep.subr.bf16.mxu0 %v8423_v46  ;;  %v1422_v44 = vrot.slane %v1420_v17, 4  ;;  %v1423_v11 = vrot.slane %v645_v24, 5  ;;  %v798_v24 = vshll.u32 %v8952_v30, 16 }
  0x78   : > { %v1396_v49 = vsel %vm8986_vm2, %v1394_v38, %v1395_v41  ;;  %v1401_v59 = vrot.slane %v1399_v45, 4  ;;  %v1400_v6 = vsel %vm8986_vm2, %v6542_v58, %v1399_v45  ;;  %v1415_v38 = vrot.slane %v1413_v8, 4  ;;  %v1338_v58 = vld [vmem:[%s8885_s14 + $0x6c] sm:$0xe] }
  0x79   : > { %v6567_v57 = vcombine.low %v1393_v47, %v1396_v49  ;;  %v1416_v41 = vrot.slane %v644_v13, 5  ;;  %v9064_v45 = vrot.slane %v654_v4, 5  ;;  %v9068_v47 = vrot.slane %v678_v21, 5 }
  0x7a   : > { %7528 = vmatpush3.bf16.msra.mxu0 %v8423_v46  ;;  %v8426_v46 = vld [vmem:[%s8896_s19 + $0xd0] sm:$0xff]   ;;  %v1403_v7 = vsel %vm8986_vm2, %v1401_v59, %v1402_v60  ;;  %v1427_v59 = vrot.slane %v8994_v52, 5  ;;  %v750_v4 = vshll.u32 %v8934_v22, 16 }
  0x7b   : > { %7549 = vmatprep.subr.bf16.mxu0 %v8424_v54  ;;  %v6568_v33 = vcombine.low %v1400_v6, %v1403_v7  ;;  %11092 = vst [vmem:[#allocation20_spill] sm:$0xff] %v9064_v45  ;;  %11094 = vst [vmem:[#allocation22_spill] sm:$0xff] %v9068_v47  ;;  %v771_v6 = vshrl.u32 %v8945_v27, 16  ;;  %v774_v7 = vshll.u32 %v8945_v27, 16  ;;  %v8431_v27 = vld [vmem:[%s8896_s19 + $0xf8] sm:$0xff]  }
  0x7c   : > { %v1429_v16 = vrot.slane %v1427_v59, 4 }
  0x7d   : > { %7510 = vmatmul.mubr.bf16.gmra.mrb[16].mxu0 %v6528_v62  ;;  %v6543_v62 = vrot.slane %v1335_v55, 9  ;;  %v9076_v55 = vrot.slane %v702_v32, 5  ;;  %v9108_v29 = vrot.slane %v771_v6, 4  ;;  %v9110_v32 = vrot.slane %v774_v7, 5  ;;  %v9139_v6 = vld [vmem:[%s8885_s14 + $0x1c] sm:$0xf] }
  0x7e   : > { %7529 = vmatprep.mubr.bf16.mxu0 %v6563_v63  ;;  %v1408_v63 = vrot.slane %v1406_v53, 4 }
  0x7f   : > { %v1407_v0 = vsel %vm8986_vm2, %v6543_v62, %v1406_v53  ;;  %11096 = vst [vmem:[#allocation24_spill] sm:$0xff] %v9076_v55  ;;  %11101 = vst [vmem:[#allocation29_spill] sm:$0xff] %v9108_v29 }
  0x80   : > { %11102 = vst [vmem:[#allocation30_spill] sm:$0xff] %v9110_v32  ;;  %v9259_v32 = vld [vmem:[%s8885_s14 + $0x58] sm:$0xf] }
  0x85   : > { %7530 = vmatmul.mubr.bf16.vlgmr.msra.gmra.mrb[0].mxu0 %v6564_v25  ;;  %v1337_v25 = vld [vmem:[%s8885_s14 + $0x60] sm:$0xe] }
  0x86   : > { %7550 = vmatpush3.bf16.msra.mxu0 %v8424_v54  ;;  %7533 = vmatprep.mubr.bf16.mxu0 %v6565_v26  ;;  %v643_v54 = vld [vmem:[%s8885_s14 + $0x50] sm:$0x1]  ;;  %v9059_v26 = vrot.slane %v651_v3, 4  ;;  %v6545_v43 = vrot.slane %v1337_v25, 9  ;;  %v9092_v3 = vrot.slane %v723_v14, 4  ;;  %v9106_v25 = vrot.slane %v750_v4, 5 }
  0x87   : > { %7551 = vmatprep.subr.bf16.mxu0 %v8425_v34  ;;  %v1409_v2 = vrot.slane %v643_v54, 5  ;;  %v726_v54 = vshll.u32 %v8927_v19, 16  ;;  %v8430_v19 = vld [vmem:[%s8896_s19 + $0xf0] sm:$0xff]   ;;  %v822_v14 = vshll.u32 %v8964_v36, 16 }
  0x88   : > { %11091 = vst [vmem:[#allocation19_spill] sm:$0xff] %v9059_v26  ;;  %v1421_v62 = vsel %vm8986_vm2, %v6545_v43, %v1420_v17  ;;  %11097 = vst [vmem:[#allocation25_spill] sm:$0xff] %v9092_v3 }
  0x89   : > { %v1410_v10 = vsel %vm8986_vm2, %v1408_v63, %v1409_v2  ;;  %v1424_v63 = vsel %vm8986_vm2, %v1422_v44, %v1423_v11  ;;  %v646_v2 = vld [vmem:[%s8885_s14 + $0x74] sm:$0x1]  ;;  %11100 = vst [vmem:[#allocation28_spill] sm:$0xff] %v9106_v25  ;;  %v9123_v44 = vrot.slane %v798_v24, 5  ;;  %v819_v11 = vshrl.u32 %v8964_v36, 16 }
  0x8a   : > { %7552 = vmatpush3.bf16.msra.mxu0 %v8425_v34  ;;  %v6569_v34 = vcombine.low %v1407_v0, %v1410_v10  ;;  %v6546_v10 = vrot.slane %v1338_v58, 9  ;;  %v6571_v13 = vcombine.low %v1421_v62, %v1424_v63  ;;  %v1430_v17 = vrot.slane %v646_v2, 5  ;;  %v8432_v62 = vld [vmem:[%s8885_s14 + $0xc] sm:$0xff]   ;;  %v9135_v63 = vld [vmem:[%s8885_s14 + $0x14] sm:$0x1] }
  0x8b   : > { %7553 = vmatprep.subr.bf16.mxu0 %v8426_v46  ;;  %11104 = vst [vmem:[#allocation32_spill] sm:$0xff] %v9123_v44  ;;  %v6638_v36 = vld [vmem:[%s8885_s14 + $0x18] sm:$0xf]  ;;  %v9141_v7 = vrot.slane %v819_v11, 4 }
  0x8c   : > { %v1431_v43 = vsel %vm8986_vm2, %v1429_v16, %v1430_v17  ;;  %v1999_v17 = vshll.u32 %v9135_v63, 16 }
  0x8d   : > { %7534 = vmatmul.mubr.bf16.gmra.mrb[4].mxu0 %v6566_v56  ;;  %v1414_v56 = vsel %vm8986_vm2, %v6544_v35, %v1413_v8  ;;  %v9097_v8 = vrot.slane %v726_v54, 5  ;;  %v8434_v54 = vld [vmem:[%s8896_s19 + $0x100] sm:$0xff]   ;;  %11105 = vst [vmem:[#allocation33_spill] sm:$0xff] %v9141_v7 }
  0x8e   : > { %7554 = vmatpush3.bf16.msra.mxu0 %v8426_v46  ;;  %7537 = vmatprep.mubr.bf16.mxu0 %v6567_v57  ;;  %v9066_v46 = vrot.slane %v675_v18, 4  ;;  %v1417_v57 = vsel %vm8986_vm2, %v1415_v38, %v1416_v41  ;;  %v6635_v18 = vld [vmem:[%s8885_s14 + $0xc] sm:$0xf] }
  0x8f   : > { %7555 = vmatprep.subr.bf16.mxu0 %v8427_v61  ;;  %11098 = vst [vmem:[#allocation26_spill] sm:$0xff] %v9097_v8  ;;  %v6570_v0 = vcombine.low %v1414_v56, %v1417_v57  ;;  %v1980_v35 = vshrl.u32 %v6635_v18, 16  ;;  %v1983_v38 = vshll.u32 %v6635_v18, 16  ;;  %v843_v56 = vshrl.u32 %v8971_v39, 16  ;;  %v9152_v18 = vld [vmem:[%s8885_s14 + $0x20] sm:$0x1] }
  0x90   : > { %11093 = vst [vmem:[#allocation21_spill] sm:$0xff] %v9066_v46  ;;  %v846_v57 = vshll.u32 %v8971_v39, 16  ;;  %v9143_v39 = vrot.slane %v822_v14, 5 }
  0x91   : > { %v1982_v2 = vrot.slane %v1980_v35, 4  ;;  %v1985_v4 = vrot.slane %v1983_v38, 5  ;;  %v2007_v35 = vshll.u32 %v6638_v36, 16  ;;  %v9155_v38 = vrot.slane %v843_v56, 4 }
  0x92   : > { %7556 = vmatpush3.bf16.msra.mxu0 %v8427_v61  ;;  %v747_v61 = vshrl.u32 %v8934_v22, 16  ;;  %11106 = vst [vmem:[#allocation34_spill] sm:$0xff] %v9143_v39  ;;  %v2017_v56 = vshrl.u32 %v9139_v6, 16  ;;  %v9219_v39 = vld [vmem:[%s8885_s14 + $0x48] sm:$0xf] }
  0x93   : > { %7557 = vmatprep.subr.bf16.mxu0 %v8428_v9  ;;  %v1986_v24 = vor.u32 %v1985_v4, %v1982_v2  ;;  %11107 = vst [vmem:[#allocation35_spill] sm:$0xff] %v9155_v38  ;;  %v9168_v4 = vrot.slane %v1999_v17, 5  ;;  %v9182_v17 = vld [vmem:[%s8885_s14 + $0x34] sm:$0xf]  ;;  %v2100_v44 = vshrl.u32 %v9219_v39, 16  ;;  %v2103_v28 = vshll.u32 %v9219_v39, 16 }
  0x94   : > { %v9101_v21 = vrot.slane %v747_v61, 4  ;;  %v867_v61 = vshrl.u32 %v8991_v51, 16  ;;  %v2019_v22 = vrot.slane %v2017_v56, 4  ;;  %v2061_v56 = vshll.u32 %v9182_v17, 16 }
  0x95   : > { %7538 = vmatmul.mubr.bf16.gmra.mrb[8].mxu0 %v6568_v33  ;;  %v2065_v49 = vshrl.u32 %v9182_v17, 16 }
  0x96   : > { %7558 = vmatpush3.bf16.msra.mxu0 %v8428_v9  ;;  %7541 = vmatprep.mubr.bf16.mxu0 %v6569_v34  ;;  %v795_v9 = vshrl.u32 %v8952_v30, 16  ;;  %11099 = vst [vmem:[#allocation27_spill] sm:$0xff] %v9101_v21  ;;  %v9114_v34 = vld [vmem:[%s8885_s14 + $0x10] sm:$0xf]  ;;  %v2105_v21 = vrot.slane %v2103_v28, 5 }
  0x97   : > { %7559 = vmatprep.subr.bf16.mxu0 %v8429_v42  ;;  %v1989_v58 = vshll.u32 %v9114_v34, 16 }
  0x98   : > { %v9116_v41 = vrot.slane %v795_v9, 4 }
  0x9a   : > { %7560 = vmatpush3.bf16.msra.mxu0 %v8429_v42  ;;  %11103 = vst [vmem:[#allocation31_spill] sm:$0xff] %v9116_v41  ;;  %v1428_v42 = vsel %vm8986_vm2, %v6546_v10, %v1427_v59  ;;  %v1993_v59 = vshrl.u32 %v9114_v34, 16  ;;  %v9178_v10 = vld [vmem:[%s8885_s14 + $0x28] sm:$0xf]  ;;  %v9250_v41 = vld [vmem:[%s8885_s14 + $0x4c] sm:$0xf] }
  0x9b   : > { %7561 = vmatprep.subr.bf16.mxu0 %v8430_v19  ;;  %v2037_v60 = vshll.u32 %v9178_v10, 16 }
  0x9c   : > { %v1995_v16 = vrot.slane %v1993_v59, 4  ;;  %v6641_v59 = vld [vmem:[%s8885_s14 + $0x24] sm:$0xf] }
  0x9d   : > { %7542 = vmatmul.mubr.bf16.gmra.mrb[12].mxu0 %v6570_v0  ;;  %v870_v0 = vshll.u32 %v8991_v51, 16  ;;  %v2013_v51 = vshll.u32 %v9139_v6, 16  ;;  %v2028_v9 = vshrl.u32 %v6641_v59, 16  ;;  %v2031_v30 = vshll.u32 %v6641_v59, 16 }
  0x9e   : > { %7545 = vmatprep.mubr.bf16.mxu0 %v6571_v13  ;;  %7562 = vmatpush3.bf16.msra.mxu0 %v8430_v19  ;;  %v6572_v19 = vcombine.low %v1428_v42, %v1431_v43  ;;  %v9148_v13 = vrot.slane %v1989_v58, 5  ;;  %v9157_v42 = vrot.slane %v846_v57, 5  ;;  %v9159_v43 = vrot.slane %v867_v61, 4  ;;  %v8433_v58 = vld [vmem:[%s8885_s14 + $0x18] sm:$0xff]   ;;  %v8435_v61 = vld [vmem:[%s8896_s19 + $0x108] sm:$0xff]  }
  0x9f   : > { %7563 = vmatprep.subr.bf16.mxu0 %v8431_v27  ;;  %v9162_v14 = vrot.slane %v870_v0, 5  ;;  %v2023_v57 = vshll.u32 %v9152_v18, 16  ;;  %v2009_v0 = vrot.slane %v2007_v35, 5  ;;  %v9175_v11 = vrot.slane %v2013_v51, 5 }
  0xa0   : > { %11108 = vst [vmem:[#allocation36_spill] sm:$0xff] %v9157_v42  ;;  %11109 = vst [vmem:[#allocation37_spill] sm:$0xff] %v9159_v43  ;;  %v1996_v2 = vor.u32 %v1995_v16, %v9148_v13  ;;  %v6644_v16 = vld [vmem:[%s8885_s14 + $0x30] sm:$0xf]  ;;  %v6647_v42 = vld [vmem:[%s8885_s14 + $0x3c] sm:$0xf] }
  0xa1   : > { %11110 = vst [vmem:[#allocation38_spill] sm:$0xff] %v9162_v14  ;;  %v9189_v51 = vrot.slane %v2023_v57, 5  ;;  %v2052_v53 = vshrl.u32 %v6644_v16, 16  ;;  %v2055_v59 = vshll.u32 %v6644_v16, 16  ;;  %v2033_v57 = vrot.slane %v2031_v30, 5 }
  0xa2   : > { %7564 = vmatpush3.bf16.msra.mxu0 %v8431_v27  ;;  %v2004_v27 = vshrl.u32 %v6638_v36, 16  ;;  %v9173_v36 = vrot.slane %v1986_v24, 4  ;;  %v9184_v33 = vrot.slane %v1996_v2, 4  ;;  %v2041_v24 = vshrl.u32 %v9178_v10, 16  ;;  %v9192_v2 = vld [vmem:[%s8885_s14 + $0x2c] sm:$0x1] }
  0xa3   : > { %7585 = vmatprep.subr.bf16.mxu0 %v8434_v54  ;;  %v2047_v14 = vshll.u32 %v9192_v2, 16  ;;  %v2054_v43 = vrot.slane %v2052_v53, 4  ;;  %v2057_v40 = vrot.slane %v2055_v59, 5  ;;  %v2020_v30 = vor.u32 %v2019_v22, %v9175_v11  ;;  %v8442_v53 = vld [vmem:[%s8896_s19 + $0x120] sm:$0xff]  }
  0xa4   : > { %v2043_v16 = vrot.slane %v2041_v24, 4  ;;  %v9212_v24 = vld [vmem:[%s8885_s14 + $0x40] sm:$0xf] }
  0xa5   : > { %7546 = vmatmul.mubr.bf16.gmra.mrb[16].mxu0 %v6572_v19  ;;  %v8436_v19 = vld [vmem:[%s8885_s14 + $0x24] sm:$0xff]   ;;  %v2021_v59 = vrot.slane %v2020_v30, 4  ;;  %v2089_v7 = vshrl.u32 %v9212_v24, 16 }
  0xa6   : > { %7565 = vmatprep.mubr.bf16.mxu0 %v8432_v62  ;;  %v2006_v62 = vrot.slane %v2004_v27, 4  ;;  %v8438_v27 = vld [vmem:[%s8896_s19 + $0x110] sm:$0xff]  }
  0xa8   : > { %v2010_v35 = vor.u32 %v2009_v0, %v2006_v62  ;;  %v8439_v62 = vld [vmem:[%s8885_s14 + $0x3c] sm:$0xff]   ;;  %v9198_v0 = vrot.slane %v2037_v60, 5  ;;  %v2067_v60 = vrot.slane %v2065_v49, 4  ;;  %v2076_v49 = vshrl.u32 %v6647_v42, 16 }
  0xaa   : > { %v9204_v52 = vrot.slane %v2010_v35, 4  ;;  %v2044_v35 = vor.u32 %v2043_v16, %v9198_v0  ;;  %v2085_v16 = vshll.u32 %v9212_v24, 16 }
  0xac   : > { %v2016_v39 = vsel %vm9243_vm5, %v9204_v52, %v9175_v11 }
  0xad   : > { %7566 = vmatmul.mubr.bf16.vlgmr.msra.gmra.mrb[0].mxu0 %v8433_v58  ;;  %v2030_v58 = vrot.slane %v2028_v9, 4  ;;  %v9208_v9 = vrot.slane %v2061_v56, 5 }
  0xae   : > { %7586 = vmatpush3.bf16.msra.mxu0 %v8434_v54  ;;  %7569 = vmatprep.mubr.bf16.mxu0 %v8436_v19  ;;  %v9201_v54 = vld [vmem:[%s8885_s14 + $0x38] sm:$0x1] }
  0xaf   : > { %7587 = vmatprep.subr.bf16.mxu0 %v8435_v61  ;;  %v8440_v19 = vld [vmem:[%s8896_s19 + $0x118] sm:$0xff]   ;;  %v2034_v38 = vor.u32 %v2033_v57, %v2030_v58  ;;  %v2071_v22 = vshll.u32 %v9201_v54, 16  ;;  %v2068_v56 = vor.u32 %v2067_v60, %v9208_v9  ;;  %v2079_v58 = vshll.u32 %v6647_v42, 16  ;;  %v8441_v57 = vld [vmem:[%s8885_s14 + $0x48] sm:$0xff]  }
  0xb0   : > { %v2078_v60 = vrot.slane %v2076_v49, 4  ;;  %v6653_v49 = vld [vmem:[%s8885_s14 + $0x54] sm:$0xf] }
  0xb1   : > { %v9228_v31 = vrot.slane %v2034_v38, 4  ;;  %v9238_v30 = vrot.slane %v2071_v22, 5  ;;  %v2091_v22 = vrot.slane %v2089_v7, 4  ;;  %v2002_v7 = vsel %vm9243_vm5, %v9184_v33, %v9168_v4  ;;  %v8447_v4 = vld [vmem:[%s8885_s14 + $0x6c] sm:$0xff]  }
  0xb2   : > { %7588 = vmatpush3.bf16.msra.mxu0 %v8435_v61  ;;  %v2058_v61 = vor.u32 %v2057_v40, %v2054_v43  ;;  %v9230_v40 = vrot.slane %v2044_v35, 4  ;;  %v9232_v43 = vrot.slane %v2047_v14, 5  ;;  %v9247_v14 = vrot.slane %v2068_v56, 4  ;;  %v8446_v56 = vld [vmem:[%s8896_s19 + $0x130] sm:$0xff]  }
  0xb3   : > { %7589 = vmatprep.subr.bf16.mxu0 %v8438_v27  ;;  %v2081_v35 = vrot.slane %v2079_v58, 5  ;;  %v1992_v58 = vsel %vm9243_vm5, %v9173_v36, %v9148_v13  ;;  %v8444_v13 = vld [vmem:[%s8885_s14 + $0x60] sm:$0xff]   ;;  %v9283_v36 = vld [vmem:[%s8885_s14 + $0x50] sm:$0x1]  ;;  %v2113_v33 = vshrl.u32 %v9250_v41, 16  ;;  %v2124_v29 = vshrl.u32 %v6653_v49, 16 }
  0xb4   : > { %v9236_v42 = vrot.slane %v2058_v61, 4  ;;  %v9252_v61 = vrot.slane %v2085_v16, 5  ;;  %v6656_v16 = vld [vmem:[%s8885_s14 + $0x60] sm:$0xf]  ;;  %v2127_v23 = vshll.u32 %v6653_v49, 16  ;;  %v9288_v52 = vcombine.low %v1992_v58, %v2002_v7  ;;  %v8449_v58 = vld [vmem:[%s8896_s19 + $0x138] sm:$0xff]  }
  0xb5   : > { %7570 = vmatmul.mubr.bf16.gmra.mrb[4].mxu0 %v8437_v5  ;;  %v8443_v5 = vld [vmem:[%s8885_s14 + $0x54] sm:$0xff]   ;;  %v2040_v25 = vsel %vm9243_vm5, %v9228_v31, %v9198_v0  ;;  %v2151_v49 = vshll.u32 %v6656_v16, 16  ;;  %v6659_v31 = vld [vmem:[%s8885_s14 + $0x6c] sm:$0xf] }
  0xb6   : > { %7590 = vmatpush3.bf16.msra.mxu0 %v8438_v27  ;;  %7573 = vmatprep.mubr.bf16.mxu0 %v8439_v62  ;;  %v2095_v27 = vshll.u32 %v9216_v37, 16  ;;  %v8445_v62 = vld [vmem:[%s8896_s19 + $0x128] sm:$0xff]   ;;  %v2092_v7 = vor.u32 %v2091_v22, %v9252_v61  ;;  %v9316_v22 = vld [vmem:[%s8896_s19 + $0x140] sm:$0xff]   ;;  %v2129_v8 = vrot.slane %v2127_v23, 5  ;;  %v2172_v50 = vshrl.u32 %v6659_v31, 16 }
  0xb7   : > { %7591 = vmatprep.subr.bf16.mxu0 %v8440_v19  ;;  %v2153_v55 = vrot.slane %v2151_v49, 5 }
  0xb8   : > { %v9328_v47 = vrot.slane %v2092_v7, 4 }
  0xba   : > { %7592 = vmatpush3.bf16.msra.mxu0 %v8440_v19  ;;  %v9255_v19 = vrot.slane %v2095_v27, 5  ;;  %v9279_v27 = vld [vmem:[%s8885_s14 + $0x64] sm:$0xf] }
  0xbb   : > { %7593 = vmatprep.subr.bf16.mxu0 %v8442_v53 }
  0xbd   : > { %7574 = vmatmul.mubr.bf16.gmra.mrb[8].mxu0 %v8441_v57  ;;  %v2026_v57 = vsel %vm9243_vm5, %v2021_v59, %v9189_v51  ;;  %v2133_v51 = vshll.u32 %v9259_v32, 16  ;;  %v2137_v59 = vshrl.u32 %v9259_v32, 16 }
  0xbe   : > { %7594 = vmatpush3.bf16.msra.mxu0 %v8442_v53  ;;  %7577 = vmatprep.mubr.bf16.mxu0 %v8443_v5  ;;  %v2109_v53 = vshll.u32 %v9250_v41, 16  ;;  %v2082_v5 = vor.u32 %v2081_v35, %v2078_v60  ;;  %v9290_v11 = vcombine.low %v2016_v39, %v2026_v57  ;;  %v2050_v60 = vsel %vm9243_vm5, %v9230_v40, %v9232_v43  ;;  %v9313_v43 = vld [vmem:[%s8885_s14 + $0x5c] sm:$0x1] }
  0xbf   : > { %7595 = vmatprep.subr.bf16.mxu0 %v8445_v62  ;;  %v2148_v35 = vshrl.u32 %v6656_v16, 16  ;;  %v2157_v39 = vshll.u32 %v9279_v27, 16  ;;  %v2161_v57 = vshrl.u32 %v9279_v27, 16  ;;  %v2119_v40 = vshll.u32 %v9283_v36, 16 }
  0xc0   : > { %v9307_v0 = vrot.slane %v2082_v5, 4  ;;  %v9309_v20 = vrot.slane %v2109_v53, 5  ;;  %v2126_v16 = vrot.slane %v2124_v29, 4  ;;  %v9318_v3 = vrot.slane %v2133_v51, 5  ;;  %v9324_v5 = vld [vmem:[%s8885_s14 + $0x70] sm:$0xf] }
  0xc1   : > { %v2139_v28 = vrot.slane %v2137_v59, 4  ;;  %v2150_v53 = vrot.slane %v2148_v35, 4  ;;  %v9330_v29 = vrot.slane %v2157_v39, 5  ;;  %v2163_v23 = vrot.slane %v2161_v57, 4  ;;  %v9348_v57 = vld [vmem:[%s8885_s14 + $0x74] sm:$0x1] }
  0xc2   : > { %7596 = vmatpush3.bf16.msra.mxu0 %v8445_v62  ;;  %v2102_v62 = vrot.slane %v2100_v44, 4  ;;  %v2115_v44 = vrot.slane %v2113_v33, 4  ;;  %v2175_v33 = vshll.u32 %v6659_v31, 16  ;;  %v9332_v51 = vcombine.low %v2040_v25, %v2050_v60 }
  0xc3   : > { %7597 = vmatprep.subr.bf16.mxu0 %v8446_v56  ;;  %v9337_v35 = vrot.slane %v2119_v40, 5  ;;  %v2130_v49 = vor.u32 %v2129_v8, %v2126_v16  ;;  %v2143_v7 = vshll.u32 %v9313_v43, 16  ;;  %v2140_v39 = vor.u32 %v2139_v28, %v9318_v3 }
  0xc4   : > { %v2106_v46 = vor.u32 %v2105_v21, %v2102_v62  ;;  %v2116_v59 = vor.u32 %v2115_v44, %v9309_v20  ;;  %v2154_v25 = vor.u32 %v2153_v55, %v2150_v53  ;;  %v2167_v60 = vshll.u32 %v9321_v15, 16 }
  0xc5   : > { %7578 = vmatmul.mubr.bf16.gmra.mrb[12].mxu0 %v8444_v13  ;;  %v8448_v13 = vld [vmem:[%s8885_s14 + $0x78] sm:$0xff]   ;;  %v2174_v21 = vrot.slane %v2172_v50, 4  ;;  %v2164_v62 = vor.u32 %v2163_v23, %v9330_v29  ;;  %v2177_v31 = vrot.slane %v2175_v33, 5  ;;  %v2196_v40 = vshrl.u32 %v6662_v12, 16 }
  0xc6   : > { %7581 = vmatprep.mubr.bf16.mxu0 %v8447_v4  ;;  %7598 = vmatpush3.bf16.msra.mxu0 %v8446_v56  ;;  %v2181_v56 = vshll.u32 %v9324_v5, 16  ;;  %v2185_v4 = vshrl.u32 %v9324_v5, 16  ;;  %v2199_v8 = vshll.u32 %v6662_v12, 16  ;;  %v2209_v55 = vshrl.u32 %v9341_v1, 16 }
  0xc7   : > { %7599 = vmatprep.subr.bf16.mxu0 %v8449_v58  ;;  %v2107_v28 = vrot.slane %v2106_v46, 4  ;;  %v2117_v50 = vrot.slane %v2116_v59, 4  ;;  %v2131_v53 = vrot.slane %v2130_v49, 4  ;;  %v2145_v45 = vrot.slane %v2143_v7, 5 }
  0xc8   : > { %v9350_v44 = vrot.slane %v2181_v56, 5  ;;  %v2187_v16 = vrot.slane %v2185_v4, 4  ;;  %v2141_v23 = vrot.slane %v2140_v39, 4  ;;  %v2155_v26 = vrot.slane %v2154_v25, 4 }
  0xc9   : > { %v2169_v33 = vrot.slane %v2167_v60, 5  ;;  %v2191_v12 = vshll.u32 %v9348_v57, 16  ;;  %v2064_v56 = vsel %vm9243_vm5, %v9236_v42, %v9208_v9  ;;  %v2165_v4 = vrot.slane %v2164_v62, 4  ;;  %v9380_v60 = vld [vmem:[%s8885_s14 + $0x80] sm:$0x1] }
  0xca   : > { %7600 = vmatpush3.bf16.msra.mxu0 %v8449_v58  ;;  %v2205_v58 = vshll.u32 %v9341_v1, 16  ;;  %v2198_v1 = vrot.slane %v2196_v40, 4  ;;  %v2201_v46 = vrot.slane %v2199_v8, 5  ;;  %v2178_v59 = vor.u32 %v2177_v31, %v2174_v21  ;;  %v8487_v8 = vld [vmem:[%s8896_s19 + $0x48] sm:$0xff]  }
  0xcb   : > { %7621 = vmatprep.subr.bf16.mxu0 %v9316_v22  ;;  %v2211_v7 = vrot.slane %v2209_v55, 4  ;;  %v2074_v39 = vsel %vm9243_vm5, %v9247_v14, %v9238_v30  ;;  %v2088_v9 = vsel %vm9243_vm5, %v9307_v0, %v9252_v61  ;;  %v2098_v42 = vsel %vm9243_vm5, %v9328_v47, %v9255_v19  ;;  %v6699_v61 = vld [vmem:[%s8885_s14 + $0xc] sm:$0xe]  ;;  %v6701_v55 = vld [vmem:[%s8885_s14 + $0x24] sm:$0xe] }
  0xcc   : > { %v9362_v49 = vrot.slane %v2205_v58, 5  ;;  %v2112_v25 = vsel %vm9243_vm5, %v2107_v28, %v9309_v20  ;;  %v2122_v30 = vsel %vm9243_vm5, %v2117_v50, %v9337_v35  ;;  %v2136_v14 = vsel %vm9243_vm5, %v2131_v53, %v9318_v3  ;;  %v8451_v20 = vld [vmem:[%s8896_s19 + $0x148] sm:$0xff]  }
  0xcd   : > { %7582 = vmatmul.mubr.bf16.gmra.mrb[16].mxu0 %v8448_v13  ;;  %v8486_v13 = vld [vmem:[%s8896_s19 + $0x40] sm:$0xff]   ;;  %v2146_v47 = vsel %vm9243_vm5, %v2141_v23, %v2145_v45  ;;  %v2499_v19 = vrot.slane %v9114_v34, 5  ;;  %v2160_v0 = vsel %vm9243_vm5, %v2155_v26, %v9330_v29  ;;  %v2170_v35 = vsel %vm9243_vm5, %v2165_v4, %v2169_v33  ;;  %v6700_v34 = vld [vmem:[%s8885_s14 + $0x18] sm:$0xe]  ;;  %v8489_v23 = vld [vmem:[%s8896_s19 + $0x50] sm:$0xff]  }
  0xce   : > { %7601 = vmatprep.mubr.bf16.mxu0 %v9288_v52  ;;  %v2188_v52 = vor.u32 %v2187_v16, %v9350_v44  ;;  %7441 = vmatprep.subr.bf16.mxu1 %v8486_v13  ;;  %v2193_v21 = vrot.slane %v2191_v12, 5  ;;  %v2202_v62 = vor.u32 %v2201_v46, %v2198_v1  ;;  %v2179_v31 = vrot.slane %v2178_v59, 4  ;;  %v6702_v4 = vld [vmem:[%s8885_s14 + $0x30] sm:$0xe] }
  0xcf   : > { %7442 = vmatpush3.bf16.msra.mxu1 %v8486_v13  ;;  %v2212_v40 = vor.u32 %v2211_v7, %v9362_v49  ;;  %v2215_v45 = vshll.u32 %v9380_v60, 16  ;;  %v6684_v16 = vcombine.low %v2064_v56, %v2074_v39  ;;  %v6685_v58 = vcombine.low %v2088_v9, %v2098_v42  ;;  %v6703_v7 = vld [vmem:[%s8885_s14 + $0x3c] sm:$0xe]  ;;  %v6704_v42 = vld [vmem:[%s8885_s14 + $0x48] sm:$0xe] }
  0xd0   : > { %v2189_v3 = vrot.slane %v2188_v52, 4  ;;  %v6709_v26 = vrot.slane %v6699_v61, 9  ;;  %v2506_v29 = vrot.slane %v9139_v6, 5  ;;  %v9407_v1 = vcombine.low %v2112_v25, %v2122_v30  ;;  %7443 = vmatprep.subr.bf16.mxu1 %v8487_v8  ;;  %v8453_v25 = vld [vmem:[%s8896_s19 + $0x158] sm:$0xff]   ;;  %v9454_v61 = vld [vmem:[%s8885_s14 + $0x54] sm:$0xe] }
  0xd1   : > { %v2501_v28 = vrot.slane %v2499_v19, 4  ;;  %v2502_v50 = vrot.slane %v9135_v63, 5  ;;  %v2513_v53 = vrot.slane %v9178_v10, 5  ;;  %v9413_v33 = vcombine.low %v2136_v14, %v2146_v47 }
  0xd2   : > { %v9415_v6 = vcombine.low %v2160_v0, %v2170_v35  ;;  %v9417_v12 = vrot.slane %v2202_v62, 4  ;;  %v2194_v63 = vsel %vm9243_vm5, %v2189_v3, %v2193_v21  ;;  %v9424_v10 = vrot.slane %v2212_v40, 4  ;;  %v9463_v35 = vld [vmem:[%s8885_s14 + $0x60] sm:$0xe]  ;;  %v8491_v21 = vld [vmem:[%s8896_s19 + $0x58] sm:$0xff]  }
  0xd3   : > { %v9426_v56 = vrot.slane %v2215_v45, 5  ;;  %7444 = vmatpush3.bf16.msra.mxu1 %v8487_v8  ;;  %v2508_v46 = vrot.slane %v2506_v29, 4  ;;  %v2509_v13 = vrot.slane %v9152_v18, 5  ;;  %v6711_v59 = vrot.slane %v6701_v55, 9  ;;  %v8493_v8 = vld [vmem:[%s8896_s19 + $0x60] sm:$0xff]  }
  0xd4   : > { %v2520_v52 = vrot.slane %v9182_v17, 5  ;;  %7445 = vmatprep.subr.bf16.mxu1 %v8489_v23  ;;  %v9438_v39 = vsel %vm8986_vm2, %v2501_v28, %v2502_v50  ;;  %v2515_v9 = vrot.slane %v2513_v53, 4  ;;  %v2516_v18 = vrot.slane %v9192_v2, 5 }
  0xd5   : > { %7602 = vmatmul.mubr.bf16.vlgmr.msra.gmra.mrb[0].mxu0 %v9290_v11  ;;  %v8452_v11 = vld [vmem:[%s8896_s19 + $0x150] sm:$0xff]   ;;  %v2208_v30 = vsel %vm9243_vm5, %v9417_v12, %v9362_v49  ;;  %v6712_v47 = vrot.slane %v6702_v4, 9  ;;  %v2218_v2 = vsel %vm9243_vm5, %v9424_v10, %v9426_v56  ;;  %v2527_v0 = vrot.slane %v9212_v24, 5  ;;  %v6807_v4 = vld [vmem:[%s8885_s14 + $0x18] sm:$0xf] }
  0xd6   : > { %7622 = vmatpush3.bf16.msra.mxu0 %v9316_v22  ;;  %7605 = vmatprep.mubr.bf16.mxu0 %v9332_v51  ;;  %v6710_v22 = vrot.slane %v6700_v34, 9  ;;  %v2184_v51 = vsel %vm9243_vm5, %v2179_v31, %v9350_v44  ;;  %v9434_v44 = vsel %vm8986_vm2, %v6709_v26, %v2499_v19  ;;  %v2523_v19 = vrot.slane %v9201_v54, 5 }
  0xd7   : > { %7623 = vmatprep.subr.bf16.mxu0 %v8451_v20  ;;  %v9443_v17 = vcombine.low %v2184_v51, %v2194_v63  ;;  %7446 = vmatpush3.bf16.msra.mxu1 %v8489_v23  ;;  %v6735_v62 = vcombine.low %v9434_v44, %v9438_v39  ;;  %v9470_v31 = vsel %vm8986_vm2, %v2508_v46, %v2509_v13  ;;  %v2522_v3 = vrot.slane %v2520_v52, 4  ;;  %v8455_v23 = vld [vmem:[%s8896_s19 + $0x168] sm:$0xff]  }
  0xd8   : > { %v9451_v14 = vsel %vm8986_vm2, %v6710_v22, %v2506_v29  ;;  %v2534_v54 = vrot.slane %v9250_v41, 5  ;;  %v9475_v24 = vsel %vm8986_vm2, %v6711_v59, %v2513_v53  ;;  %v9479_v40 = vsel %vm8986_vm2, %v2515_v9, %v2516_v18  ;;  %v9491_v29 = vld [vmem:[%s8885_s14 + $0x6c] sm:$0xe]  ;;  %7447 = vmatprep.subr.bf16.mxu1 %v8491_v21  ;;  %v9501_v53 = vld [vmem:[%s8885_s14 + $0x78] sm:$0xe]  ;;  %v11114_v18 = vld [vmem:[#allocation39_spill] sm:$0xff] }
  0xd9   : > { %v2530_v45 = vrot.slane %v9216_v37, 5  ;;  %v2541_v34 = vrot.slane %v9259_v32, 5  ;;  %v9487_v41 = vsel %vm8986_vm2, %v6712_v47, %v2520_v52  ;;  %v2548_v26 = vrot.slane %v9279_v27, 5  ;;  %v6808_v52 = vld [vmem:[%s8885_s14 + $0x1c] sm:$0xf] }
  0xda   : > { %7624 = vmatpush3.bf16.msra.mxu0 %v8451_v20  ;;  %v6713_v20 = vrot.slane %v6703_v7, 9  ;;  %v2555_v55 = vrot.slane %v9324_v5, 5  ;;  %v2529_v32 = vrot.slane %v2527_v0, 4  ;;  %v2537_v28 = vrot.slane %v9283_v36, 5 }
  0xdb   : > { %7625 = vmatprep.subr.bf16.mxu0 %v8452_v11  ;;  %v6715_v50 = vrot.slane %v9454_v61, 9  ;;  %7448 = vmatpush3.bf16.msra.mxu1 %v8491_v21  ;;  %v2536_v22 = vrot.slane %v2534_v54, 4  ;;  %v2544_v51 = vrot.slane %v9313_v43, 5  ;;  %v6716_v63 = vrot.slane %v9463_v35, 9  ;;  %v8456_v61 = vld [vmem:[%s8896_s19 + $0x170] sm:$0xff]   ;;  %v8495_v21 = vld [vmem:[%s8896_s19 + $0x68] sm:$0xff]  }
  0xdc   : > { %v9496_v37 = vsel %vm8986_vm2, %v6713_v20, %v2527_v0  ;;  %7449 = vmatprep.subr.bf16.mxu1 %v8493_v8  ;;  %v2543_v36 = vrot.slane %v2541_v34, 4  ;;  %v2551_v46 = vrot.slane %v9321_v15, 5  ;;  %v6717_v13 = vrot.slane %v9491_v29, 9 }
  0xdd   : > { %7606 = vmatmul.mubr.bf16.gmra.mrb[4].mxu0 %v6684_v16  ;;  %v8454_v16 = vld [vmem:[%s8896_s19 + $0x160] sm:$0xff]   ;;  %v2558_v59 = vrot.slane %v9348_v57, 5  ;;  %v2550_v7 = vrot.slane %v2548_v26, 4  ;;  %v2557_v43 = vrot.slane %v2555_v55, 4  ;;  %v6718_v9 = vrot.slane %v9501_v53, 9 }
  0xde   : > { %7626 = vmatpush3.bf16.msra.mxu0 %v8452_v11  ;;  %7609 = vmatprep.mubr.bf16.mxu0 %v6685_v58  ;;  %v6714_v58 = vrot.slane %v6704_v42, 9  ;;  %v9506_v11 = vsel %vm8986_vm2, %v2522_v3, %v2523_v19  ;;  %v2562_v42 = vrot.slane %v11114_v18, 5  ;;  %v9523_v15 = vsel %vm8986_vm2, %v2529_v32, %v2530_v45 }
  0xdf   : > { %7627 = vmatprep.subr.bf16.mxu0 %v8453_v25  ;;  %v3118_v47 = vshll.u32 %v6807_v4, 16  ;;  %7450 = vmatpush3.bf16.msra.mxu1 %v8493_v8  ;;  %v9533_v19 = vsel %vm8986_vm2, %v2536_v22, %v2537_v28  ;;  %v2565_v20 = vrot.slane %v9380_v60, 5  ;;  %v3124_v0 = vshll.u32 %v6808_v52, 16  ;;  %v6809_v8 = vld [vmem:[%s8885_s14 + $0x20] sm:$0x1] }
  0xe0   : > { %v9527_v57 = vsel %vm8986_vm2, %v6714_v58, %v2534_v54  ;;  %v3128_v35 = vshrl.u32 %v6808_v52, 16  ;;  %v6736_v60 = vcombine.low %v9451_v14, %v9470_v31  ;;  %v6737_v3 = vcombine.low %v9475_v24, %v9479_v40  ;;  %v6810_v54 = vld [vmem:[%s8885_s14 + $0x24] sm:$0xf]  ;;  %7451 = vmatprep.subr.bf16.mxu1 %v8495_v21  ;;  %v8578_v14 = vld [vmem:[%s8885_s14 + $0x28] sm:$0xf] }
  0xe1   : > { %v6738_v10 = vcombine.low %v9487_v41, %v9506_v11  ;;  %v6739_v56 = vcombine.low %v9496_v37, %v9523_v15  ;;  %v9562_v49 = vsel %vm8986_vm2, %v6715_v50, %v2541_v34  ;;  %v2564_v12 = vrot.slane %v2562_v42, 4  ;;  %v6812_v34 = vld [vmem:[%s8885_s14 + $0x2c] sm:$0x1]  ;;  %v9743_v11 = vld [vmem:[%s8885_s14 + $0x58] sm:$0xf] }
  0xe2   : > { %7628 = vmatpush3.bf16.msra.mxu0 %v8453_v25  ;;  %v3115_v25 = vshrl.u32 %v6807_v4, 16  ;;  %v9569_v45 = vsel %vm8986_vm2, %v2543_v36, %v2544_v51  ;;  %v3120_v58 = vrot.slane %v3118_v47, 5  ;;  %v9572_v29 = vrot.slane %v3124_v0, 5  ;;  %v8457_v36 = vld [vmem:[%s8896_s19 + $0x178] sm:$0xff]   ;;  %v8575_v47 = vld [vmem:[%s8885_s14 + $0x14] sm:$0x1] }
  0xe3   : > { %7629 = vmatprep.subr.bf16.mxu0 %v8454_v16  ;;  %7452 = vmatpush3.bf16.msra.mxu1 %v8495_v21  ;;  %v3130_v32 = vrot.slane %v3128_v35, 4  ;;  %v3139_v28 = vshrl.u32 %v6810_v54, 16  ;;  %v3142_v50 = vshll.u32 %v6810_v54, 16  ;;  %v9579_v53 = vsel %vm8986_vm2, %v6716_v63, %v2548_v26  ;;  %v6813_v63 = vld [vmem:[%s8885_s14 + $0x30] sm:$0xf] }
  0xe4   : > { %v9583_v22 = vsel %vm8986_vm2, %v2550_v7, %v2551_v46  ;;  %v9592_v27 = vsel %vm8986_vm2, %v6717_v13, %v2555_v55  ;;  %v9596_v26 = vsel %vm8986_vm2, %v2557_v43, %v2558_v59  ;;  %v9601_v46 = vsel %vm8986_vm2, %v6718_v9, %v2562_v42  ;;  %v8498_v55 = vld [vmem:[%s8896_s19 + $0x78] sm:$0xff]   ;;  %v6814_v9 = vld [vmem:[%s8885_s14 + $0x34] sm:$0xf]  ;;  %v9615_v42 = vld [vmem:[%s8896_s19 + $0x180] sm:$0xff]  }
  0xe5   : > { %7610 = vmatmul.mubr.bf16.gmra.mrb[8].mxu0 %v9407_v1  ;;  %v9548_v1 = vcombine.low %v2208_v30, %v2218_v2  ;;  %v8496_v30 = vld [vmem:[%s8896_s19 + $0x70] sm:$0xff]   ;;  %v9605_v7 = vsel %vm8986_vm2, %v2564_v12, %v2565_v20  ;;  %v3158_v18 = vshll.u32 %v6812_v34, 16  ;;  %v3131_v59 = vor.u32 %v3130_v32, %v9572_v29 }
  0xe6   : > { %7630 = vmatpush3.bf16.msra.mxu0 %v8454_v16  ;;  %7613 = vmatprep.mubr.bf16.mxu0 %v9413_v33  ;;  %v6811_v33 = vld [vmem:[%s8885_s14 + $0x28] sm:$0xf]  ;;  %v3117_v16 = vrot.slane %v3115_v25, 4  ;;  %v3141_v43 = vrot.slane %v3139_v28, 4  ;;  %v3144_v25 = vrot.slane %v3142_v50, 5  ;;  %v3163_v0 = vshrl.u32 %v6813_v63, 16 }
  0xe7   : > { %7631 = vmatprep.subr.bf16.mxu0 %v8455_v23  ;;  %7453 = vmatprep.subr.bf16.mxu1 %v8496_v30  ;;  %v3148_v51 = vshll.u32 %v6811_v33, 16  ;;  %v3152_v4 = vshrl.u32 %v6811_v33, 16  ;;  %v3166_v54 = vshll.u32 %v6813_v63, 16  ;;  %v9631_v34 = vrot.slane %v3131_v59, 4 }
  0xe8   : > { %v3121_v5 = vor.u32 %v3120_v58, %v3117_v16  ;;  %7454 = vmatpush3.bf16.msra.mxu1 %v8496_v30  ;;  %v6815_v30 = vld [vmem:[%s8885_s14 + $0x38] sm:$0x1]  ;;  %v3176_v16 = vshrl.u32 %v6814_v9, 16  ;;  %v8572_v58 = vld [vmem:[%s8885_s14 + $0x4] sm:$0xf]  ;;  %v3145_v28 = vor.u32 %v3144_v25, %v3141_v43  ;;  %v9633_v50 = vrot.slane %v3158_v18, 5 }
  0xe9   : > { %v9619_v20 = vrot.slane %v3148_v51, 5  ;;  %7455 = vmatprep.subr.bf16.mxu1 %v8498_v55  ;;  %v660_v32 = vshll.u32 %v8572_v58, 16  ;;  %v6816_v51 = vld [vmem:[%s8885_s14 + $0x3c] sm:$0xf]  ;;  %v3165_v63 = vrot.slane %v3163_v0, 4  ;;  %v3182_v59 = vshll.u32 %v6815_v30, 16 }
  0xea   : > { %7632 = vmatpush3.bf16.msra.mxu0 %v8455_v23  ;;  %v3134_v23 = vshll.u32 %v6809_v8, 16  ;;  %v9627_v12 = vrot.slane %v3121_v5, 4  ;;  %v3172_v8 = vshll.u32 %v6814_v9, 16  ;;  %v8573_v58 = vld [vmem:[%s8885_s14 + $0x8] sm:$0x1]  ;;  %v11119_v18 = vld [vmem:[#allocation21_spill] sm:$0xff] }
  0xeb   : > { %7633 = vmatprep.subr.bf16.mxu0 %v8456_v61  ;;  %v662_v5 = vrot.slane %v660_v32, 5  ;;  %v670_v43 = vshll.u32 %v8573_v58, 16  ;;  %v11120_v25 = vld [vmem:[#allocation22_spill] sm:$0xff]  ;;  %v6817_v32 = vld [vmem:[%s8885_s14 + $0x40] sm:$0xf]  ;;  %v732_v31 = vshll.u32 %v8578_v14, 16 }
  0xec   : > { %v9623_v21 = vrot.slane %v3134_v23, 5  ;;  %7456 = vmatpush3.bf16.msra.mxu1 %v8498_v55  ;;  %v3168_v55 = vrot.slane %v3166_v54, 5  ;;  %v681_v35 = vor.u32 %v11120_v25, %v11119_v18  ;;  %v11121_v18 = vld [vmem:[#allocation10_spill] sm:$0xff]  ;;  %v3200_v44 = vshrl.u32 %v6817_v32, 16 }
  0xed   : > { %7614 = vmatmul.mubr.bf16.gmra.mrb[12].mxu0 %v9415_v6  ;;  %v3154_v6 = vrot.slane %v3152_v4, 4  ;;  %v672_v30 = vrot.slane %v670_v43, 5  ;;  %v11122_v25 = vshrl.u32 %v11121_v18, 16  ;;  %v8576_v18 = vld [vmem:[%s8885_s14 + $0x1c] sm:$0xf]  ;;  %v734_v40 = vrot.slane %v732_v31, 5 }
  0xee   : > { %7617 = vmatprep.mubr.bf16.mxu0 %v9443_v17  ;;  %7634 = vmatpush3.bf16.msra.mxu0 %v8456_v61  ;;  %v11115_v17 = vld [vmem:[#allocation19_spill] sm:$0xff]  ;;  %v11116_v61 = vld [vmem:[#allocation20_spill] sm:$0xff]  ;;  %v3169_v43 = vor.u32 %v3168_v55, %v3165_v63  ;;  %v9687_v2 = vrot.slane %v3200_v44, 4  ;;  %v11127_v44 = vld [vmem:[#allocation25_spill] sm:$0xff] }
  0xef   : > { %7635 = vmatprep.subr.bf16.mxu0 %v8457_v36  ;;  %v657_v33 = vor.u32 %v11116_v61, %v11115_v17  ;;  %v3155_v23 = vor.u32 %v3154_v6, %v9619_v20  ;;  %v11117_v17 = vld [vmem:[#allocation9_spill] sm:$0xff]  ;;  %v3187_v6 = vshrl.u32 %v6816_v51, 16  ;;  %v6819_v63 = vld [vmem:[%s8885_s14 + $0x48] sm:$0xf] }
  0xf0   : > { %v11118_v61 = vshrl.u32 %v11117_v17, 16  ;;  %v3190_v17 = vshll.u32 %v6816_v51, 16  ;;  %v9658_v51 = vrot.slane %v3145_v28, 4  ;;  %v11132_v31 = vld [vmem:[#allocation28_spill] sm:$0xff] }
  0xf1   : > { %v658_v4 = vrot.slane %v657_v33, 4  ;;  %v9645_v33 = vrot.slane %v3176_v16, 4  ;;  %v682_v16 = vrot.slane %v681_v35, 4  ;;  %v9660_v13 = vrot.slane %v3155_v23, 4 }
  0xf2   : > { %7636 = vmatpush3.bf16.msra.mxu0 %v8457_v36  ;;  %v666_v9 = vrot.slane %v11118_v61, 4  ;;  %v9643_v36 = vrot.slane %v3172_v8, 5  ;;  %v8574_v61 = vld [vmem:[%s8885_s14 + $0x10] sm:$0xf]  ;;  %v9667_v35 = vrot.slane %v3187_v6, 4 }
  0xf3   : > { %7657 = vmatprep.subr.bf16.mxu0 %v9615_v42  ;;  %v663_v54 = vsel %vm9243_vm5, %v658_v4, %v662_v5  ;;  %v684_v58 = vshll.u32 %v8574_v61, 16  ;;  %v9662_v4 = vrot.slane %v3182_v59, 5  ;;  %v3196_v61 = vshll.u32 %v6817_v32, 16  ;;  %v11123_v32 = vld [vmem:[#allocation23_spill] sm:$0xff] }
  0xf4   : > { %v667_v0 = vor.u32 %v666_v9, %v662_v5  ;;  %v690_v9 = vrot.slane %v11122_v25, 4  ;;  %v3179_v23 = vor.u32 %v9645_v33, %v9643_v36  ;;  %v9671_v59 = vrot.slane %v3190_v17, 5  ;;  %v11125_v25 = vld [vmem:[#allocation11_spill] sm:$0xff] }
  0xf5   : > { %7618 = vmatmul.mubr.bf16.gmra.mrb[16].mxu0 %v9548_v1  ;;  %v694_v1 = vshll.u32 %v8575_v47, 16  ;;  %v686_v5 = vrot.slane %v684_v58, 5  ;;  %v11124_v58 = vld [vmem:[#allocation24_spill] sm:$0xff]  ;;  %v9683_v17 = vrot.slane %v3169_v43, 4  ;;  %v9685_v52 = vrot.slane %v3196_v61, 5 }
  0xf6   : > { %7637 = vmatprep.mubr.bf16.mxu0 %v6735_v62  ;;  %v668_v8 = vrot.slane %v667_v0, 4  ;;  %v6818_v62 = vld [vmem:[%s8885_s14 + $0x44] sm:$0x1]  ;;  %v3214_v43 = vshll.u32 %v6819_v63, 16 }
  0xf7   : > { %v691_v28 = vor.u32 %v690_v9, %v686_v5  ;;  %v696_v0 = vrot.slane %v694_v1, 5  ;;  %v687_v55 = vsel %vm9243_vm5, %v682_v16, %v686_v5  ;;  %v11126_v9 = vshrl.u32 %v11125_v25, 16  ;;  %v6820_v5 = vld [vmem:[%s8885_s14 + $0x4c] sm:$0xf] }
  0xf8   : > { %v673_v39 = vsel %vm9243_vm5, %v668_v8, %v672_v30  ;;  %v705_v30 = vor.u32 %v11124_v58, %v11123_v32  ;;  %v8459_v8 = vld [vmem:[%s8896_s19 + $0x188] sm:$0xff]   ;;  %v3206_v16 = vshll.u32 %v6818_v62, 16  ;;  %v11128_v62 = vld [vmem:[#allocation26_spill] sm:$0xff] }
  0xf9   : > { %v6501_v47 = vcombine.low %v663_v54, %v673_v39  ;;  %v692_v6 = vrot.slane %v691_v28, 4  ;;  %v708_v54 = vshll.u32 %v8576_v18, 16  ;;  %v714_v1 = vrot.slane %v11126_v9, 4  ;;  %v8577_v39 = vld [vmem:[%s8885_s14 + $0x20] sm:$0x1] }
  0xfa   : > { %v718_v33 = vshll.u32 %v8577_v39, 16  ;;  %v706_v32 = vrot.slane %v705_v30, 4  ;;  %v729_v18 = vor.u32 %v11128_v62, %v11127_v44  ;;  %v3224_v9 = vshrl.u32 %v6820_v5, 16 }
  0xfb   : > { %7457 = vmatprep.mubr.bf16.mxu1 %v6501_v47  ;;  %v3211_v47 = vshrl.u32 %v6819_v63, 16  ;;  %v697_v28 = vsel %vm9243_vm5, %v692_v6, %v696_v0  ;;  %v710_v58 = vrot.slane %v708_v54, 5  ;;  %v3220_v0 = vshll.u32 %v6820_v5, 16  ;;  %v11129_v54 = vld [vmem:[#allocation12_spill] sm:$0xff] }
  0xfc   : > { %v6502_v61 = vcombine.low %v687_v55, %v697_v28  ;;  %v720_v6 = vrot.slane %v718_v33, 5  ;;  %v730_v24 = vrot.slane %v729_v18, 4  ;;  %v9706_v55 = vrot.slane %v3179_v23, 4  ;;  %v6821_v28 = vld [vmem:[%s8885_s14 + $0x50] sm:$0x1]  ;;  %v8461_v18 = vld [vmem:[%s8896_s19 + $0x198] sm:$0xff]  }
  0xfd   : > { %7638 = vmatmul.mubr.bf16.vlgmr.msra.gmra.mrb[0].mxu0 %v6736_v60  ;;  %v8460_v60 = vld [vmem:[%s8896_s19 + $0x190] sm:$0xff]   ;;  %v715_v30 = vor.u32 %v714_v1, %v710_v58  ;;  %v3193_v39 = vor.u32 %v9671_v59, %v9667_v35  ;;  %v711_v1 = vsel %vm9243_vm5, %v706_v32, %v710_v58  ;;  %v9713_v44 = vrot.slane %v3211_v47, 4 }
  0xfe   : > { %7658 = vmatpush3.bf16.msra.mxu0 %v9615_v42  ;;  %7641 = vmatprep.mubr.bf16.mxu0 %v6737_v3  ;;  %v11130_v42 = vshrl.u32 %v11129_v54, 16  ;;  %v8579_v3 = vld [vmem:[%s8885_s14 + $0x2c] sm:$0x1]  ;;  %v9715_v5 = vrot.slane %v3214_v43, 5  ;;  %v3203_v23 = vor.u32 %v9687_v2, %v9685_v52  ;;  %v9720_v14 = vrot.slane %v3206_v16, 5  ;;  %v11131_v16 = vld [vmem:[#allocation27_spill] sm:$0xff] }
  0xff   : > { %7659 = vmatprep.subr.bf16.mxu0 %v8459_v8  ;;  %7458 = vmatmul.mubr.bf16.vlgmr.msra.gmra.mrb[0].mxu1 %v6502_v61  ;;  %v742_v63 = vshll.u32 %v8579_v3, 16  ;;  %v716_v33 = vrot.slane %v715_v30, 4  ;;  %v9722_v35 = vrot.slane %v3220_v0, 5  ;;  %v6822_v59 = vld [vmem:[%s8885_s14 + $0x54] sm:$0xf]  ;;  %v3226_v47 = vrot.slane %v3224_v9, 4 }
 0x100   : > { %v738_v25 = vrot.slane %v11130_v42, 4  ;;  %v735_v58 = vsel %vm9243_vm5, %v730_v24, %v734_v40  ;;  %v3230_v2 = vshll.u32 %v6821_v28, 16  ;;  %v753_v0 = vor.u32 %v11132_v31, %v11131_v16  ;;  %v8580_v30 = vld [vmem:[%s8885_s14 + $0x34] sm:$0xf]  ;;  %v8581_v24 = vld [vmem:[%s8885_s14 + $0x38] sm:$0x1] }
 0x101   : > { %v744_v62 = vrot.slane %v742_v63, 5  ;;  %v756_v54 = vshll.u32 %v8580_v30, 16  ;;  %v11133_v42 = vld [vmem:[#allocation13_spill] sm:$0xff]  ;;  %v3217_v41 = vor.u32 %v9715_v5, %v9713_v44  ;;  %v8462_v3 = vld [vmem:[%s8896_s19 + $0x1a0] sm:$0xff]   ;;  %v9757_v31 = vrot.slane %v3193_v39, 4 }
 0x102   : > { %7660 = vmatpush3.bf16.msra.mxu0 %v8459_v8  ;;  %v739_v61 = vor.u32 %v738_v25, %v734_v40  ;;  %v721_v8 = vsel %vm9243_vm5, %v716_v33, %v720_v6  ;;  %v11134_v6 = vshrl.u32 %v11133_v42, 16  ;;  %v766_v40 = vshll.u32 %v8581_v24, 16  ;;  %v11136_v33 = vld [vmem:[#allocation30_spill] sm:$0xff]  ;;  %v8582_v44 = vld [vmem:[%s8885_s14 + $0x40] sm:$0xf] }
 0x103   : > { %7661 = vmatprep.subr.bf16.mxu0 %v8460_v60  ;;  %v6503_v32 = vcombine.low %v711_v1, %v721_v8  ;;  %v754_v37 = vrot.slane %v753_v0, 4  ;;  %v758_v15 = vrot.slane %v756_v54, 5  ;;  %v11135_v1 = vld [vmem:[#allocation29_spill] sm:$0xff]  ;;  %v780_v5 = vshll.u32 %v8582_v44, 16  ;;  %v8463_v54 = vld [vmem:[%s8896_s19 + $0x1a8] sm:$0xff]  }
 0x104   : > { %v740_v43 = vrot.slane %v739_v61, 4  ;;  %v762_v25 = vrot.slane %v11134_v6, 4  ;;  %v777_v28 = vor.u32 %v11136_v33, %v11135_v1  ;;  %v11137_v61 = vld [vmem:[#allocation14_spill] sm:$0xff]  ;;  %v3248_v39 = vshrl.u32 %v9743_v11, 16  ;;  %v11142_v33 = vld [vmem:[#allocation32_spill] sm:$0xff] }
 0x105   : > { %7642 = vmatmul.mubr.bf16.gmra.mrb[4].mxu0 %v6738_v10  ;;  %v3235_v10 = vshrl.u32 %v6822_v59, 16  ;;  %7461 = vmatprep.mubr.bf16.mxu1 %v6503_v32  ;;  %v8583_v32 = vld [vmem:[%s8885_s14 + $0x44] sm:$0x1]  ;;  %v782_v30 = vrot.slane %v780_v5, 5  ;;  %v6825_v5 = vld [vmem:[%s8885_s14 + $0x60] sm:$0xf] }
 0x106   : > { %7662 = vmatpush3.bf16.msra.mxu0 %v8460_v60  ;;  %7645 = vmatprep.mubr.bf16.mxu0 %v6739_v56  ;;  %v745_v9 = vsel %vm9243_vm5, %v740_v43, %v744_v62  ;;  %v3238_v60 = vshll.u32 %v6822_v59, 16  ;;  %v3227_v56 = vor.u32 %v3226_v47, %v9722_v35  ;;  %v11138_v62 = vshrl.u32 %v11137_v61, 16  ;;  %v8584_v61 = vld [vmem:[%s8885_s14 + $0x4c] sm:$0xf] }
 0x107   : > { %7663 = vmatprep.subr.bf16.mxu0 %v8461_v18  ;;  %v6504_v63 = vcombine.low %v735_v58, %v745_v9  ;;  %v3244_v43 = vshll.u32 %v9743_v11, 16  ;;  %v763_v16 = vor.u32 %v762_v25, %v758_v15  ;;  %v768_v59 = vrot.slane %v766_v40, 5  ;;  %v9767_v40 = vld [vmem:[%s8885_s14 + $0x5c] sm:$0x1] }
 0x108   : > { %v786_v8 = vrot.slane %v11138_v62, 4  ;;  %v790_v58 = vshll.u32 %v8583_v32, 16  ;;  %v9759_v47 = vrot.slane %v3203_v23, 4  ;;  %v778_v0 = vrot.slane %v777_v28, 4  ;;  %v8464_v28 = vld [vmem:[%s8896_s19 + $0x1b0] sm:$0xff]  }
 0x109   : > { %7462 = vmatmul.mubr.bf16.gmra.mrb[4].mxu1 %v6504_v63  ;;  %v3237_v42 = vrot.slane %v3235_v10, 4  ;;  %v3240_v6 = vrot.slane %v3238_v60, 5  ;;  %v759_v9 = vsel %vm9243_vm5, %v754_v37, %v758_v15  ;;  %v764_v24 = vrot.slane %v763_v16, 4  ;;  %v8585_v32 = vld [vmem:[%s8885_s14 + $0x50] sm:$0x1] }
 0x10a   : > { %7664 = vmatpush3.bf16.msra.mxu0 %v8461_v18  ;;  %v9764_v25 = vrot.slane %v3230_v2, 5  ;;  %v787_v18 = vor.u32 %v786_v8, %v782_v30  ;;  %v792_v23 = vrot.slane %v790_v58, 5  ;;  %v11139_v63 = vcombine.low %v9527_v57, %v9533_v19 }
 0x10b   : > { %7665 = vmatprep.subr.bf16.mxu0 %v8462_v3  ;;  %v9773_v10 = vrot.slane %v3217_v41, 4  ;;  %v9775_v60 = vrot.slane %v3227_v56, 4  ;;  %v9777_v37 = vrot.slane %v3244_v43, 5  ;;  %v769_v2 = vsel %vm9243_vm5, %v764_v24, %v768_v59  ;;  %v11141_v41 = vld [vmem:[#allocation31_spill] sm:$0xff] }
 0x10c   : > { %v11140_v15 = vcombine.low %v9562_v49, %v9569_v45  ;;  %v6505_v1 = vcombine.low %v759_v9, %v769_v2  ;;  %v783_v57 = vsel %vm9243_vm5, %v778_v0, %v782_v30  ;;  %v788_v19 = vrot.slane %v787_v18, 4  ;;  %v11143_v45 = vld [vmem:[#allocation15_spill] sm:$0xff]  ;;  %v11146_v9 = vld [vmem:[#allocation34_spill] sm:$0xff] }
 0x10d   : > { %7646 = vmatmul.mubr.bf16.gmra.mrb[8].mxu0 %v11139_v63  ;;  %v801_v56 = vor.u32 %v11142_v33, %v11141_v41  ;;  %v3241_v44 = vor.u32 %v3240_v6, %v3237_v42  ;;  %v804_v49 = vshll.u32 %v8584_v61, 16  ;;  %v11144_v62 = vshrl.u32 %v11143_v45, 16  ;;  %v9800_v0 = vld [vmem:[%s8885_s14 + $0x64] sm:$0xf]  ;;  %v11145_v6 = vld [vmem:[#allocation33_spill] sm:$0xff]  ;;  %v8465_v33 = vld [vmem:[%s8896_s19 + $0x1b8] sm:$0xff]  }
 0x10e   : > { %7666 = vmatpush3.bf16.msra.mxu0 %v8462_v3  ;;  %7649 = vmatprep.mubr.bf16.mxu0 %v11140_v15  ;;  %v3254_v3 = vshll.u32 %v9767_v40, 16  ;;  %v9794_v43 = vrot.slane %v3248_v39, 4  ;;  %v793_v16 = vsel %vm9243_vm5, %v788_v19, %v792_v23  ;;  %v814_v58 = vshll.u32 %v8585_v32, 16  ;;  %v8586_v18 = vld [vmem:[%s8885_s14 + $0x58] sm:$0xf]  ;;  %v11147_v15 = vld [vmem:[#allocation16_spill] sm:$0xff] }
 0x10f   : > { %7667 = vmatprep.subr.bf16.mxu0 %v8463_v54  ;;  %v810_v8 = vrot.slane %v11144_v62, 4  ;;  %7465 = vmatprep.mubr.bf16.mxu1 %v6505_v1  ;;  %v802_v59 = vrot.slane %v801_v56, 4  ;;  %v6506_v30 = vcombine.low %v783_v57, %v793_v16  ;;  %v806_v42 = vrot.slane %v804_v49, 5  ;;  %v8587_v19 = vld [vmem:[%s8885_s14 + $0x5c] sm:$0x1] }
 0x110   : > { %v825_v24 = vor.u32 %v11146_v9, %v11145_v6  ;;  %v828_v39 = vshll.u32 %v8586_v18, 16  ;;  %v3259_v63 = vshrl.u32 %v6825_v5, 16  ;;  %v3262_v2 = vshll.u32 %v6825_v5, 16  ;;  %v9810_v56 = vld [vmem:[%s8885_s14 + $0x68] sm:$0x1]  ;;  %v9836_v18 = vld [vmem:[%s8896_s19 + $0x1c0] sm:$0xff]  }
 0x111   : > { %v11148_v1 = vshrl.u32 %v11147_v15, 16  ;;  %v838_v41 = vshll.u32 %v8587_v19, 16  ;;  %7466 = vmatmul.mubr.bf16.gmra.mrb[8].mxu1 %v6506_v30  ;;  %v811_v57 = vor.u32 %v810_v8, %v806_v42  ;;  %v816_v61 = vrot.slane %v814_v58, 5  ;;  %v6828_v9 = vld [vmem:[%s8885_s14 + $0x6c] sm:$0xf] }
 0x112   : > { %7668 = vmatpush3.bf16.msra.mxu0 %v8463_v54  ;;  %v826_v49 = vrot.slane %v825_v24, 4  ;;  %v830_v45 = vrot.slane %v828_v39, 5  ;;  %v9812_v62 = vrot.slane %v3241_v44, 4  ;;  %v9814_v54 = vrot.slane %v3254_v3, 5  ;;  %v9845_v15 = vld [vmem:[%s8885_s14 + $0x70] sm:$0xf] }
 0x113   : > { %v834_v23 = vrot.slane %v11148_v1, 4  ;;  %7669 = vmatprep.subr.bf16.mxu0 %v8464_v28  ;;  %v3268_v5 = vshll.u32 %v9800_v0, 16  ;;  %v3272_v16 = vshrl.u32 %v9800_v0, 16  ;;  %v11149_v32 = vcombine.low %v9579_v53, %v9583_v22 }
 0x114   : > { %v807_v8 = vsel %vm9243_vm5, %v802_v59, %v806_v42  ;;  %v812_v58 = vrot.slane %v811_v57, 4  ;;  %v840_v6 = vrot.slane %v838_v41, 5  ;;  %v11150_v44 = vcombine.low %v9592_v27, %v9596_v26  ;;  %v11151_v59 = vld [vmem:[#allocation35_spill] sm:$0xff]  ;;  %v11152_v42 = vld [vmem:[#allocation36_spill] sm:$0xff] }
 0x115   : > { %7650 = vmatmul.mubr.bf16.gmra.mrb[12].mxu0 %v11149_v32  ;;  %v835_v30 = vor.u32 %v834_v23, %v830_v45  ;;  %v3251_v3 = vor.u32 %v9794_v43, %v9777_v37  ;;  %v3261_v53 = vrot.slane %v3259_v63, 4  ;;  %v3278_v22 = vshll.u32 %v9810_v56, 16  ;;  %v8588_v23 = vld [vmem:[%s8885_s14 + $0x64] sm:$0xf] }
 0x116   : > { %7653 = vmatprep.mubr.bf16.mxu0 %v11150_v44  ;;  %7670 = vmatpush3.bf16.msra.mxu0 %v8464_v28  ;;  %v849_v24 = vor.u32 %v11152_v42, %v11151_v59  ;;  %v3264_v39 = vrot.slane %v3262_v2, 5  ;;  %v817_v27 = vsel %vm9243_vm5, %v812_v58, %v816_v61  ;;  %v831_v26 = vsel %vm9243_vm5, %v826_v49, %v830_v45  ;;  %v11153_v61 = vld [vmem:[#allocation17_spill] sm:$0xff]  ;;  %v8466_v49 = vld [vmem:[%s8885_s14 + $0x18] sm:$0xff]  }
 0x117   : > { %7671 = vmatprep.subr.bf16.mxu0 %v8465_v33  ;;  %v836_v28 = vrot.slane %v835_v30, 4  ;;  %v9842_v43 = vrot.slane %v3268_v5, 5  ;;  %v3274_v63 = vrot.slane %v3272_v16, 4  ;;  %v6507_v1 = vcombine.low %v807_v8, %v817_v27  ;;  %v8589_v30 = vld [vmem:[%s8885_s14 + $0x68] sm:$0x1]  ;;  %v11155_v42 = vld [vmem:[#allocation37_spill] sm:$0xff] }
 0x118   : > { %v852_v19 = vshll.u32 %v8588_v23, 16  ;;  %v3283_v41 = vshrl.u32 %v6828_v9, 16  ;;  %v850_v57 = vrot.slane %v849_v24, 4  ;;  %v11154_v32 = vshrl.u32 %v11153_v61, 16  ;;  %v11156_v24 = vld [vmem:[#allocation38_spill] sm:$0xff] }
 0x119   : > { %v841_v2 = vsel %vm9243_vm5, %v836_v28, %v840_v6  ;;  %v3286_v45 = vshll.u32 %v6828_v9, 16  ;;  %7469 = vmatprep.mubr.bf16.mxu1 %v6507_v1  ;;  %v862_v8 = vshll.u32 %v8589_v30, 16  ;;  %v3265_v44 = vor.u32 %v3264_v39, %v3261_v53  ;;  %v8590_v28 = vld [vmem:[%s8885_s14 + $0x70] sm:$0xf] }
 0x11a   : > { %v858_v58 = vrot.slane %v11154_v32, 4  ;;  %7672 = vmatpush3.bf16.msra.mxu0 %v8465_v33  ;;  %v6508_v5 = vcombine.low %v831_v26, %v841_v2  ;;  %v854_v16 = vrot.slane %v852_v19, 5  ;;  %v3292_v6 = vshll.u32 %v9845_v15, 16  ;;  %v11158_v2 = vld [vmem:[#allocation18_spill] sm:$0xff] }
 0x11b   : > { %7693 = vmatprep.subr.bf16.mxu0 %v9836_v18  ;;  %v3296_v59 = vshrl.u32 %v9845_v15, 16  ;;  %v873_v33 = vor.u32 %v11156_v24, %v11155_v42  ;;  %v3275_v9 = vor.u32 %v3274_v63, %v9842_v43  ;;  %v864_v26 = vrot.slane %v862_v8, 5  ;;  %v9875_v32 = vld [vmem:[%s8885_s14 + $0x78] sm:$0xf]  ;;  %v9891_v42 = vld [vmem:[%s8885_s14 + $0x7c] sm:$0xf] }
 0x11c   : > { %7470 = vmatmul.mubr.bf16.gmra.mrb[12].mxu1 %v6508_v5  ;;  %v859_v27 = vor.u32 %v858_v58, %v854_v16  ;;  %v876_v1 = vshll.u32 %v8590_v28, 16  ;;  %v11157_v53 = vcombine.low %v9601_v46, %v9605_v7  ;;  %v9865_v39 = vrot.slane %v3251_v3, 4  ;;  %v8591_v3 = vld [vmem:[%s8885_s14 + $0x74] sm:$0x1] }
 0x11d   : > { %v9867_v23 = vrot.slane %v3278_v22, 5  ;;  %v855_v19 = vsel %vm9243_vm5, %v850_v57, %v854_v16  ;;  %v11159_v61 = vshrl.u32 %v11158_v2, 16  ;;  %v874_v46 = vrot.slane %v873_v33, 4  ;;  %v8470_v28 = vld [vmem:[%s8885_s14 + $0x30] sm:$0xff]  }
 0x11e   : > { %7654 = vmatmul.mubr.bf16.gmra.mrb[16].mxu0 %v11157_v53  ;;  %v860_v58 = vrot.slane %v859_v27, 4  ;;  %v878_v7 = vrot.slane %v876_v1, 5  ;;  %v886_v22 = vshll.u32 %v8591_v3, 16  ;;  %v9878_v5 = vrot.slane %v3265_v44, 4  ;;  %v8467_v27 = vld [vmem:[%s8885_s14 + $0x24] sm:$0xff]  }
 0x11f   : > { %v882_v63 = vrot.slane %v11159_v61, 4  ;;  %7673 = vmatprep.mubr.bf16.mxu0 %v8466_v49  ;;  %v9880_v30 = vrot.slane %v3283_v41, 4  ;;  %v9882_v57 = vrot.slane %v3286_v45, 5  ;;  %v9884_v16 = vrot.slane %v3292_v6, 5  ;;  %v8469_v44 = vld [vmem:[%s8896_s19 + $0x1c8] sm:$0xff]  }
 0x120   : > { %v9886_v49 = vrot.slane %v3275_v9, 4  ;;  %v9888_v8 = vrot.slane %v3296_v59, 4  ;;  %v865_v24 = vsel %vm9243_vm5, %v860_v58, %v864_v26  ;;  %v3307_v41 = vshrl.u32 %v9875_v32, 16  ;;  %v8500_v26 = vld [vmem:[%s9903_s29 + $0x40] sm:$0xff]   ;;  %v8472_v58 = vld [vmem:[%s8896_s19 + $0x1d0] sm:$0xff]   ;;  %v8473_v3 = vld [vmem:[%s8885_s14 + $0x48] sm:$0xff]  }
 0x121   : > { %v883_v33 = vor.u32 %v882_v63, %v878_v7  ;;  %v3310_v45 = vshll.u32 %v9875_v32, 16  ;;  %v6509_v6 = vcombine.low %v855_v19, %v865_v24  ;;  %v888_v1 = vrot.slane %v886_v22, 5  ;;  %v8501_v19 = vld [vmem:[%s9903_s29 + $0x48] sm:$0xff]   ;;  %7765 = vmatprep.subr.bf16.mxu1 %v8500_v26  ;;  %v8502_v63 = vld [vmem:[%s9903_s29 + $0x50] sm:$0xff]   ;;  %v8474_v22 = vld [vmem:[%s8896_s19 + $0x1d8] sm:$0xff]  }
 0x122   : > { %v879_v59 = vsel %vm9243_vm5, %v874_v46, %v878_v7  ;;  %v3316_v53 = vshll.u32 %v9891_v42, 16  ;;  %v3320_v2 = vshrl.u32 %v9891_v42, 16  ;;  %7766 = vmatpush3.bf16.msra.mxu1 %v8500_v26  ;;  %v8471_v7 = vld [vmem:[%s8885_s14 + $0x3c] sm:$0xff]   ;;  %v3127_v26 = vsel %vm9243_vm5, %v9627_v12, %v9572_v29 }
 0x123   : > { %v884_v9 = vrot.slane %v883_v33, 4  ;;  %7473 = vmatprep.mubr.bf16.mxu1 %v6509_v6  ;;  %7767 = vmatprep.subr.bf16.mxu1 %v8501_v19  ;;  %v8476_v24 = vld [vmem:[%s8896_s19 + $0x1e0] sm:$0xff]   ;;  %v8481_v6 = vld [vmem:[%s8885_s14 + $0x78] sm:$0xff]   ;;  %v3161_v29 = vsel %vm9243_vm5, %v9660_v13, %v9633_v50  ;;  %v3185_v12 = vsel %vm9243_vm5, %v9706_v55, %v9662_v4  ;;  %v3199_v13 = vsel %vm9243_vm5, %v9757_v31, %v9685_v52 }
 0x124   : > { %v8477_v33 = vld [vmem:[%s8885_s14 + $0x60] sm:$0xff]   ;;  %v3209_v50 = vsel %vm9243_vm5, %v9759_v47, %v9720_v14  ;;  %v3233_v4 = vsel %vm9243_vm5, %v9775_v60, %v9764_v25  ;;  %v8490_v55 = vld [vmem:[%s8896_s19 + $0x218] sm:$0xff]   ;;  %v3309_v14 = vrot.slane %v3307_v41, 4  ;;  %v3318_v47 = vrot.slane %v3316_v53, 5 }
 0x125   : > { %v889_v61 = vsel %vm9243_vm5, %v884_v9, %v888_v1  ;;  %v8483_v1 = vld [vmem:[%s8896_s19 + $0x1f8] sm:$0xff]   ;;  %v8482_v9 = vld [vmem:[%s8885_s14 + $0x84] sm:$0xff]   ;;  %v6856_v52 = vcombine.low %v3199_v13, %v3209_v50  ;;  %v3322_v25 = vrot.slane %v3320_v2, 4  ;;  %v3247_v60 = vsel %vm9243_vm5, %v9812_v62, %v9777_v37 }
 0x126   : > { %7674 = vmatmul.mubr.bf16.vlgmr.msra.gmra.mrb[0].mxu0 %v8467_v27  ;;  %v6510_v46 = vcombine.low %v879_v59, %v889_v61  ;;  %7768 = vmatpush3.bf16.msra.mxu1 %v8501_v19  ;;  %v8479_v27 = vld [vmem:[%s8896_s19 + $0x1e8] sm:$0xff]   ;;  %v8484_v59 = vld [vmem:[%s8896_s19 + $0x200] sm:$0xff]   ;;  %v3137_v19 = vsel %vm9243_vm5, %v9631_v34, %v9623_v21  ;;  %v3175_v21 = vsel %vm9243_vm5, %v9683_v17, %v9643_v36  ;;  %v9972_v17 = vld [vmem:[%s8885_s14 + $0x74] sm:$0x1] }
 0x127   : > { %7694 = vmatpush3.bf16.msra.mxu0 %v9836_v18  ;;  %7677 = vmatprep.mubr.bf16.mxu0 %v8470_v28  ;;  %v8475_v18 = vld [vmem:[%s8885_s14 + $0x54] sm:$0xff]   ;;  %v8478_v28 = vld [vmem:[%s8885_s14 + $0x6c] sm:$0xff]   ;;  %v6853_v61 = vcombine.low %v3127_v26, %v3137_v19  ;;  %v3223_v36 = vsel %vm9243_vm5, %v9773_v10, %v9722_v35  ;;  %v6834_v31 = vld [vmem:[%s8885_s14 + $0x84] sm:$0xf]  ;;  %v3312_v35 = vrot.slane %v3310_v45, 5  ;;  %v3257_v32 = vsel %vm9243_vm5, %v9865_v39, %v9814_v54 }
 0x128   : > { %7695 = vmatprep.subr.bf16.mxu0 %v8469_v44  ;;  %7474 = vmatmul.mubr.bf16.gmra.mrb[16].mxu1 %v6510_v46  ;;  %v6857_v46 = vcombine.low %v3223_v36, %v3233_v4  ;;  %v9985_v10 = vld [vmem:[%s8885_s14 + $0x88] sm:$0xf]  ;;  %v3302_v41 = vshll.u32 %v9972_v17, 16  ;;  %v9997_v45 = vld [vmem:[%s8885_s14 + $0x80] sm:$0x1]  ;;  %v3271_v53 = vsel %vm9243_vm5, %v9878_v5, %v9842_v43  ;;  %v3281_v37 = vsel %vm9243_vm5, %v9886_v49, %v9867_v23 }
 0x129   : > { %7769 = vmatprep.subr.bf16.mxu1 %v8502_v63  ;;  %v3289_v62 = vor.u32 %v9882_v57, %v9880_v30  ;;  %v3299_v54 = vor.u32 %v9888_v8, %v9884_v16  ;;  %v3331_v39 = vshrl.u32 %v6834_v31, 16  ;;  %v3334_v2 = vshll.u32 %v6834_v31, 16  ;;  %v8492_v43 = vld [vmem:[%s8896_s19 + $0x220] sm:$0xff]  }
 0x12a   : > { %7770 = vmatpush3.bf16.msra.mxu1 %v8502_v63  ;;  %v3151_v63 = vsel %vm9243_vm5, %v9658_v51, %v9619_v20  ;;  %v8485_v20 = vld [vmem:[%s8896_s19 + $0x208] sm:$0xff]   ;;  %v6855_v51 = vcombine.low %v3175_v21, %v3185_v12  ;;  %v3313_v5 = vor.u32 %v3312_v35, %v3309_v14  ;;  %v3326_v23 = vshll.u32 %v9997_v45, 16  ;;  %v8497_v21 = vld [vmem:[%s8896_s19 + $0x230] sm:$0xff]  }
 0x12b   : > { %7696 = vmatpush3.bf16.msra.mxu0 %v8469_v44  ;;  %v8480_v44 = vld [vmem:[%s8896_s19 + $0x1f0] sm:$0xff]   ;;  %v6854_v34 = vcombine.low %v3151_v63, %v3161_v29  ;;  %v6858_v30 = vcombine.low %v3247_v60, %v3257_v32  ;;  %v6859_v57 = vcombine.low %v3271_v53, %v3281_v37  ;;  %v3290_v49 = vrot.slane %v3289_v62, 4  ;;  %v6872_v53 = vld [vmem:[%s8885_s14 + $0x24] sm:$0xe] }
 0x12c   : > { %7697 = vmatprep.subr.bf16.mxu0 %v8472_v58  ;;  %v3300_v8 = vrot.slane %v3299_v54, 4  ;;  %v8595_v37 = vld [vmem:[%s8885_s14 + $0x34] sm:$0xf]  ;;  %v6873_v54 = vld [vmem:[%s8885_s14 + $0x30] sm:$0xe] }
 0x12d   : > { %v3295_v26 = vsel %vm9243_vm5, %v3290_v49, %v9884_v16  ;;  %v8592_v16 = vld [vmem:[%s8885_s14 + $0x1c] sm:$0xf]  ;;  %v3648_v62 = vrot.slane %v8595_v37, 5 }
 0x12e   : > { %7678 = vmatmul.mubr.bf16.gmra.mrb[4].mxu0 %v8471_v7  ;;  %v3340_v7 = vshll.u32 %v9985_v10, 16 }
 0x12f   : > { %7698 = vmatpush3.bf16.msra.mxu0 %v8472_v58  ;;  %7681 = vmatprep.mubr.bf16.mxu0 %v8473_v3  ;;  %v8488_v58 = vld [vmem:[%s8896_s19 + $0x210] sm:$0xff]   ;;  %v3344_v3 = vshrl.u32 %v9985_v10, 16 }
 0x130   : > { %7699 = vmatprep.subr.bf16.mxu0 %v8474_v22 }
 0x133   : > { %7700 = vmatpush3.bf16.msra.mxu0 %v8474_v22  ;;  %v3323_v22 = vor.u32 %v3322_v25, %v3318_v47  ;;  %v8594_v25 = vld [vmem:[%s8885_s14 + $0x28] sm:$0xf] }
 0x134   : > { %7701 = vmatprep.subr.bf16.mxu0 %v8476_v24  ;;  %v3641_v60 = vrot.slane %v8594_v25, 5 }
 0x136   : > { %7682 = vmatmul.mubr.bf16.gmra.mrb[8].mxu0 %v8475_v18  ;;  %v3333_v18 = vrot.slane %v3331_v39, 4 }
 0x137   : > { %7702 = vmatpush3.bf16.msra.mxu0 %v8476_v24  ;;  %7685 = vmatprep.mubr.bf16.mxu0 %v8477_v33  ;;  %v3304_v24 = vrot.slane %v3302_v41, 5  ;;  %v3336_v33 = vrot.slane %v3334_v2, 5  ;;  %v6882_v2 = vrot.slane %v6872_v53, 9  ;;  %v3690_v53 = vrot.slane %v9891_v42, 5 }
 0x138   : > { %7703 = vmatprep.subr.bf16.mxu0 %v8479_v27 }
 0x139   : > { %v3305_v19 = vsel %vm9243_vm5, %v3300_v8, %v3304_v24  ;;  %v8598_v8 = vld [vmem:[%s8885_s14 + $0x40] sm:$0xf] }
 0x13a   : > { %v3655_v24 = vrot.slane %v8598_v8, 5 }
 0x13b   : > { %7704 = vmatpush3.bf16.msra.mxu0 %v8479_v27  ;;  %v3342_v27 = vrot.slane %v3340_v7, 5  ;;  %v3643_v7 = vrot.slane %v3641_v60, 4 }
 0x13c   : > { %7705 = vmatprep.subr.bf16.mxu0 %v8480_v44 }
 0x13e   : > { %7686 = vmatmul.mubr.bf16.gmra.mrb[12].mxu0 %v8478_v28  ;;  %v8494_v28 = vld [vmem:[%s8896_s19 + $0x228] sm:$0xff]  }
 0x13f   : > { %7689 = vmatprep.mubr.bf16.mxu0 %v8481_v6  ;;  %7706 = vmatpush3.bf16.msra.mxu0 %v8480_v44  ;;  %v3346_v44 = vrot.slane %v3344_v3, 4  ;;  %v3314_v6 = vrot.slane %v3313_v5, 4  ;;  %v8596_v3 = vld [vmem:[%s8885_s14 + $0x2c] sm:$0x1]  ;;  %v6883_v5 = vrot.slane %v6873_v54, 9 }
 0x140   : > { %7707 = vmatprep.subr.bf16.mxu0 %v8483_v1 }
 0x141   : > { %v3347_v63 = vor.u32 %v3346_v44, %v3342_v27  ;;  %v3319_v12 = vsel %vm9243_vm5, %v3314_v6, %v3318_v47  ;;  %v8599_v44 = vld [vmem:[%s8885_s14 + $0x4c] sm:$0xf]  ;;  %v6875_v6 = vld [vmem:[%s8885_s14 + $0x48] sm:$0xe] }
 0x143   : > { %7708 = vmatpush3.bf16.msra.mxu0 %v8483_v1  ;;  %v3324_v1 = vrot.slane %v3323_v22, 4  ;;  %v3348_v36 = vrot.slane %v3347_v63, 4  ;;  %v3650_v22 = vrot.slane %v3648_v62, 4 }
 0x144   : > { %7729 = vmatprep.subr.bf16.mxu0 %v8484_v59 }
 0x146   : > { %7690 = vmatmul.mubr.bf16.gmra.mrb[16].mxu0 %v8482_v9  ;;  %v10017_v9 = vld [vmem:[%s8885_s14 + $0x8c] sm:$0x1] }
 0x147   : > { %7709 = vmatprep.mubr.bf16.mxu0 %v6853_v61  ;;  %v3337_v61 = vor.u32 %v3336_v33, %v3333_v18  ;;  %v3350_v29 = vshll.u32 %v10017_v9, 16  ;;  %v3649_v18 = vsel %vm8986_vm2, %v6883_v5, %v3648_v62 }
 0x149   : > { %v3338_v50 = vrot.slane %v3337_v61, 4  ;;  %v3352_v4 = vrot.slane %v3350_v29, 5  ;;  %v8600_v61 = vld [vmem:[%s8885_s14 + $0x44] sm:$0x1]  ;;  %v6885_v29 = vrot.slane %v6875_v6, 9 }
 0x14a   : > { %v3658_v63 = vrot.slane %v8600_v61, 5  ;;  %v10123_v61 = vld [vmem:[%s9903_s29] sm:$0xff]  }
 0x14b   : > { %v3343_v35 = vsel %vm9243_vm5, %v3338_v50, %v3342_v27  ;;  %v3353_v47 = vsel %vm9243_vm5, %v3348_v36, %v3352_v4  ;;  %v6874_v27 = vld [vmem:[%s8885_s14 + $0x3c] sm:$0xe]  ;;  %v6876_v50 = vld [vmem:[%s8885_s14 + $0x54] sm:$0xe]  ;;  %v3676_v36 = vrot.slane %v9800_v0, 5 }
 0x14c   : > { %v6862_v39 = vcombine.low %v3343_v35, %v3353_v47  ;;  %v6877_v4 = vld [vmem:[%s8885_s14 + $0x60] sm:$0xe]  ;;  %v3679_v47 = vrot.slane %v9810_v56, 5  ;;  %v6879_v56 = vld [vmem:[%s8885_s14 + $0x78] sm:$0xe] }
 0x14d   : > { %v6887_v35 = vrot.slane %v6877_v4, 9 }
 0x14e   : > { %7710 = vmatmul.mubr.bf16.vlgmr.msra.gmra.mrb[0].mxu0 %v6854_v34 }
 0x14f   : > { %7730 = vmatpush3.bf16.msra.mxu0 %v8484_v59  ;;  %7713 = vmatprep.mubr.bf16.mxu0 %v6855_v51  ;;  %v3328_v59 = vrot.slane %v3326_v23, 5  ;;  %v6871_v51 = vld [vmem:[%s8885_s14 + $0x18] sm:$0xe]  ;;  %v8597_v23 = vld [vmem:[%s8885_s14 + $0x38] sm:$0x1] }
 0x150   : > { %7731 = vmatprep.subr.bf16.mxu0 %v8485_v20 }
 0x151   : > { %v3329_v34 = vsel %vm9243_vm5, %v3324_v1, %v3328_v59 }
 0x152   : > { %v6861_v13 = vcombine.low %v3319_v12, %v3329_v34  ;;  %v8601_v12 = vld [vmem:[%s8885_s14 + $0x50] sm:$0x1] }
 0x153   : > { %7732 = vmatpush3.bf16.msra.mxu0 %v8485_v20  ;;  %v3634_v20 = vrot.slane %v8592_v16, 5  ;;  %v3665_v34 = vrot.slane %v8601_v12, 5 }
 0x154   : > { %7733 = vmatprep.subr.bf16.mxu0 %v8488_v58 }
 0x155   : > { %v3636_v31 = vrot.slane %v3634_v20, 4 }
 0x156   : > { %7714 = vmatmul.mubr.bf16.gmra.mrb[4].mxu0 %v6856_v52  ;;  %v8499_v52 = vld [vmem:[%s8896_s19 + $0x238] sm:$0xff]  }
 0x157   : > { %7734 = vmatpush3.bf16.msra.mxu0 %v8488_v58  ;;  %7717 = vmatprep.mubr.bf16.mxu0 %v6857_v46  ;;  %v6860_v58 = vcombine.low %v3295_v26, %v3305_v19  ;;  %v8593_v46 = vld [vmem:[%s8885_s14 + $0x20] sm:$0x1]  ;;  %v6884_v26 = vrot.slane %v6874_v27, 9  ;;  %v3657_v19 = vrot.slane %v3655_v24, 4  ;;  %v8505_v27 = vld [vmem:[%s9903_s29 + $0x68] sm:$0xff]  }
 0x158   : > { %7735 = vmatprep.subr.bf16.mxu0 %v8490_v55  ;;  %v3637_v14 = vrot.slane %v8593_v46, 5 }
 0x159   : > { %v3656_v16 = vsel %vm8986_vm2, %v6884_v26, %v3655_v24 }
 0x15a   : > { %v3638_v41 = vsel %vm8986_vm2, %v3636_v31, %v3637_v14  ;;  %v6886_v31 = vrot.slane %v6876_v50, 9  ;;  %v3672_v14 = vrot.slane %v9767_v40, 5 }
 0x15b   : > { %7736 = vmatpush3.bf16.msra.mxu0 %v8490_v55  ;;  %v6881_v55 = vrot.slane %v6871_v51, 9  ;;  %v3669_v51 = vrot.slane %v9743_v11, 5  ;;  %v3678_v11 = vrot.slane %v3676_v36, 4 }
 0x15c   : > { %7737 = vmatprep.subr.bf16.mxu0 %v8492_v43 }
 0x15d   : > { %v3635_v32 = vsel %vm8986_vm2, %v6881_v55, %v3634_v20  ;;  %v3659_v20 = vsel %vm8986_vm2, %v3657_v19, %v3658_v63  ;;  %v3671_v46 = vrot.slane %v3669_v51, 4  ;;  %v3670_v25 = vsel %vm8986_vm2, %v6886_v31, %v3669_v51 }
 0x15e   : > { %7718 = vmatmul.mubr.bf16.gmra.mrb[8].mxu0 %v6858_v30  ;;  %v6907_v38 = vcombine.low %v3635_v32, %v3638_v41  ;;  %v3651_v30 = vrot.slane %v8597_v23, 5  ;;  %v3677_v32 = vsel %vm8986_vm2, %v6887_v35, %v3676_v36  ;;  %v3680_v40 = vsel %vm8986_vm2, %v3678_v11, %v3679_v47  ;;  %v6878_v41 = vld [vmem:[%s8885_s14 + $0x6c] sm:$0xe]  ;;  %v8604_v35 = vld [vmem:[%s8885_s14 + $0x38] sm:$0x1] }
 0x15f   : > { %7738 = vmatpush3.bf16.msra.mxu0 %v8492_v43  ;;  %7721 = vmatprep.mubr.bf16.mxu0 %v6859_v57  ;;  %v3644_v43 = vrot.slane %v8596_v3, 5  ;;  %v3642_v57 = vsel %vm8986_vm2, %v6882_v2, %v3641_v60  ;;  %v3673_v0 = vsel %vm8986_vm2, %v3671_v46, %v3672_v14  ;;  %v3683_v60 = vrot.slane %v9845_v15, 5  ;;  %v8603_v46 = vld [vmem:[%s8885_s14 + $0x2c] sm:$0x1]  ;;  %v8605_v47 = vld [vmem:[%s8885_s14 + $0x44] sm:$0x1] }
 0x160   : > { %7739 = vmatprep.subr.bf16.mxu0 %v8494_v28  ;;  %v3652_v33 = vsel %vm8986_vm2, %v3650_v22, %v3651_v30  ;;  %v6912_v37 = vcombine.low %v3670_v25, %v3673_v0  ;;  %v6913_v62 = vcombine.low %v3677_v32, %v3680_v40  ;;  %v6888_v54 = vrot.slane %v6878_v41, 9  ;;  %v6880_v22 = vld [vmem:[%s8885_s14 + $0x84] sm:$0xe]  ;;  %v8606_v0 = vld [vmem:[%s8885_s14 + $0x50] sm:$0x1] }
 0x161   : > { %v3645_v49 = vsel %vm8986_vm2, %v3643_v7, %v3644_v43  ;;  %v6909_v59 = vcombine.low %v3649_v18, %v3652_v33  ;;  %v6889_v2 = vrot.slane %v6879_v56, 9  ;;  %v3692_v7 = vrot.slane %v3690_v53, 4  ;;  %v8503_v18 = vld [vmem:[%s9903_s29 + $0x58] sm:$0xff]   ;;  %v8504_v33 = vld [vmem:[%s9903_s29 + $0x60] sm:$0xff]   ;;  %v8608_v41 = vld [vmem:[%s8885_s14 + $0x68] sm:$0x1] }
 0x162   : > { %v6908_v1 = vcombine.low %v3642_v57, %v3645_v49  ;;  %v3693_v15 = vrot.slane %v9997_v45, 5  ;;  %v3684_v3 = vsel %vm8986_vm2, %v6888_v54, %v3683_v60  ;;  %v3697_v43 = vrot.slane %v9985_v10, 5  ;;  %7771 = vmatprep.subr.bf16.mxu1 %v8503_v18  ;;  %v8607_v32 = vld [vmem:[%s8885_s14 + $0x5c] sm:$0x1]  ;;  %v8609_v56 = vld [vmem:[%s8885_s14 + $0x74] sm:$0x1] }
 0x163   : > { %7740 = vmatpush3.bf16.msra.mxu0 %v8494_v28  ;;  %v3662_v28 = vrot.slane %v8599_v44, 5  ;;  %v3691_v5 = vsel %vm8986_vm2, %v6889_v2, %v3690_v53  ;;  %v6890_v30 = vrot.slane %v6880_v22, 9  ;;  %v3700_v49 = vrot.slane %v10017_v9, 5  ;;  %7772 = vmatpush3.bf16.msra.mxu1 %v8503_v18  ;;  %v8614_v22 = vld [vmem:[%s8885_s14 + $0x10] sm:$0xf] }
 0x164   : > { %7741 = vmatprep.subr.bf16.mxu0 %v8497_v21  ;;  %v3699_v57 = vrot.slane %v3697_v43, 4  ;;  %7773 = vmatprep.subr.bf16.mxu1 %v8504_v33  ;;  %v4069_v14 = vunpack.c.l.bf16 %v8603_v46  ;;  %v4072_v11 = vunpack.c.l.bf16 %v8604_v35  ;;  %v4075_v25 = vunpack.c.l.bf16 %v8605_v47  ;;  %v8619_v46 = vld [vmem:[%s8885_s14 + $0x28] sm:$0xf] }
 0x165   : > { %v3698_v10 = vsel %vm8986_vm2, %v6890_v30, %v3697_v43  ;;  %v4081_v40 = vunpack.c.l.bf16 %v8607_v32  ;;  %v4084_v53 = vunpack.c.l.bf16 %v8608_v41  ;;  %v8621_v32 = vld [vmem:[%s8885_s14 + $0x4c] sm:$0xf]  ;;  %v8622_v41 = vld [vmem:[%s8885_s14 + $0x3c] sm:$0xf] }
 0x166   : > { %7722 = vmatmul.mubr.bf16.gmra.mrb[12].mxu0 %v6860_v58  ;;  %v3663_v58 = vsel %vm8986_vm2, %v6885_v29, %v3662_v28  ;;  %v3701_v8 = vsel %vm8986_vm2, %v3699_v57, %v3700_v49 }
 0x167   : > { %7725 = vmatprep.mubr.bf16.mxu0 %v6861_v13  ;;  %7742 = vmatpush3.bf16.msra.mxu0 %v8497_v21  ;;  %v3664_v21 = vrot.slane %v3662_v28, 4  ;;  %v6916_v24 = vcombine.low %v3698_v10, %v3701_v8  ;;  %v8753_v28 = vmov 0.0   ;;  %v10191_v49 = vrot.slane %v4081_v40, 1 }
 0x168   : > { %7743 = vmatprep.subr.bf16.mxu0 %v8499_v52  ;;  %7774 = vmatpush3.bf16.msra.mxu1 %v8504_v33  ;;  %4297 = vst [vmem:[#allocation2 + $0x18] sm:$0xff] %v8753_v28  ;;  %4298 = vst [vmem:[#allocation2 + $0x20] sm:$0xff] %v8753_v28  ;;  %v10193_v10 = vrot.slane %v4084_v53, 1  ;;  %v8616_v33 = vld [vmem:[%s8885_s14 + $0x30] sm:$0xf]  ;;  %v4077_v40 = vunpack.c.l.bf16 %v8621_v32  ;;  %v4073_v53 = vunpack.c.l.bf16 %v8622_v41 }
 0x169   : > { %v3666_v13 = vsel %vm8986_vm2, %v3664_v21, %v3665_v34  ;;  %7775 = vmatprep.subr.bf16.mxu1 %v8505_v27  ;;  %4294 = vst [vmem:[#allocation2] sm:$0xff] %v8753_v28  ;;  %4295 = vst [vmem:[#allocation2 + $0x8] sm:$0xff] %v8753_v28 }
 0x16a   : > { %v6911_v55 = vcombine.low %v3663_v58, %v3666_v13  ;;  %4296 = vst [vmem:[#allocation2 + $0x10] sm:$0x3] %v8753_v28  ;;  %4299 = vst [vmem:[#allocation2 + $0x28] sm:$0x3] %v8753_v28 }
 0x16b   : > { %7744 = vmatpush3.bf16.msra.mxu0 %v8499_v52  ;;  %v6910_v52 = vcombine.low %v3656_v16, %v3659_v20  ;;  %4300 = vst [vmem:[#allocation2 + $0x30] sm:$0xff] %v8753_v28  ;;  %4301 = vst [vmem:[#allocation2 + $0x38] sm:$0xff] %v8753_v28 }
 0x16c   : > { %7776 = vmatpush3.bf16.msra.mxu1 %v8505_v27  ;;  %4302 = vst [vmem:[#allocation2 + $0x40] sm:$0x3] %v8753_v28  ;;  %4303 = vst [vmem:[#allocation2 + $0x48] sm:$0xff] %v8753_v28  ;;  %v4070_v27 = vunpack.c.l.bf16 %v8616_v33 }
 0x16d   : > { %4304 = vst [vmem:[#allocation2 + $0x50] sm:$0xff] %v8753_v28  ;;  %4305 = vst [vmem:[#allocation2 + $0x58] sm:$0x3] %v8753_v28  ;;  %7777 = vmatprep.subr.bf16.mxu1 %v8506_v48 }
 0x16e   : > { %7726 = vmatmul.mubr.bf16.gmra.mrb[16].mxu0 %v6862_v39  ;;  %v3685_v39 = vrot.slane %v3683_v60, 4  ;;  %4306 = vst [vmem:[#allocation2 + $0x60] sm:$0xff] %v8753_v28  ;;  %4307 = vst [vmem:[#allocation2 + $0x68] sm:$0xff] %v8753_v28  ;;  %v4078_v60 = vunpack.c.l.bf16 %v8606_v0  ;;  %v8620_v0 = vld [vmem:[%s8885_s14 + $0x48] sm:$0xf] }
 0x16f   : > { %7745 = vmatprep.mubr.bf16.mxu0 %v6907_v38  ;;  %v3686_v38 = vrot.slane %v9972_v17, 5  ;;  %v3694_v17 = vsel %vm8986_vm2, %v3692_v7, %v3693_v15  ;;  %4308 = vst [vmem:[#allocation2 + $0x70] sm:$0x3] %v8753_v28  ;;  %4309 = vst [vmem:[#allocation2 + $0x78] sm:$0xff] %v8753_v28  ;;  %v10178_v7 = vrot.slane %v4069_v14, 1  ;;  %v10180_v15 = vrot.slane %v4072_v11, 1 }
 0x170   : > { %v6915_v23 = vcombine.low %v3691_v5, %v3694_v17  ;;  %4310 = vst [vmem:[#allocation2 + $0x80] sm:$0xff] %v8753_v28  ;;  %4311 = vst [vmem:[#allocation2 + $0x88] sm:$0x3] %v8753_v28  ;;  %7778 = vmatpush3.bf16.msra.mxu1 %v8506_v48  ;;  %v8613_v5 = vld [vmem:[%s8885_s14 + $0xc] sm:$0xf]  ;;  %v10189_v57 = vrot.slane %v4078_v60, 1  ;;  %v4068_v14 = vunpack.c.l.bf16 %v8619_v46  ;;  %v4076_v60 = vunpack.c.l.bf16 %v8620_v0 }
 0x171   : > { %v3687_v42 = vsel %vm8986_vm2, %v3685_v39, %v3686_v38  ;;  %4312 = vst [vmem:[#allocation2 + $0x90] sm:$0xff] %v8753_v28  ;;  %4313 = vst [vmem:[#allocation2 + $0x98] sm:$0xff] %v8753_v28  ;;  %v8611_v39 = vld [vmem:[%s8885_s14 + $0x1c] sm:$0xf]  ;;  %v4061_v17 = vunpack.c.l.bf16 %v8613_v5  ;;  %v8624_v5 = vld [vmem:[%s8885_s14 + $0x60] sm:$0xf] }
 0x172   : > { %v6914_v45 = vcombine.low %v3684_v3, %v3687_v42  ;;  %4314 = vst [vmem:[#allocation2 + $0xa0] sm:$0x3] %v8753_v28  ;;  %4315 = vst [vmem:[#allocation2 + $0xa8] sm:$0xff] %v8753_v28  ;;  %v4065_v38 = vunpack.c.l.bf16 %v8611_v39  ;;  %v10182_v3 = vrot.slane %v4075_v25, 1  ;;  %v8612_v42 = vld [vmem:[%s8885_s14 + $0x80] sm:$0x1] }
 0x173   : > { %4316 = vst [vmem:[#allocation2 + $0xb0] sm:$0xff] %v8753_v28  ;;  %4317 = vst [vmem:[#allocation2 + $0xb8] sm:$0x3] %v8753_v28  ;;  %v4090_v43 = vunpack.c.l.bf16 %v8612_v42  ;;  %v4122_v11 = vrot.slane %v4061_v17, 1  ;;  %v4137_v39 = vrot.slane %v4070_v27, 1  ;;  %v4082_v17 = vunpack.c.l.bf16 %v8624_v5 }
 0x174   : > { %4318 = vst [vmem:[#allocation2 + $0xc0] sm:$0xff] %v8753_v28  ;;  %4319 = vst [vmem:[#allocation2 + $0xc8] sm:$0xff] %v8753_v28  ;;  %v4128_v18 = vrot.slane %v4065_v38, 1  ;;  %v8627_v27 = vld [vmem:[%s8885_s14 + $0x58] sm:$0xf] }
 0x175   : > { %4320 = vst [vmem:[#allocation2 + $0xd0] sm:$0x3] %v8753_v28  ;;  %4321 = vst [vmem:[#allocation2 + $0xd8] sm:$0xff] %v8753_v28  ;;  %v10204_v35 = vrot.slane %v4090_v43, 1  ;;  %v4133_v43 = vrot.slane %v4068_v14, 1 }
 0x176   : > { %7746 = vmatmul.mubr.bf16.vlgmr.msra.gmra.mrb[0].mxu0 %v6908_v1  ;;  %4322 = vst [vmem:[#allocation2 + $0xe0] sm:$0xff] %v8753_v28  ;;  %4323 = vst [vmem:[#allocation2 + $0xe8] sm:$0x3] %v8753_v28  ;;  %v8617_v28 = vld [vmem:[%s8885_s14 + $0x34] sm:$0xf] }
 0x177   : > { %7749 = vmatprep.mubr.bf16.mxu0 %v6909_v59  ;;  %v8507_v59 = vld [vmem:[%s9903_s29 + $0x78] sm:$0xff]   ;;  %v4071_v48 = vunpack.c.l.bf16 %v8617_v28  ;;  %11161 = vst [vmem:[#allocation19_spill] sm:$0xff] %v10204_v35  ;;  %v4080_v28 = vunpack.c.l.bf16 %v8627_v27  ;;  %v10277_v32 = vsel %vm4121_vm6, %v4133_v43, %v10178_v7 }
 0x178   : > { %7779 = vmatprep.subr.bf16.mxu1 %v8507_v59 }
 0x179   : > { %7780 = vmatpush3.bf16.msra.mxu1 %v8507_v59  ;;  %v10200_v59 = vstv %s6929_s22  ;;  %v4138_v38 = vrot.slane %v4071_v48, 1  ;;  %v4147_v48 = vrot.slane %v4076_v60, 1  ;;  %v4153_v41 = vrot.slane %v4080_v28, 1  ;;  %s565_s22 = scalar_lea.vmem %s11054_s5, %s11210_s15  ;;  %v8629_v28 = vld [vmem:[%s8885_s14 + $0x7c] sm:$0xf]  ;;  %s584_s15 = sld [smem:[#allocation4 + %s8737_s23]] }
 0x17a   : > { %7797 = vmatprep.subr.bf16.mxu1 %v10123_v61  ;;  %vm4224_vm9 = vcmp.ge.s32.totalorder %v10200_v59, 0  ;;  %vm4234_vm10 = vcmp.lt.s32.totalorder %v10200_v59, 16 }
 0x17b   : > { %v10252_v14 = vsel %vm4121_vm6, %v4137_v39, %v4138_v38  ;;  %vm10375_vm3 = vmand %vm4224_vm9, %vm4234_vm10 }
 0x17e   : > { %7750 = vmatmul.mubr.bf16.gmra.mrb[4].mxu0 %v6910_v52 }
 0x17f   : > { %7753 = vmatprep.mubr.bf16.mxu0 %v6911_v55  ;;  %v8602_v55 = vld [vmem:[%s8885_s14 + $0x14] sm:$0x1]  ;;  %p585_p2 = scmp.lt.s32.totalorder %s584_s15, 1 }
 0x180   : > { %v4063_v31 = vunpack.c.l.bf16 %v8602_v55  ;;  %v8618_v55 = vld [vmem:[%s8885_s14 + $0x24] sm:$0xf] }
 0x181   : > { %s11216_s15 = smov (!%p585_p2, %s584_s15), 1 }
 0x182   : > { %v10176_v2 = vrot.slane %v4063_v31, 1  ;;  %v4067_v31 = vunpack.c.l.bf16 %v8618_v55  ;;  %v4148_v55 = vrot.slane %v4077_v40, 1  ;;  %v10280_v40 = vadd.s32 5, %v10200_v59 }
 0x184   : > { %v4132_v42 = vrot.slane %v4067_v31, 1  ;;  %v4142_v31 = vrot.slane %v4073_v53, 1  ;;  %v10295_v7 = vsel %vm4121_vm6, %v4148_v55, %v10189_v57  ;;  %vm4229_vm5 = vcmp.ge.s32.totalorder %v10280_v40, 0 }
 0x186   : > { %7754 = vmatmul.mubr.bf16.gmra.mrb[8].mxu0 %v6912_v37  ;;  %v4087_v37 = vunpack.c.l.bf16 %v8609_v56  ;;  %v8623_v56 = vld [vmem:[%s8885_s14 + $0x40] sm:$0xf]  ;;  %v10263_v0 = vsel %vm4121_vm6, %v4132_v42, %v4133_v43 }
 0x187   : > { %7757 = vmatprep.mubr.bf16.mxu0 %v6913_v62  ;;  %v8610_v62 = vld [vmem:[%s8885_s14 + $0x18] sm:$0xf] }
 0x188   : > { %v4064_v54 = vunpack.c.l.bf16 %v8610_v62  ;;  %v10195_v8 = vrot.slane %v4087_v37, 1  ;;  %v4074_v37 = vunpack.c.l.bf16 %v8623_v56  ;;  %v10282_v56 = vld [vmem:[%s555_s17] ss:$0 sm:$0xff] }
 0x18a   : > { %11160 = vst [vmem:[#allocation39_spill] sm:$0xff] %v10195_v8  ;;  %v4143_v46 = vrot.slane %v4074_v37, 1  ;;  %v10285_v37 = vsel %vm4121_vm6, %v4147_v48, %v4148_v55 }
 0x18c   : > { %v10288_v39 = vsel %vm4121_vm6, %v4142_v31, %v4143_v46  ;;  %v10304_v5 = vsel %vm4121_vm6, %v4143_v46, %v10182_v3  ;;  %v4089_v3 = vunpack.c.l.bf16 %v8629_v28  ;;  %v8631_v28 = vld [vmem:[%s8885_s14 + $0x70] sm:$0xf] }
 0x18e   : > { %7758 = vmatmul.mubr.bf16.gmra.mrb[12].mxu0 %v6914_v45  ;;  %v4062_v45 = vunpack.c.l.bf16 %v8614_v22  ;;  %v8625_v22 = vld [vmem:[%s8885_s14 + $0x64] sm:$0xf] }
 0x18f   : > { %7761 = vmatprep.mubr.bf16.mxu0 %v6915_v23  ;;  %v8615_v23 = vld [vmem:[%s8885_s14 + $0x20] sm:$0x1] }
 0x190   : > { %v4066_v30 = vunpack.c.l.bf16 %v8615_v23  ;;  %v4123_v47 = vrot.slane %v4062_v45, 1  ;;  %v4083_v45 = vunpack.c.l.bf16 %v8625_v22  ;;  %v8628_v22 = vld [vmem:[%s8885_s14 + $0x78] sm:$0xf] }
 0x192   : > { %v4130_v25 = vrot.slane %v4066_v30, 1  ;;  %v10231_v23 = vsel %vm4121_vm6, %v4122_v11, %v4123_v47  ;;  %v10255_v11 = vadd.s32 3, %v10200_v59  ;;  %v4158_v60 = vrot.slane %v4083_v45, 1 }
 0x193   : > { %v4088_v45 = vunpack.c.l.bf16 %v8628_v22 }
 0x194   : > { %v10234_v30 = vsel %vm4121_vm6, %v4128_v18, %v4130_v25  ;;  %v10258_v25 = vadd.s32 2, %v10200_v59  ;;  %v10332_v8 = vsel %vm4121_vm6, %v4158_v60, %v10193_v10  ;;  %vm4227_vm11 = vcmp.ge.s32.totalorder %v10255_v11, 0 }
 0x195   : > { %11164 = vst [vmem:[#allocation9_spill] sm:$0xff] %v10332_v8  ;;  %vm4237_vm12 = vcmp.lt.s32.totalorder %v10255_v11, 16  ;;  %v10348_v10 = vadd.s32 9, %v10200_v59 }
 0x196   : > { %7762 = vmatmul.mubr.bf16.gmra.mrb[16].mxu0 %v6916_v24  ;;  %v4127_v24 = vrot.slane %v4064_v54, 1  ;;  %v10221_v54 = vadd.s32 1, %v10200_v59  ;;  %vm4226_vm15 = vcmp.ge.s32.totalorder %v10258_v25, 0  ;;  %vm4236_vm0 = vcmp.lt.s32.totalorder %v10258_v25, 16  ;;  %vm10412_vm9 = vmand %vm4227_vm11, %vm4237_vm12 }
 0x197   : > { %vm8636_vm11 = vmpackc.low %vm10375_vm3, %vm10375_vm3 }
 0x198   : > { %v10218_v62 = vsel %vm4121_vm6, %v4127_v24, %v4128_v18  ;;  %v8626_v24 = vld [vmem:[%s8885_s14 + $0x54] sm:$0xf]  ;;  %v10249_v18 = vsel %vm4121_vm6, %v4123_v47, %v10176_v2  ;;  %vm4225_vm7 = vcmp.ge.s32.totalorder %v10221_v54, 0  ;;  %vm4235_vm8 = vcmp.lt.s32.totalorder %v10221_v54, 16  ;;  %vm10433_vm12 = vmand %vm4226_vm15, %vm4236_vm0 }
 0x199   : > { %v4079_v33 = vunpack.c.l.bf16 %v8626_v24  ;;  %v10267_v2 = vsel %vm4121_vm6, %v4138_v38, %v10180_v15  ;;  %v4157_v47 = vrot.slane %v4082_v17, 1  ;;  %v10291_v38 = vadd.s32 4, %v10200_v59  ;;  %v10310_v24 = vld [vmem:[%s560_s26] ss:$0 sm:$0xff]  ;;  %vm10364_vm1 = vmand %vm4225_vm7, %vm4235_vm8 }
 0x19a   : > { %v10307_v17 = vadd.s32 7, %v10200_v59  ;;  %vm4239_vm7 = vcmp.lt.s32.totalorder %v10280_v40, 16 }
 0x19b   : > { %v4152_v15 = vrot.slane %v4079_v33, 1  ;;  %v10314_v27 = vsel %vm4121_vm6, %v4157_v47, %v4158_v60 }
 0x19d   : > { %v10323_v46 = vsel %vm4121_vm6, %v4152_v15, %v4153_v41  ;;  %v10339_v15 = vsel %vm4121_vm6, %v4153_v41, %v10191_v49 }
 0x19e   : > { %11163 = vst [vmem:[#allocation20_spill] sm:$0xff] %v10323_v46  ;;  %11165 = vst [vmem:[#allocation21_spill] sm:$0xff] %v10339_v15 }
 0x1d2   : > { %v10108_v44 = vpop.f32.mrb[0].mxu1 }
 0x1d3   : > { %v10110_v9 = vpop.f32.mrb[1].mxu1 }
 0x1d4   : > { %v10113_v6 = vpop.f32.mrb[2].mxu1 }
 0x1d5   : > { %v10115_v1 = vpop.f32.mrb[3].mxu1 }
 0x1dc   : > { %v10118_v26 = vpop.f32.mrb[4].mxu1 }
 0x1dd   : > { %v10120_v19 = vpop.f32.mrb[5].mxu1 }
 0x1de   : > { %v10125_v63 = vpop.f32.mrb[6].mxu1 }
 0x1df   : > { %v10127_v29 = vpop.f32.mrb[7].mxu1 }
 0x1e4   : > { %v10130_v21 = vpop.f32.mrb[8].mxu1 }
 0x1e5   : > { %v10132_v12 = vpop.f32.mrb[9].mxu1 }
 0x1e6   : > { %v10134_v34 = vpop.f32.mrb[10].mxu1 }
 0x1e7   : > { %v10136_v16 = vpop.f32.mrb[11].mxu1 }
 0x1ef   : > { %v10138_v20 = vpop.f32.mrb[12].mxu1 }
 0x1f0   : > { %v10140_v51 = vpop.f32.mrb[13].mxu1 }
 0x1f1   : > { %v10142_v58 = vpop.f32.mrb[14].mxu1 }
 0x1f2   : > { %v10144_v13 = vpop.f32.mrb[15].mxu1 }
 0x1fb   : > { %v10146_v50 = vpop.f32.mrb[16].mxu1 }
 0x1fc   : > { %v10148_v36 = vpop.f32.mrb[17].mxu1 }
 0x1fd   : > { %v10150_v4 = vpop.f32.mrb[18].mxu1 }
 0x1fe   : > { %v10152_v52 = vpop.f32.mrb[19].mxu1 }
 0x249   : > { %v7747_v53 = vpop.f32.mrb[0].mxu0 }
 0x24a   : > { %v8053_v42 = vadd.f32 %v7747_v53, %v10108_v44  ;;  %v3841_v43 = vpop.f32.mrb[1].mxu0  ;;  %v10317_v44 = vadd.s32 6, %v10200_v59  ;;  %v8630_v53 = vld [vmem:[%s8885_s14 + $0x6c] sm:$0xf]  ;;  %s574_s14 = sld [smem:[#allocation4 + %s8737_s23]] }
 0x24b   : > { %v8054_v57 = vadd.f32 %v3841_v43, %v10110_v9  ;;  %v7748_v33 = vpop.f32.mrb[2].mxu0  ;;  %v4085_v9 = vunpack.c.l.bf16 %v8630_v53  ;;  %v10326_v43 = vld [vmem:[%s565_s22] ss:$0 sm:$0xff]  ;;  %v4167_v53 = vrot.slane %v4088_v45, 1  ;;  %s587_s22 = scalar_lea.vmem %s11058_s9, %s11216_s15 }
 0x24c   : > { %v3949_v48 = vmul.f32 %v8053_v42, %v10282_v56  ;;  %v8055_v55 = vadd.f32 %v7748_v33, %v10113_v6  ;;  %v3844_v31 = vpop.f32.mrb[3].mxu0  ;;  %v4086_v42 = vunpack.c.l.bf16 %v8631_v28 }
 0x24d   : > { %v3947_v47 = vmul.f32 %v8054_v57, %v10282_v56  ;;  %v8056_v22 = vadd.f32 %v3844_v31, %v10115_v1  ;;  %v10345_v1 = vrot.slane %v4089_v3, 1  ;;  %v10352_v41 = vrot.slane %v4085_v9, 1 }
 0x24e   : > { %v3976_v6 = vadd.f32 %v10310_v24, %v3949_v48  ;;  %v3950_v33 = vmul.f32 %v8055_v55, %v10282_v56  ;;  %v10358_v3 = vrot.slane %v4086_v42, 1 }
 0x24f   : > { %v3974_v35 = vadd.f32 %v10310_v24, %v3947_v47  ;;  %v3948_v57 = vmul.f32 %v8056_v22, %v10282_v56 }
 0x250   : > { %vm3996_vm13 = vcmp.gt.f32.partialorder %v3976_v6, 0.0  ;;  %v4023_v60 = vmul.f32 %v10326_v43, %v3976_v6  ;;  %v3977_v49 = vadd.f32 %v10310_v24, %v3950_v33  ;;  %p575_p0 = scmp.lt.s32.totalorder %s574_s14, 1 }
 0x251   : > { %vm3994_vm14 = vcmp.gt.f32.partialorder %v3974_v35, 0.0  ;;  %v4021_v45 = vmul.f32 %v10326_v43, %v3974_v35  ;;  %v3975_v48 = vadd.f32 %v10310_v24, %v3948_v57  ;;  %v7751_v55 = vpop.f32.mrb[4].mxu0 }
 0x252   : > { %v4043_v31 = vsel %vm3996_vm13, %v3976_v6, %v4023_v60  ;;  %vm3997_vm2 = vcmp.gt.f32.partialorder %v3977_v49, 0.0  ;;  %v4024_v47 = vmul.f32 %v10326_v43, %v3977_v49  ;;  %v8057_v22 = vadd.f32 %v7751_v55, %v10118_v26  ;;  %v3857_v28 = vpop.f32.mrb[5].mxu0  ;;  %s11212_s14 = smov (!%p575_p0, %s574_s14), 1 }
 0x253   : > { %v4194_v33 = vadd.f32 %v10218_v62, %v4043_v31  ;;  %v4041_v57 = vsel %vm3994_vm14, %v3974_v35, %v4021_v45  ;;  %vm3995_vm4 = vcmp.gt.f32.partialorder %v3975_v48, 0.0  ;;  %v4022_v54 = vmul.f32 %v10326_v43, %v3975_v48  ;;  %v7752_v6 = vpop.f32.mrb[6].mxu0  ;;  %s577_s17 = scalar_lea.vmem %s11056_s7, %s11212_s14  ;;  %s596_s14 = sadd.s32 %s6483_s3, %s6482_s2 }
 0x254   : > { %v4192_v60 = vadd.f32 %v10231_v23, %v4041_v57  ;;  %v4044_v15 = vsel %vm3997_vm2, %v3977_v49, %v4024_v47  ;;  %v3953_v26 = vmul.f32 %v8057_v22, %v10282_v56  ;;  %v8058_v62 = vadd.f32 %v3857_v28, %v10120_v19  ;;  %v3860_v35 = vpop.f32.mrb[7].mxu0 }
 0x255   : > { %v4276_v45 = vsel %vm10364_vm1, %v4194_v33, 0.0  ;;  %v4195_v55 = vadd.f32 %v10234_v30, %v4044_v15  ;;  %v4042_v31 = vsel %vm3995_vm4, %v3975_v48, %v4022_v54  ;;  %v8059_v8 = vadd.f32 %v7752_v6, %v10125_v63 }
 0x256   : > { %4326 = vst [vmem:[#allocation2 + $0x19] sm:$0xff] %v4276_v45  ;;  %v4274_v46 = vsel %vm10375_vm3, %v4192_v60, 0.0  ;;  %v4193_v23 = vadd.f32 %v10249_v18, %v4042_v31  ;;  %v3980_v49 = vadd.f32 %v10310_v24, %v3953_v26  ;;  %v3951_v47 = vmul.f32 %v8058_v62, %v10282_v56  ;;  %v8509_v26 = vld [vmem:[%s9903_s29 + $0x8] sm:$0xff]  }
 0x257   : > { %4324 = vst [vmem:[#allocation2 + $0x1] sm:$0xff] %v4274_v46  ;;  %v4277_v19 = vsel %vm10364_vm1, %v4195_v55, 0.0  ;;  %v3954_v22 = vmul.f32 %v8059_v8, %v10282_v56  ;;  %v8060_v30 = vadd.f32 %v3860_v35, %v10127_v29  ;;  %v10400_v63 = vsel %vm4121_vm6, %v4167_v53, %v10345_v1 }
 0x258   : > { %4327 = vst [vmem:[#allocation2 + $0x21] sm:$0xff] %v4277_v19  ;;  %v4275_v18 = vsel %vm10375_vm3, %v4193_v23, 0.0  ;;  %vm4000_vm8 = vcmp.gt.f32.partialorder %v3980_v49, 0.0  ;;  %v4027_v46 = vmul.f32 %v10326_v43, %v3980_v49  ;;  %v3978_v8 = vadd.f32 %v10310_v24, %v3951_v47  ;;  %vm8639_vm3 = vmpackc.low %vm10364_vm1, %vm10364_vm1 }
 0x259   : > { %4325 = vst [vmem:[#allocation2 + $0x9] sm:$0xff] %v4275_v18  ;;  %v3981_v29 = vadd.f32 %v10310_v24, %v3954_v22  ;;  %v3952_v15 = vmul.f32 %v8060_v30, %v10282_v56  ;;  %v7755_v48 = vpop.f32.mrb[8].mxu0  ;;  %vm4228_vm13 = vcmp.ge.s32.totalorder %v10291_v38, 0  ;;  %vm4238_vm14 = vcmp.lt.s32.totalorder %v10291_v38, 16 }
 0x25a   : > { %v4047_v28 = vsel %vm4000_vm8, %v3980_v49, %v4027_v46  ;;  %vm3998_vm10 = vcmp.gt.f32.partialorder %v3978_v8, 0.0  ;;  %v4025_v57 = vmul.f32 %v10326_v43, %v3978_v8  ;;  %v8061_v54 = vadd.f32 %v7755_v48, %v10130_v21  ;;  %v3873_v6 = vpop.f32.mrb[9].mxu0  ;;  %vm10482_vm8 = vmand %vm4229_vm5, %vm4239_vm7 }
 0x25b   : > { %v10422_v62 = vadd.f32 %v10252_v14, %v4047_v28  ;;  %vm4001_vm2 = vcmp.gt.f32.partialorder %v3981_v29, 0.0  ;;  %v4028_v11 = vmul.f32 %v10326_v43, %v3981_v29  ;;  %v3979_v35 = vadd.f32 %v10310_v24, %v3952_v15  ;;  %v7756_v45 = vpop.f32.mrb[10].mxu0  ;;  %v8544_v14 = vld [vmem:[%s9903_s29 + $0x160] sm:$0xff]  }
 0x25c   : > { %v8637_v21 = vpack.c.bf16 %v4193_v23, %v4192_v60  ;;  %v4045_v31 = vsel %vm3998_vm10, %v3978_v8, %v4025_v57  ;;  %v3957_v49 = vmul.f32 %v8061_v54, %v10282_v56  ;;  %v8062_v47 = vadd.f32 %v3873_v6, %v10132_v12  ;;  %v3876_v42 = vpop.f32.mrb[11].mxu0  ;;  %v8546_v57 = vld [vmem:[%s9903_s29 + $0x170] sm:$0xff]  }
 0x25d   : > { %v8063_v19 = vadd.f32 %v7756_v45, %v10134_v34  ;;  %v8640_v60 = vpack.c.bf16 %v4195_v55, %v4194_v33  ;;  %v4280_v25 = vsel %vm10412_vm9, %v10422_v62, 0.0  ;;  %v10447_v23 = vadd.f32 %v10263_v0, %v4045_v31  ;;  %v8510_v55 = vld [vmem:[%s9903_s29 + $0x10] sm:$0xff]  }
 0x25e   : > { %8638 = vmatprep.mubr.msk.bf16.mxu1 %vm8636_vm11, %v8637_v21  ;;  %v4048_v22 = vsel %vm4001_vm2, %v3981_v29, %v4028_v11  ;;  %vm3999_vm15 = vcmp.gt.f32.partialorder %v3979_v35, 0.0  ;;  %4330 = vst [vmem:[#allocation2 + $0x49] sm:$0xff] %v4280_v25  ;;  %v4026_v34 = vmul.f32 %v10326_v43, %v3979_v35  ;;  %v3984_v9 = vadd.f32 %v10310_v24, %v3957_v49  ;;  %v8511_v11 = vld [vmem:[%s9903_s29 + $0x18] sm:$0xff]   ;;  %vm10515_vm11 = vmand %vm4228_vm13, %vm4238_vm14 }
 0x25f   : > { %8641 = vmatmul.mubr.msk.bf16.vlgmr.msra.gmra.mrb[20].mxu1 %vm8639_vm3, %v8640_v60  ;;  %v10452_v12 = vadd.f32 %v10267_v2, %v4048_v22  ;;  %v3955_v33 = vmul.f32 %v8062_v47, %v10282_v56  ;;  %v4278_v0 = vsel %vm10433_vm12, %v10447_v23, 0.0  ;;  %v3958_v30 = vmul.f32 %v8063_v19, %v10282_v56  ;;  %v8547_v47 = vld [vmem:[%s9903_s29 + $0x178] sm:$0xff]  }
 0x260   : > { %7798 = vmatpush3.bf16.msra.mxu1 %v10123_v61  ;;  %v8064_v61 = vadd.f32 %v3876_v42, %v10136_v16  ;;  %v10464_v18 = vadd.s32 8, %v10200_v59  ;;  %4328 = vst [vmem:[#allocation2 + $0x31] sm:$0xff] %v4278_v0  ;;  %v4046_v46 = vsel %vm3999_vm15, %v3979_v35, %v4026_v34  ;;  %vm4004_vm0 = vcmp.gt.f32.partialorder %v3984_v9, 0.0 }
 0x261   : > { %7799 = vmatprep.subr.bf16.mxu1 %v8509_v26  ;;  %v4281_v2 = vsel %vm10412_vm9, %v10452_v12, 0.0  ;;  %v4031_v8 = vmul.f32 %v10326_v43, %v3984_v9  ;;  %vm4231_vm1 = vcmp.ge.s32.totalorder %v10307_v17, 0  ;;  %vm4241_vm4 = vcmp.lt.s32.totalorder %v10307_v17, 16  ;;  %v7759_v48 = vpop.f32.mrb[12].mxu0 }
 0x262   : > { %4331 = vst [vmem:[#allocation2 + $0x51] sm:$0xff] %v4281_v2  ;;  %v10473_v16 = vadd.f32 %v10277_v32, %v4046_v46  ;;  %v3982_v59 = vadd.f32 %v10310_v24, %v3955_v33  ;;  %v3985_v29 = vadd.f32 %v10310_v24, %v3958_v30  ;;  %v3956_v15 = vmul.f32 %v8064_v61, %v10282_v56  ;;  %v3889_v54 = vpop.f32.mrb[13].mxu0 }
 0x263   : > { %v4051_v28 = vsel %vm4004_vm0, %v3984_v9, %v4031_v8  ;;  %v8065_v32 = vadd.f32 %v7759_v48, %v10138_v20  ;;  %v10490_v6 = vsel %vm4121_vm6, %v10352_v41, %v10358_v3  ;;  %vm4230_vm7 = vcmp.ge.s32.totalorder %v10317_v44, 0  ;;  %v7760_v20 = vpop.f32.mrb[14].mxu0  ;;  %v8548_v48 = vld [vmem:[%s9903_s29 + $0x180] sm:$0xff]  }
 0x264   : > { %7800 = vmatpush3.bf16.msra.mxu1 %v8509_v26  ;;  %v10496_v26 = vsel %vm10433_vm12, %v10473_v16, 0.0  ;;  %v10499_v40 = vadd.f32 %v10285_v37, %v4051_v28  ;;  %vm4002_vm5 = vcmp.gt.f32.partialorder %v3982_v59, 0.0  ;;  %v4029_v35 = vmul.f32 %v10326_v43, %v3982_v59  ;;  %v3892_v31 = vpop.f32.mrb[15].mxu0 }
 0x265   : > { %7801 = vmatprep.subr.bf16.mxu1 %v8510_v55  ;;  %vm4240_vm10 = vcmp.lt.s32.totalorder %v10317_v44, 16  ;;  %4329 = vst [vmem:[#allocation2 + $0x39] sm:$0xff] %v10496_v26  ;;  %vm4005_vm2 = vcmp.gt.f32.partialorder %v3985_v29, 0.0  ;;  %v4032_v41 = vmul.f32 %v10326_v43, %v3985_v29  ;;  %v3983_v45 = vadd.f32 %v10310_v24, %v3956_v15  ;;  %v11183_v44 = vld [vmem:[#allocation9_spill] sm:$0xff] }
 0x266   : > { %v3961_v21 = vmul.f32 %v8065_v32, %v10282_v56  ;;  %v4284_v37 = vsel %vm10482_vm8, %v10499_v40, 0.0  ;;  %v4049_v49 = vsel %vm4002_vm5, %v3982_v59, %v4029_v35  ;;  %v8066_v19 = vadd.f32 %v3889_v54, %v10140_v51 }
 0x267   : > { %v8067_v42 = vadd.f32 %v7760_v20, %v10142_v58  ;;  %4334 = vst [vmem:[#allocation2 + $0x79] sm:$0xff] %v4284_v37  ;;  %v10522_v60 = vadd.f32 %v10288_v39, %v4049_v49  ;;  %v4052_v25 = vsel %vm4005_vm2, %v3985_v29, %v4032_v41  ;;  %vm4003_vm3 = vcmp.gt.f32.partialorder %v3983_v45, 0.0  ;;  %v8512_v58 = vld [vmem:[%s9903_s29 + $0x20] sm:$0xff]   ;;  %vm8642_vm2 = vmpackc.low %vm10433_vm12, %vm10433_vm12  ;;  %v8513_v29 = vld [vmem:[%s9903_s29 + $0x28] sm:$0xff]  }
 0x268   : > { %7802 = vmatpush3.bf16.msra.mxu1 %v8510_v55  ;;  %v4030_v22 = vmul.f32 %v10326_v43, %v3983_v45  ;;  %v10526_v38 = vadd.f32 %v10295_v7, %v4052_v25  ;;  %v3988_v34 = vadd.f32 %v10310_v24, %v3961_v21  ;;  %v3959_v9 = vmul.f32 %v8066_v19, %v10282_v56  ;;  %v8514_v21 = vld [vmem:[%s9903_s29 + $0x30] sm:$0xff]  }
 0x269   : > { %7803 = vmatprep.subr.bf16.mxu1 %v8511_v11  ;;  %v3962_v51 = vmul.f32 %v8067_v42, %v10282_v56  ;;  %v10535_v39 = vsel %vm10515_vm11, %v10522_v60, 0.0  ;;  %v8068_v55 = vadd.f32 %v3892_v31, %v10144_v13  ;;  %v7763_v61 = vpop.f32.mrb[16].mxu0  ;;  %vm4233_vm14 = vcmp.ge.s32.totalorder %v10348_v10, 0  ;;  %v11182_v31 = vld [vmem:[#allocation20_spill] sm:$0xff] }
 0x26a   : > { %v4050_v33 = vsel %vm4003_vm3, %v3983_v45, %v4030_v22  ;;  %4332 = vst [vmem:[#allocation2 + $0x61] sm:$0xff] %v10535_v39  ;;  %v4285_v7 = vsel %vm10482_vm8, %v10526_v38, 0.0  ;;  %vm4008_vm13 = vcmp.gt.f32.partialorder %v3988_v34, 0.0  ;;  %v4035_v30 = vmul.f32 %v10326_v43, %v3988_v34  ;;  %v3905_v8 = vpop.f32.mrb[17].mxu0  ;;  %vm10570_vm3 = vmand %vm4231_vm1, %vm4241_vm4 }
 0x26b   : > { %v10543_v0 = vadd.f32 %v10304_v5, %v4050_v33  ;;  %vm4243_vm15 = vcmp.lt.s32.totalorder %v10348_v10, 16  ;;  %4335 = vst [vmem:[#allocation2 + $0x81] sm:$0xff] %v4285_v7  ;;  %v3986_v13 = vadd.f32 %v10310_v24, %v3959_v9  ;;  %v3989_v2 = vadd.f32 %v10310_v24, %v3962_v51  ;;  %v8515_v7 = vld [vmem:[%s9903_s29 + $0x38] sm:$0xff]  }
 0x26c   : > { %7804 = vmatpush3.bf16.msra.mxu1 %v8511_v11  ;;  %v3960_v46 = vmul.f32 %v8068_v55, %v10282_v56  ;;  %v8069_v5 = vadd.f32 %v7763_v61, %v10146_v50  ;;  %vm4232_vm0 = vcmp.ge.s32.totalorder %v10464_v18, 0  ;;  %vm4242_vm5 = vcmp.lt.s32.totalorder %v10464_v18, 16 }
 0x26d   : > { %v8643_v59 = vpack.c.bf16 %v10473_v16, %v10447_v23  ;;  %v10563_v15 = vsel %vm10515_vm11, %v10543_v0, 0.0  ;;  %v4055_v50 = vsel %vm4008_vm13, %v3988_v34, %v4035_v30  ;;  %v8070_v28 = vadd.f32 %v3905_v8, %v10148_v36  ;;  %v7764_v23 = vpop.f32.mrb[18].mxu0  ;;  %7805 = vmatprep.subr.bf16.mxu1 %v8512_v58 }
 0x26e   : > { %v8646_v32 = vpack.c.bf16 %v10452_v12, %v10422_v62  ;;  %4333 = vst [vmem:[#allocation2 + $0x69] sm:$0xff] %v10563_v15  ;;  %v10582_v17 = vadd.f32 %v10314_v27, %v4055_v50  ;;  %vm4006_vm1 = vcmp.gt.f32.partialorder %v3986_v13, 0.0  ;;  %v4033_v54 = vmul.f32 %v10326_v43, %v3986_v13  ;;  %v3908_v36 = vpop.f32.mrb[19].mxu0 }
 0x26f   : > { %8644 = vmatprep.mubr.msk.bf16.mxu1 %vm8642_vm2, %v8643_v59  ;;  %vm8645_vm2 = vmpackc.low %vm10412_vm9, %vm10412_vm9  ;;  %vm4009_vm4 = vcmp.gt.f32.partialorder %v3989_v2, 0.0  ;;  %v4036_v53 = vmul.f32 %v10326_v43, %v3989_v2  ;;  %v3987_v11 = vadd.f32 %v10310_v24, %v3960_v46  ;;  %v3965_v35 = vmul.f32 %v8069_v5, %v10282_v56  ;;  %v11188_v5 = vld [vmem:[#allocation39_spill] sm:$0xff]  ;;  %v4716_v46 = vld [vmem:[#allocation2 + $0xa] sm:$0xff] }
 0x270   : > { %8647 = vmatmul.mubr.msk.bf16.gmra.mrb[24].mxu1 %vm8645_vm2, %v8646_v32  ;;  %v3963_v62 = vmul.f32 %v8070_v28, %v10282_v56  ;;  %v4288_v27 = vsel %vm10570_vm3, %v10582_v17, 0.0  ;;  %v4053_v12 = vsel %vm4006_vm1, %v3986_v13, %v4033_v54  ;;  %vm10596_vm9 = vmand %vm4230_vm7, %vm4240_vm10  ;;  %v8071_v41 = vadd.f32 %v7764_v23, %v10150_v4 }
 0x271   : > { %7806 = vmatpush3.bf16.msra.mxu1 %v8512_v58  ;;  %v8072_v45 = vadd.f32 %v3908_v36, %v10152_v52  ;;  %4338 = vst [vmem:[#allocation2 + $0xa9] sm:$0xff] %v4288_v27  ;;  %v4204_v37 = vadd.f32 %v11182_v31, %v4053_v12  ;;  %v4056_v49 = vsel %vm4009_vm4, %v3989_v2, %v4036_v53  ;;  %vm4007_vm13 = vcmp.gt.f32.partialorder %v3987_v11, 0.0  ;;  %v11184_v58 = vld [vmem:[#allocation21_spill] sm:$0xff]  ;;  %vm8648_vm2 = vmpackc.low %vm10515_vm11, %vm10515_vm11  ;;  %v4344_v53 = vld [vmem:[#allocation2] sm:$0xff] }
 0x272   : > { %7807 = vmatprep.subr.bf16.mxu1 %v8513_v29  ;;  %v4034_v19 = vmul.f32 %v10326_v43, %v3987_v11  ;;  %v10607_v42 = vadd.f32 %v11183_v44, %v4056_v49  ;;  %v3992_v25 = vadd.f32 %v10310_v24, %v3965_v35  ;;  %v3990_v4 = vadd.f32 %v10310_v24, %v3963_v62  ;;  %vm10648_vm1 = vmand %vm4233_vm14, %vm4243_vm15  ;;  %v4347_v27 = vld [vmem:[#allocation2 + $0x20] sm:$0xff]  ;;  %v4349_v12 = vld [vmem:[#allocation2 + $0x38] sm:$0xff] }
 0x273   : > { %v3966_v52 = vmul.f32 %v8071_v41, %v10282_v56  ;;  %v10614_v22 = vsel %vm10596_vm9, %v4204_v37, 0.0  ;;  %v3964_v9 = vmul.f32 %v8072_v45, %v10282_v56  ;;  %v10632_v13 = vpack.c.bf16 %v10543_v0, %v10522_v60  ;;  %v11187_v60 = vld [vmem:[#allocation19_spill] sm:$0xff]  ;;  %vm8651_vm4 = vmpackc.low %vm10482_vm8, %vm10482_vm8  ;;  %v4346_v41 = vld [vmem:[#allocation2 + $0x18] sm:$0xff] }
 0x274   : > { %v4054_v34 = vsel %vm4007_vm13, %v3987_v11, %v4034_v19  ;;  %4336 = vst [vmem:[#allocation2 + $0x91] sm:$0xff] %v10614_v22  ;;  %v4289_v51 = vsel %vm10570_vm3, %v10607_v42, 0.0  ;;  %vm4012_vm7 = vcmp.gt.f32.partialorder %v3992_v25, 0.0  ;;  %v4039_v55 = vmul.f32 %v10326_v43, %v3992_v25  ;;  %v8517_v31 = vld [vmem:[%s9903_s29 + $0x88] sm:$0xff]   ;;  %v4351_v49 = vld [vmem:[#allocation2 + $0x50] sm:$0xff] }
 0x275   : > { %7808 = vmatpush3.bf16.msra.mxu1 %v8513_v29  ;;  %v4205_v33 = vadd.f32 %v11184_v58, %v4054_v34  ;;  %4339 = vst [vmem:[#allocation2 + $0xb1] sm:$0xff] %v4289_v51  ;;  %vm4010_vm10 = vcmp.gt.f32.partialorder %v3990_v4, 0.0  ;;  %v4037_v30 = vmul.f32 %v10326_v43, %v3990_v4  ;;  %v3993_v56 = vadd.f32 %v10310_v24, %v3966_v52  ;;  %v8516_v29 = vld [vmem:[%s9903_s29 + $0x80] sm:$0xff]   ;;  %v4353_v19 = vld [vmem:[#allocation2 + $0x68] sm:$0xff]  ;;  %v4354_v58 = vld [vmem:[#allocation2 + $0x78] sm:$0xff] }
 0x276   : > { %7809 = vmatprep.subr.bf16.mxu1 %v8514_v21  ;;  %v3991_v61 = vadd.f32 %v10310_v24, %v3964_v9  ;;  %8650 = vmatprep.mubr.msk.bf16.mxu1 %vm8648_vm2, %v10632_v13  ;;  %v4059_v24 = vsel %vm4012_vm7, %v3992_v25, %v4039_v55  ;;  %v4171_v0 = vsel %vm4121_vm6, %v10345_v1, %v11187_v60  ;;  %v4350_v44 = vld [vmem:[#allocation2 + $0x48] sm:$0xff]  ;;  %v4352_v25 = vld [vmem:[#allocation2 + $0x60] sm:$0xff]  ;;  %vm8754_vm13 = vmmov 1  }
 0x277   : > { %v10642_v2 = vsel %vm10596_vm9, %v4205_v33, 0.0  ;;  %v4166_v8 = vsel %vm4121_vm6, %v10358_v3, %v11188_v5  ;;  %v10663_v10 = vpack.c.bf16 %v10526_v38, %v10499_v40  ;;  %v4210_v1 = vadd.f32 %v10400_v63, %v4059_v24  ;;  %vm10678_vm6 = vmand %vm4232_vm0, %vm4242_vm5  ;;  %v8520_v34 = vld [vmem:[%s9903_s29 + $0xa0] sm:$0xff]   ;;  %v8523_v5 = vld [vmem:[%s9903_s29 + $0xb8] sm:$0xff]  }
 0x278   : > { %4337 = vst [vmem:[#allocation2 + $0x99] sm:$0xff] %v10642_v2  ;;  %v4057_v3 = vsel %vm4010_vm10, %v3990_v4, %v4037_v30  ;;  %vm4013_vm14 = vcmp.gt.f32.partialorder %v3993_v56, 0.0  ;;  %v4040_v38 = vmul.f32 %v10326_v43, %v3993_v56  ;;  %vm4011_vm15 = vcmp.gt.f32.partialorder %v3991_v61, 0.0  ;;  %vm8654_vm0 = vmpackc.low %vm10596_vm9, %vm10596_vm9  ;;  %v8519_v4 = vld [vmem:[%s9903_s29 + $0x98] sm:$0xff]   ;;  %v4355_v9 = vld [vmem:[#allocation2 + $0x80] sm:$0xff] }
 0x279   : > { %8653 = vmatmul.mubr.msk.bf16.gmra.mrb[28].mxu1 %vm8651_vm4, %v10663_v10  ;;  %v10684_v59 = vadd.f32 %v10490_v6, %v4057_v3  ;;  %v4038_v63 = vmul.f32 %v10326_v43, %v3991_v61  ;;  %v4292_v50 = vsel %vm10648_vm1, %v4210_v1, 0.0  ;;  %v10698_v6 = vpack.c.bf16 %v4205_v33, %v4204_v37  ;;  %v4345_v43 = vld [vmem:[#allocation2 + $0x8] sm:$0xff]  ;;  %vm8657_vm5 = vmpackc.low %vm10570_vm3, %vm10570_vm3  ;;  %v8524_v1 = vld [vmem:[%s9903_s29 + $0xc0] sm:$0xff]  }
 0x27a   : > { %7810 = vmatpush3.bf16.msra.mxu1 %v8514_v21  ;;  %v4060_v18 = vsel %vm4013_vm14, %v3993_v56, %v4040_v38  ;;  %4342 = vst [vmem:[#allocation2 + $0xd9] sm:$0xff] %v4292_v50  ;;  %v4360_v35 = vpack.c.bf16 %v4345_v43, %v4344_v53  ;;  %v10722_v62 = vpack.c.bf16 %v10607_v42, %v10582_v17  ;;  %v4348_v21 = vld [vmem:[#allocation2 + $0x30] sm:$0xff]  ;;  %v4715_v24 = vld [vmem:[#allocation2 + $0x2] sm:$0xff]  ;;  %v4717_v3 = vld [vmem:[#allocation2 + $0x1a] sm:$0xff] }
 0x27b   : > { %7811 = vmatprep.subr.bf16.mxu1 %v8515_v7  ;;  %v10693_v28 = vsel %vm10678_vm6, %v10684_v59, 0.0  ;;  %v4211_v23 = vadd.f32 %v4171_v0, %v4060_v18  ;;  %v4058_v32 = vsel %vm4011_vm15, %v3991_v61, %v4038_v63  ;;  %8656 = vmatprep.mubr.msk.bf16.mxu1 %vm8654_vm0, %v10698_v6  ;;  %v10730_v45 = vpack.c.bf16 %v4347_v27, %v4346_v41  ;;  %v8518_v17 = vld [vmem:[%s9903_s29 + $0x90] sm:$0xff]   ;;  %v4358_v60 = vld [vmem:[#allocation2 + $0xa8] sm:$0xff]  ;;  %vm8660_vm7 = vmpackc.low %vm10433_vm12, %vm8754_vm13 }
 0x27c   : > { %4340 = vst [vmem:[#allocation2 + $0xc1] sm:$0xff] %v10693_v28  ;;  %v10707_v54 = vadd.f32 %v4166_v8, %v4058_v32  ;;  %v10733_v37 = vpack.c.bf16 %v4349_v12, %v4348_v21  ;;  %v10738_v42 = vpack.c.bf16 %v4351_v49, %v4350_v44  ;;  %v10741_v52 = vpack.c.bf16 %v4353_v19, %v4352_v25  ;;  %v4356_v55 = vld [vmem:[#allocation2 + $0x90] sm:$0xff]  ;;  %v4718_v38 = vld [vmem:[#allocation2 + $0x22] sm:$0xff]  ;;  %v8527_v12 = vld [vmem:[%s9903_s29 + $0xd8] sm:$0xff]  }
 0x27d   : > { %v4293_v36 = vsel %vm10648_vm1, %v4211_v23, 0.0  ;;  %v10746_v33 = vpack.c.bf16 %v4355_v9, %v4354_v58  ;;  %v8522_v56 = vld [vmem:[%s9903_s29 + $0xb0] sm:$0xff]   ;;  %v4731_v8 = vpack.c.bf16 %v4716_v46, %v4715_v24  ;;  %v10759_v50 = vpack.c.bf16 %v4718_v38, %v4717_v3  ;;  %v8525_v18 = vld [vmem:[%s9903_s29 + $0xc8] sm:$0xff]   ;;  %v8528_v21 = vld [vmem:[%s9903_s29 + $0xe0] sm:$0xff]  }
 0x27e   : > { %7812 = vmatpush3.bf16.msra.mxu1 %v8515_v7  ;;  %4343 = vst [vmem:[#allocation2 + $0xe1] sm:$0xff] %v4293_v36  ;;  %v10714_v11 = vsel %vm10678_vm6, %v10707_v54, 0.0  ;;  %v8521_v7 = vld [vmem:[%s9903_s29 + $0xa8] sm:$0xff]   ;;  %v4359_v61 = vld [vmem:[#allocation2 + $0xb0] sm:$0xff]  ;;  %v8535_v24 = vld [vmem:[%s9903_s29 + $0x118] sm:$0xff]   ;;  %v8676_v20 = vpack.c.bf16 %v10707_v54, %v10684_v59 }
 0x27f   : > { %7829 = vmatprep.subr.bf16.mxu1 %v8516_v29  ;;  %4341 = vst [vmem:[#allocation2 + $0xc9] sm:$0xff] %v10714_v11  ;;  %v4357_v51 = vld [vmem:[#allocation2 + $0x98] sm:$0xff]  ;;  %v10754_v0 = vpack.c.bf16 %v4359_v61, %v4358_v60  ;;  %v8526_v32 = vld [vmem:[%s9903_s29 + $0xd0] sm:$0xff]   ;;  %v4723_v53 = vld [vmem:[#allocation2 + $0x62] sm:$0xff] }
 0x280   : > { %v10749_v30 = vpack.c.bf16 %v4357_v51, %v4356_v55  ;;  %v4719_v63 = vld [vmem:[#allocation2 + $0x32] sm:$0xff]  ;;  %v4721_v43 = vld [vmem:[#allocation2 + $0x4a] sm:$0xff]  ;;  %v4728_v19 = vld [vmem:[#allocation2 + $0x9a] sm:$0xff] }
 0x281   : > { %8659 = vmatmul.mubr.msk.bf16.gmra.mrb[32].mxu1 %vm8657_vm5, %v10722_v62  ;;  %v4722_v36 = vld [vmem:[#allocation2 + $0x52] sm:$0xff]  ;;  %v8529_v25 = vld [vmem:[%s9903_s29 + $0xe8] sm:$0xff]   ;;  %vm8675_vm12 = vmpackc.low %vm10678_vm6, %vm10678_vm6 }
 0x282   : > { %7813 = vmatprep.mubr.bf16.mxu1 %v4360_v35  ;;  %v4724_v35 = vld [vmem:[#allocation2 + $0x6a] sm:$0xff]  ;;  %v10767_v27 = vpack.c.bf16 %v4722_v36, %v4721_v43  ;;  %v4727_v49 = vld [vmem:[#allocation2 + $0x92] sm:$0xff]  ;;  %v8552_v59 = vld [vmem:[%s9903_s29 + $0x1a0] sm:$0xff]  }
 0x283   : > { %v10770_v41 = vpack.c.bf16 %v4724_v35, %v4723_v53  ;;  %v4729_v9 = vld [vmem:[#allocation2 + $0xaa] sm:$0xff]  ;;  %v4730_v51 = vld [vmem:[#allocation2 + $0xb2] sm:$0xff] }
 0x284   : > { %v10783_v58 = vpack.c.bf16 %v4730_v51, %v4729_v9  ;;  %v8531_v55 = vld [vmem:[%s9903_s29 + $0xf8] sm:$0xff]   ;;  %v8534_v61 = vld [vmem:[%s9903_s29 + $0x110] sm:$0xff]   ;;  %v8537_v46 = vld [vmem:[%s9903_s29 + $0x128] sm:$0xff]  }
 0x285   : > { %v8538_v60 = vld [vmem:[%s9903_s29 + $0x130] sm:$0xff]   ;;  %v10805_v38 = vld [vmem:[#allocation2 + $0x19] sm:$0xff]  ;;  %v8541_v53 = vld [vmem:[%s9903_s29 + $0x148] sm:$0xff]  }
 0x286   : > { %v10814_v43 = vld [vmem:[#allocation2 + $0x51] sm:$0xff]  ;;  %v10816_v36 = vld [vmem:[#allocation2 + $0x49] sm:$0xff]  ;;  %v5540_v51 = vld [vmem:[#allocation2 + $0xe0] sm:$0xff] }
 0x287   : > { %v10821_v35 = vpack.c.bf16 %v10814_v43, %v10816_v36  ;;  %v8551_v40 = vld [vmem:[%s9903_s29 + $0x198] sm:$0xff]   ;;  %v8554_v54 = vld [vmem:[%s9903_s29 + $0x1b0] sm:$0xff]  }
 0x288   : > { %v8559_v9 = vld [vmem:[%s9903_s29 + $0x1d8] sm:$0xff]  }
 0x289   : > { %7814 = vmatmul.mubr.bf16.vlgmr.msra.gmra.mrb[20].mxu1 %v10730_v45 }
 0x28a   : > { %7817 = vmatprep.mubr.bf16.mxu1 %v10733_v37  ;;  %7830 = vmatpush3.bf16.msra.mxu1 %v8516_v29  ;;  %v4720_v29 = vld [vmem:[#allocation2 + $0x3a] sm:$0xff] }
 0x28b   : > { %7831 = vmatprep.subr.bf16.mxu1 %v8517_v31  ;;  %v10762_v23 = vpack.c.bf16 %v4720_v29, %v4719_v63  ;;  %v8539_v63 = vld [vmem:[%s9903_s29 + $0x138] sm:$0xff]  }
 0x28e   : > { %7832 = vmatpush3.bf16.msra.mxu1 %v8517_v31  ;;  %v4725_v31 = vld [vmem:[#allocation2 + $0x7a] sm:$0xff] }
 0x28f   : > { %7833 = vmatprep.subr.bf16.mxu1 %v8518_v17 }
 0x291   : > { %7818 = vmatmul.mubr.bf16.gmra.mrb[24].mxu1 %v10738_v42 }
 0x292   : > { %7821 = vmatprep.mubr.bf16.mxu1 %v10741_v52  ;;  %7834 = vmatpush3.bf16.msra.mxu1 %v8518_v17  ;;  %v4726_v17 = vld [vmem:[#allocation2 + $0x82] sm:$0xff] }
 0x293   : > { %7835 = vmatprep.subr.bf16.mxu1 %v8519_v4  ;;  %v10775_v44 = vpack.c.bf16 %v4726_v17, %v4725_v31  ;;  %v8543_v31 = vld [vmem:[%s9903_s29 + $0x158] sm:$0xff]  }
 0x296   : > { %7836 = vmatpush3.bf16.msra.mxu1 %v8519_v4  ;;  %v10778_v4 = vpack.c.bf16 %v4728_v19, %v4727_v49  ;;  %v8555_v49 = vld [vmem:[%s9903_s29 + $0x1b8] sm:$0xff]   ;;  %v8556_v19 = vld [vmem:[%s9903_s29 + $0x1c0] sm:$0xff]  }
 0x297   : > { %7837 = vmatprep.subr.bf16.mxu1 %v8520_v34 }
 0x299   : > { %7822 = vmatmul.mubr.bf16.gmra.mrb[28].mxu1 %v10746_v33 }
 0x29a   : > { %7825 = vmatprep.mubr.bf16.mxu1 %v10749_v30  ;;  %7838 = vmatpush3.bf16.msra.mxu1 %v8520_v34  ;;  %v8530_v34 = vld [vmem:[%s9903_s29 + $0xf0] sm:$0xff]  }
 0x29b   : > { %7839 = vmatprep.subr.bf16.mxu1 %v8521_v7 }
 0x29e   : > { %7840 = vmatpush3.bf16.msra.mxu1 %v8521_v7  ;;  %v8532_v7 = vld [vmem:[%s9903_s29 + $0x100] sm:$0xff]  }
 0x29f   : > { %7841 = vmatprep.subr.bf16.mxu1 %v8522_v56 }
 0x2a1   : > { %7826 = vmatmul.mubr.bf16.gmra.mrb[32].mxu1 %v10754_v0 }
 0x2a2   : > { %7842 = vmatpush3.bf16.msra.mxu1 %v8522_v56  ;;  %7845 = vmatprep.mubr.bf16.mxu1 %v4731_v8  ;;  %v8533_v56 = vld [vmem:[%s9903_s29 + $0x108] sm:$0xff]  }
 0x2a3   : > { %7843 = vmatprep.subr.bf16.mxu1 %v8523_v5  ;;  %v10801_v8 = vld [vmem:[#allocation2 + $0x21] sm:$0xff] }
 0x2a4   : > { %v5136_v29 = vpack.c.bf16 %v10801_v8, %v10805_v38 }
 0x2a6   : > { %7844 = vmatpush3.bf16.msra.mxu1 %v8523_v5  ;;  %v4933_v5 = vld [vmem:[#allocation2 + $0xc8] sm:$0xff] }
 0x2a7   : > { %7861 = vmatprep.subr.bf16.mxu1 %v8524_v1 }
 0x2a9   : > { %7846 = vmatmul.mubr.bf16.vlgmr.msra.gmra.mrb[20].mxu1 %v10759_v50 }
 0x2aa   : > { %7849 = vmatprep.mubr.bf16.mxu1 %v10762_v23  ;;  %7862 = vmatpush3.bf16.msra.mxu1 %v8524_v1  ;;  %v4932_v1 = vld [vmem:[#allocation2 + $0xc0] sm:$0xff] }
 0x2ab   : > { %7863 = vmatprep.subr.bf16.mxu1 %v8525_v18  ;;  %v10803_v3 = vpack.c.bf16 %v4933_v5, %v4932_v1  ;;  %v5734_v5 = vld [vmem:[#allocation2 + $0x81] sm:$0xff]  ;;  %v5736_v1 = vld [vmem:[#allocation2 + $0x99] sm:$0xff] }
 0x2ae   : > { %7864 = vmatpush3.bf16.msra.mxu1 %v8525_v18  ;;  %v8540_v18 = vld [vmem:[%s9903_s29 + $0x140] sm:$0xff]  }
 0x2af   : > { %7865 = vmatprep.subr.bf16.mxu1 %v8526_v32 }
 0x2b1   : > { %7850 = vmatmul.mubr.bf16.gmra.mrb[24].mxu1 %v10767_v27 }
 0x2b2   : > { %7853 = vmatprep.mubr.bf16.mxu1 %v10770_v41  ;;  %7866 = vmatpush3.bf16.msra.mxu1 %v8526_v32  ;;  %v10812_v32 = vld [vmem:[#allocation2 + $0x31] sm:$0xff] }
 0x2b3   : > { %7867 = vmatprep.subr.bf16.mxu1 %v8527_v12 }
 0x2b6   : > { %7868 = vmatpush3.bf16.msra.mxu1 %v8527_v12  ;;  %v8661_v12 = vpack.c.bf16 %v10473_v16, %v10812_v32  ;;  %v8545_v16 = vld [vmem:[%s9903_s29 + $0x168] sm:$0xff]  }
 0x2b7   : > { %7869 = vmatprep.subr.bf16.mxu1 %v8528_v21 }
 0x2b9   : > { %7854 = vmatmul.mubr.bf16.gmra.mrb[28].mxu1 %v10775_v44 }
 0x2ba   : > { %7857 = vmatprep.mubr.bf16.mxu1 %v10778_v4  ;;  %7870 = vmatpush3.bf16.msra.mxu1 %v8528_v21  ;;  %v8542_v21 = vld [vmem:[%s9903_s29 + $0x150] sm:$0xff]  }
 0x2bb   : > { %7871 = vmatprep.subr.bf16.mxu1 %v8529_v25 }
 0x2be   : > { %7872 = vmatpush3.bf16.msra.mxu1 %v8529_v25  ;;  %v8557_v25 = vld [vmem:[%s9903_s29 + $0x1c8] sm:$0xff]  }
 0x2bf   : > { %7873 = vmatprep.subr.bf16.mxu1 %v8530_v34 }
 0x2c1   : > { %7858 = vmatmul.mubr.bf16.gmra.mrb[32].mxu1 %v10783_v58 }
 0x2c2   : > { %7874 = vmatpush3.bf16.msra.mxu1 %v8530_v34  ;;  %7877 = vmatprep.mubr.bf16.mxu1 %v10730_v45  ;;  %v8536_v45 = vld [vmem:[%s9903_s29 + $0x120] sm:$0xff]   ;;  %v8558_v34 = vld [vmem:[%s9903_s29 + $0x1d0] sm:$0xff]  }
 0x2c3   : > { %7875 = vmatprep.subr.bf16.mxu1 %v8531_v55 }
 0x2c6   : > { %7876 = vmatpush3.bf16.msra.mxu1 %v8531_v55  ;;  %v5728_v55 = vld [vmem:[#allocation2 + $0x39] sm:$0xff] }
 0x2c7   : > { %7893 = vmatprep.subr.bf16.mxu1 %v8532_v7 }
 0x2c9   : > { %7878 = vmatmul.mubr.bf16.vlgmr.msra.gmra.mrb[20].mxu1 %v10733_v37 }
 0x2ca   : > { %7881 = vmatprep.mubr.bf16.mxu1 %v10738_v42  ;;  %7894 = vmatpush3.bf16.msra.mxu1 %v8532_v7  ;;  %v8563_v7 = vld [vmem:[%s9903_s29 + $0x1f8] sm:$0xff]  }
 0x2cb   : > { %7895 = vmatprep.subr.bf16.mxu1 %v8533_v56 }
 0x2ce   : > { %7896 = vmatpush3.bf16.msra.mxu1 %v8533_v56  ;;  %v5743_v56 = vpack.c.bf16 %v5728_v55, %v10812_v32  ;;  %v10945_v55 = vstv %s6248_s1 }
 0x2cf   : > { %7897 = vmatprep.subr.bf16.mxu1 %v8534_v61 }
 0x2d1   : > { %7882 = vmatmul.mubr.bf16.gmra.mrb[24].mxu1 %v10741_v52 }
 0x2d2   : > { %7885 = vmatprep.mubr.bf16.mxu1 %v10746_v33  ;;  %7898 = vmatpush3.bf16.msra.mxu1 %v8534_v61  ;;  %v5732_v61 = vld [vmem:[#allocation2 + $0x69] sm:$0xff] }
 0x2d3   : > { %7899 = vmatprep.subr.bf16.mxu1 %v8535_v24 }
 0x2d6   : > { %7900 = vmatpush3.bf16.msra.mxu1 %v8535_v24  ;;  %v5731_v24 = vld [vmem:[#allocation2 + $0x61] sm:$0xff] }
 0x2d7   : > { %7901 = vmatprep.subr.bf16.mxu1 %v8536_v45 }
 0x2d9   : > { %7886 = vmatmul.mubr.bf16.gmra.mrb[28].mxu1 %v10749_v30 }
 0x2da   : > { %7889 = vmatprep.mubr.bf16.mxu1 %v10754_v0  ;;  %7902 = vmatpush3.bf16.msra.mxu1 %v8536_v45  ;;  %v8565_v45 = vld [vmem:[%s9903_s29 + $0x208] sm:$0xff]  }
 0x2db   : > { %7903 = vmatprep.subr.bf16.mxu1 %v8537_v46 }
 0x2de   : > { %7904 = vmatpush3.bf16.msra.mxu1 %v8537_v46  ;;  %v5745_v46 = vpack.c.bf16 %v5732_v61, %v5731_v24 }
 0x2df   : > { %7905 = vmatprep.subr.bf16.mxu1 %v8538_v60 }
 0x2e1   : > { %7890 = vmatmul.mubr.bf16.gmra.mrb[32].mxu1 %v10803_v3 }
 0x2e2   : > { %7906 = vmatpush3.bf16.msra.mxu1 %v8538_v60  ;;  %7909 = vmatprep.mubr.bf16.mxu1 %v5136_v29  ;;  %v8566_v60 = vld [vmem:[%s9903_s29 + $0x210] sm:$0xff]  }
 0x2e3   : > { %7907 = vmatprep.subr.bf16.mxu1 %v8539_v63  ;;  %v5735_v29 = vld [vmem:[#allocation2 + $0x91] sm:$0xff] }
 0x2e6   : > { %7908 = vmatpush3.bf16.msra.mxu1 %v8539_v63 }
 0x2e7   : > { %7925 = vmatprep.subr.bf16.mxu1 %v8540_v18 }
 0x2e9   : > { %8662 = vmatmul.mubr.msk.bf16.vlgmr.msra.gmra.mrb[20].mxu1 %vm8660_vm7, %v8661_v12  ;;  %v5738_v12 = vld [vmem:[#allocation2 + $0xb1] sm:$0xff] }
 0x2ea   : > { %7913 = vmatprep.mubr.bf16.mxu1 %v10821_v35  ;;  %7926 = vmatpush3.bf16.msra.mxu1 %v8540_v18  ;;  %v8567_v18 = vld [vmem:[%s9903_s29 + $0x218] sm:$0xff]  }
 0x2eb   : > { %7927 = vmatprep.subr.bf16.mxu1 %v8541_v53 }
 0x2ee   : > { %7928 = vmatpush3.bf16.msra.mxu1 %v8541_v53  ;;  %v5747_v53 = vpack.c.bf16 %v5736_v1, %v5735_v29 }
 0x2ef   : > { %7929 = vmatprep.subr.bf16.mxu1 %v8542_v21 }
 0x2f1   : > { %8665 = vmatmul.mubr.msk.bf16.gmra.mrb[24].mxu1 %vm8648_vm2, %v10632_v13  ;;  %v8549_v13 = vld [vmem:[%s9903_s29 + $0x188] sm:$0xff]  }
 0x2f2   : > { %8668 = vmatprep.mubr.msk.bf16.mxu1 %vm8651_vm4, %v10663_v10  ;;  %7930 = vmatpush3.bf16.msra.mxu1 %v8542_v21  ;;  %v8550_v10 = vld [vmem:[%s9903_s29 + $0x190] sm:$0xff]  }
 0x2f3   : > { %7931 = vmatprep.subr.bf16.mxu1 %v8543_v31  ;;  %v5740_v21 = vld [vmem:[#allocation2 + $0xc9] sm:$0xff] }
 0x2f6   : > { %7932 = vmatpush3.bf16.msra.mxu1 %v8543_v31  ;;  %v5737_v31 = vld [vmem:[#allocation2 + $0xa9] sm:$0xff] }
 0x2f7   : > { %7933 = vmatprep.subr.bf16.mxu1 %v8544_v14 }
 0x2f9   : > { %8671 = vmatmul.mubr.msk.bf16.gmra.mrb[28].mxu1 %vm8654_vm0, %v10698_v6  ;;  %v8553_v6 = vld [vmem:[%s9903_s29 + $0x1a8] sm:$0xff]  }
 0x2fa   : > { %8674 = vmatprep.mubr.msk.bf16.mxu1 %vm8657_vm5, %v10722_v62  ;;  %7934 = vmatpush3.bf16.msra.mxu1 %v8544_v14  ;;  %v5336_v62 = vld [vmem:[#allocation2 + $0xc2] sm:$0xff]  ;;  %v5748_v14 = vpack.c.bf16 %v5738_v12, %v5737_v31 }
 0x2fb   : > { %7935 = vmatprep.subr.bf16.mxu1 %v8545_v16 }
 0x2fe   : > { %7936 = vmatpush3.bf16.msra.mxu1 %v8545_v16  ;;  %v5739_v16 = vld [vmem:[#allocation2 + $0xc1] sm:$0xff] }
 0x2ff   : > { %7937 = vmatprep.subr.bf16.mxu1 %v8546_v57 }
 0x301   : > { %8677 = vmatmul.mubr.msk.bf16.gmra.mrb[32].mxu1 %vm8675_vm12, %v8676_v20  ;;  %v8570_v20 = vld [vmem:[%s9903_s29 + $0x230] sm:$0xff]  }
 0x302   : > { %7938 = vmatpush3.bf16.msra.mxu1 %v8546_v57  ;;  %7941 = vmatprep.mubr.bf16.mxu1 %v10759_v50  ;;  %v5337_v50 = vld [vmem:[#allocation2 + $0xca] sm:$0xff] }
 0x303   : > { %7939 = vmatprep.subr.bf16.mxu1 %v8547_v47  ;;  %v10877_v17 = vpack.c.bf16 %v5337_v50, %v5336_v62  ;;  %v8569_v57 = vld [vmem:[%s9903_s29 + $0x228] sm:$0xff]  }
 0x306   : > { %7940 = vmatpush3.bf16.msra.mxu1 %v8547_v47  ;;  %v5749_v47 = vpack.c.bf16 %v5740_v21, %v5739_v16 }
 0x307   : > { %7957 = vmatprep.subr.bf16.mxu1 %v8548_v48 }
 0x309   : > { %7942 = vmatmul.mubr.bf16.vlgmr.msra.gmra.mrb[20].mxu1 %v10762_v23 }
 0x30a   : > { %7945 = vmatprep.mubr.bf16.mxu1 %v10767_v27  ;;  %7958 = vmatpush3.bf16.msra.mxu1 %v8548_v48  ;;  %v5742_v48 = vld [vmem:[#allocation2 + $0xe1] sm:$0xff] }
 0x30b   : > { %7959 = vmatprep.subr.bf16.mxu1 %v8549_v13 }
 0x30e   : > { %7960 = vmatpush3.bf16.msra.mxu1 %v8549_v13  ;;  %v5741_v13 = vld [vmem:[#allocation2 + $0xd9] sm:$0xff] }
 0x30f   : > { %7961 = vmatprep.subr.bf16.mxu1 %v8550_v10 }
 0x311   : > { %7946 = vmatmul.mubr.bf16.gmra.mrb[24].mxu1 %v10770_v41 }
 0x312   : > { %7949 = vmatprep.mubr.bf16.mxu1 %v10775_v44  ;;  %7962 = vmatpush3.bf16.msra.mxu1 %v8550_v10  ;;  %v5750_v10 = vpack.c.bf16 %v5742_v48, %v5741_v13 }
 0x313   : > { %7963 = vmatprep.subr.bf16.mxu1 %v8551_v40 }
 0x316   : > { %7964 = vmatpush3.bf16.msra.mxu1 %v8551_v40  ;;  %v8571_v40 = vld [vmem:[%s9903_s29 + $0x238] sm:$0xff]  }
 0x317   : > { %7965 = vmatprep.subr.bf16.mxu1 %v8552_v59 }
 0x319   : > { %7950 = vmatmul.mubr.bf16.gmra.mrb[28].mxu1 %v10778_v4 }
 0x31a   : > { %7953 = vmatprep.mubr.bf16.mxu1 %v10783_v58  ;;  %7966 = vmatpush3.bf16.msra.mxu1 %v8552_v59  ;;  %v5943_v59 = vld [vmem:[#allocation2 + $0xda] sm:$0xff] }
 0x31b   : > { %7967 = vmatprep.subr.bf16.mxu1 %v8553_v6 }
 0x31e   : > { %7968 = vmatpush3.bf16.msra.mxu1 %v8553_v6  ;;  %v5944_v6 = vld [vmem:[#allocation2 + $0xe2] sm:$0xff] }
 0x31f   : > { %7969 = vmatprep.subr.bf16.mxu1 %v8554_v54 }
 0x321   : > { %7954 = vmatmul.mubr.bf16.gmra.mrb[32].mxu1 %v10877_v17 }
 0x322   : > { %7970 = vmatpush3.bf16.msra.mxu1 %v8554_v54  ;;  %7973 = vmatprep.mubr.bf16.mxu1 %v10733_v37  ;;  %v8560_v37 = vld [vmem:[%s9903_s29 + $0x1e0] sm:$0xff]   ;;  %v5952_v54 = vpack.c.bf16 %v5944_v6, %v5943_v59 }
 0x323   : > { %7971 = vmatprep.subr.bf16.mxu1 %v8555_v49 }
 0x326   : > { %7972 = vmatpush3.bf16.msra.mxu1 %v8555_v49 }
 0x327   : > { %7989 = vmatprep.subr.bf16.mxu1 %v8556_v19 }
 0x329   : > { %7974 = vmatmul.mubr.bf16.vlgmr.msra.gmra.mrb[20].mxu1 %v10738_v42  ;;  %v8561_v42 = vld [vmem:[%s9903_s29 + $0x1e8] sm:$0xff]  }
 0x32a   : > { %7977 = vmatprep.mubr.bf16.mxu1 %v10741_v52  ;;  %7990 = vmatpush3.bf16.msra.mxu1 %v8556_v19  ;;  %v8562_v52 = vld [vmem:[%s9903_s29 + $0x1f0] sm:$0xff]  }
 0x32b   : > { %7991 = vmatprep.subr.bf16.mxu1 %v8557_v25 }
 0x32e   : > { %7992 = vmatpush3.bf16.msra.mxu1 %v8557_v25 }
 0x32f   : > { %7993 = vmatprep.subr.bf16.mxu1 %v8558_v34 }
 0x331   : > { %7978 = vmatmul.mubr.bf16.gmra.mrb[24].mxu1 %v10746_v33  ;;  %v5539_v33 = vld [vmem:[#allocation2 + $0xd8] sm:$0xff] }
 0x332   : > { %7981 = vmatprep.mubr.bf16.mxu1 %v10749_v30  ;;  %7994 = vmatpush3.bf16.msra.mxu1 %v8558_v34  ;;  %v5548_v30 = vpack.c.bf16 %v5540_v51, %v5539_v33 }
 0x333   : > { %7995 = vmatprep.subr.bf16.mxu1 %v8559_v9 }
 0x336   : > { %7996 = vmatpush3.bf16.msra.mxu1 %v8559_v9 }
 0x337   : > { %7997 = vmatprep.subr.bf16.mxu1 %v8560_v37 }
 0x339   : > { %7982 = vmatmul.mubr.bf16.gmra.mrb[28].mxu1 %v10754_v0  ;;  %v8564_v0 = vld [vmem:[%s9903_s29 + $0x200] sm:$0xff]  }
 0x33a   : > { %7985 = vmatprep.mubr.bf16.mxu1 %v10803_v3  ;;  %7998 = vmatpush3.bf16.msra.mxu1 %v8560_v37  ;;  %v5733_v3 = vld [vmem:[#allocation2 + $0x79] sm:$0xff] }
 0x33b   : > { %7999 = vmatprep.subr.bf16.mxu1 %v8561_v42  ;;  %v5746_v63 = vpack.c.bf16 %v5734_v5, %v5733_v3 }
 0x33e   : > { %8000 = vmatpush3.bf16.msra.mxu1 %v8561_v42 }
 0x33f   : > { %8001 = vmatprep.subr.bf16.mxu1 %v8562_v52 }
 0x341   : > { %7986 = vmatmul.mubr.bf16.gmra.mrb[32].mxu1 %v5548_v30 }
 0x342   : > { %8002 = vmatpush3.bf16.msra.mxu1 %v8562_v52  ;;  %8005 = vmatprep.mubr.bf16.mxu1 %v5743_v56 }
 0x343   : > { %8003 = vmatprep.subr.bf16.mxu1 %v8563_v7 }
 0x346   : > { %8004 = vmatpush3.bf16.msra.mxu1 %v8563_v7 }
 0x347   : > { %8021 = vmatprep.subr.bf16.mxu1 %v8564_v0 }
 0x349   : > { %8006 = vmatmul.mubr.bf16.vlgmr.msra.gmra.mrb[20].mxu1 %v10821_v35  ;;  %v8568_v35 = vld [vmem:[%s9903_s29 + $0x220] sm:$0xff]   ;;  %s579_s29 = sld [smem:[#allocation4 + %s8737_s23]]  ;;  %s6484_s23 = sshll.u32 %s596_s14, 3 }
 0x34a   : > { %8009 = vmatprep.mubr.bf16.mxu1 %v5745_v46  ;;  %8022 = vmatpush3.bf16.msra.mxu1 %v8564_v0  ;;  %s10953_s18 = scalar_lea.vmem %s11060_s11, %s6484_s23 }
 0x34b   : > { %8023 = vmatprep.subr.bf16.mxu1 %v8565_v45 }
 0x34e   : > { %8024 = vmatpush3.bf16.msra.mxu1 %v8565_v45 }
 0x34f   : > { %8025 = vmatprep.subr.bf16.mxu1 %v8566_v60  ;;  %p580_p1 = scmp.lt.s32.totalorder %s579_s29, 1 }
 0x351   : > { %8010 = vmatmul.mubr.bf16.gmra.mrb[24].mxu1 %v5746_v63  ;;  %s11214_s29 = smov (!%p580_p1, %s579_s29), 1 }
 0x352   : > { %8013 = vmatprep.mubr.bf16.mxu1 %v5747_v53  ;;  %8026 = vmatpush3.bf16.msra.mxu1 %v8566_v60  ;;  %s582_s26 = scalar_lea.vmem %s11057_s8, %s11214_s29 }
 0x353   : > { %8027 = vmatprep.subr.bf16.mxu1 %v8567_v18 }
 0x356   : > { %8028 = vmatpush3.bf16.msra.mxu1 %v8567_v18 }
 0x357   : > { %8029 = vmatprep.subr.bf16.mxu1 %v8568_v35 }
 0x359   : > { %8014 = vmatmul.mubr.bf16.gmra.mrb[28].mxu1 %v5748_v14 }
 0x35a   : > { %8017 = vmatprep.mubr.bf16.mxu1 %v5749_v47  ;;  %8030 = vmatpush3.bf16.msra.mxu1 %v8568_v35 }
 0x35b   : > { %8031 = vmatprep.subr.bf16.mxu1 %v8569_v57 }
 0x35e   : > { %8032 = vmatpush3.bf16.msra.mxu1 %v8569_v57 }
 0x35f   : > { %8033 = vmatprep.subr.bf16.mxu1 %v8570_v20 }
 0x361   : > { %8018 = vmatmul.mubr.bf16.gmra.mrb[32].mxu1 %v5750_v10 }
 0x362   : > { %8034 = vmatpush3.bf16.msra.mxu1 %v8570_v20  ;;  %8037 = vmatprep.mubr.bf16.mxu1 %v10762_v23  ;;  %v10924_v23 = vld [vmem:[%s577_s17] ss:$0 sm:$0xff] }
 0x363   : > { %8035 = vmatprep.subr.bf16.mxu1 %v8571_v40 }
 0x366   : > { %8036 = vmatpush3.bf16.msra.mxu1 %v8571_v40 }
 0x369   : > { %8038 = vmatmul.mubr.bf16.vlgmr.msra.gmra.mrb[20].mxu1 %v10767_v27 }
 0x36a   : > { %8041 = vmatprep.mubr.bf16.mxu1 %v10770_v41  ;;  %v10931_v41 = vld [vmem:[%s582_s26] ss:$0 sm:$0xff] }
 0x371   : > { %8042 = vmatmul.mubr.bf16.gmra.mrb[24].mxu1 %v10775_v44 }
 0x372   : > { %8045 = vmatprep.mubr.bf16.mxu1 %v10778_v4 }
 0x379   : > { %8046 = vmatmul.mubr.bf16.gmra.mrb[28].mxu1 %v10783_v58  ;;  %v10934_v58 = vld [vmem:[%s587_s22] ss:$0 sm:$0xff] }
 0x37a   : > { %8049 = vmatprep.mubr.bf16.mxu1 %v10877_v17 }
 0x381   : > { %8050 = vmatmul.mubr.bf16.gmra.mrb[32].mxu1 %v5952_v54 }
 0x43c   : > { %v8039_v27 = vpop.f32.mrb[20].mxu1 }
 0x43d   : > { %v6140_v44 = vmul.f32 %v8039_v27, %v10924_v23  ;;  %v6052_v4 = vpop.f32.mrb[21].mxu1 }
 0x43e   : > { %v6138_v62 = vmul.f32 %v10924_v23, %v6052_v4  ;;  %v8040_v50 = vpop.f32.mrb[22].mxu1 }
 0x43f   : > { %v6163_v17 = vadd.f32 %v10931_v41, %v6140_v44  ;;  %v6141_v49 = vmul.f32 %v8040_v50, %v10924_v23  ;;  %v6055_v19 = vpop.f32.mrb[23].mxu1 }
 0x440   : > { %v6161_v25 = vadd.f32 %v10931_v41, %v6138_v62  ;;  %v6139_v34 = vmul.f32 %v10924_v23, %v6055_v19 }
 0x441   : > { %vm6179_vm8 = vcmp.gt.f32.partialorder %v6163_v17, 0.0  ;;  %v6202_v9 = vmul.f32 %v10934_v58, %v6163_v17  ;;  %v6164_v37 = vadd.f32 %v10931_v41, %v6141_v49 }
 0x442   : > { %vm6177_vm11 = vcmp.gt.f32.partialorder %v6161_v25, 0.0  ;;  %v6200_v42 = vmul.f32 %v10934_v58, %v6161_v25  ;;  %v6162_v52 = vadd.f32 %v10931_v41, %v6139_v34 }
 0x443   : > { %v6218_v51 = vsel %vm6179_vm8, %v6163_v17, %v6202_v9  ;;  %vm6180_vm3 = vcmp.gt.f32.partialorder %v6164_v37, 0.0  ;;  %v6203_v33 = vmul.f32 %v10934_v58, %v6164_v37 }
 0x444   : > { %v6234_v30 = vadd.f32 %v6218_v51, %v10812_v32  ;;  %v6216_v7 = vsel %vm6177_vm11, %v6161_v25, %v6200_v42  ;;  %vm6178_vm9 = vcmp.gt.f32.partialorder %v6162_v52, 0.0  ;;  %v6201_v56 = vmul.f32 %v10934_v58, %v6162_v52  ;;  %v8043_v0 = vpop.f32.mrb[24].mxu1 }
 0x445   : > { %v6232_v61 = vadd.f32 %v6216_v7, %v10805_v38  ;;  %v6219_v24 = vsel %vm6180_vm3, %v6164_v37, %v6203_v33  ;;  %v6144_v45 = vmul.f32 %v8043_v0, %v10924_v23  ;;  %v6068_v46 = vpop.f32.mrb[25].mxu1 }
 0x446   : > { %v6252_v32 = vmul.f32 %v10945_v55, %v6234_v30  ;;  %v6235_v60 = vadd.f32 %v6219_v24, %v10496_v26  ;;  %v6217_v5 = vsel %vm6178_vm9, %v6162_v52, %v6201_v56  ;;  %v6142_v1 = vmul.f32 %v10924_v23, %v6068_v46  ;;  %v8044_v3 = vpop.f32.mrb[26].mxu1 }
 0x447   : > { %v6250_v63 = vmul.f32 %v10945_v55, %v6232_v61  ;;  %v6233_v29 = vadd.f32 %v6217_v5, %v10801_v8  ;;  %v6167_v38 = vadd.f32 %v10931_v41, %v6144_v45  ;;  %v6145_v18 = vmul.f32 %v8044_v3, %v10924_v23  ;;  %v6071_v53 = vpop.f32.mrb[27].mxu1  ;;  %v8632_v61 = vld [vmem:[#allocation2 + $0x79] sm:$0xff] }
 0x448   : > { %6268 = vst [vmem:[%s10953_s18 + $0x10] sm:$0xff] %v6252_v32  ;;  %v6253_v35 = vmul.f32 %v10945_v55, %v6235_v60  ;;  %v6165_v26 = vadd.f32 %v10931_v41, %v6142_v1  ;;  %v6143_v12 = vmul.f32 %v10924_v23, %v6071_v53 }
 0x449   : > { %6266 = vst [vmem:[%s10953_s18] sm:$0xff] %v6250_v63  ;;  %v6251_v21 = vmul.f32 %v10945_v55, %v6233_v29  ;;  %vm6183_vm10 = vcmp.gt.f32.partialorder %v6167_v38, 0.0  ;;  %v6206_v31 = vmul.f32 %v10934_v58, %v6167_v38  ;;  %v6168_v8 = vadd.f32 %v10931_v41, %v6145_v18  ;;  %v8633_v29 = vld [vmem:[#allocation2 + $0x81] sm:$0xff] }
 0x44a   : > { %6269 = vst [vmem:[%s10953_s18 + $0x18] sm:$0xff] %v6253_v35  ;;  %vm6181_vm2 = vcmp.gt.f32.partialorder %v6165_v26, 0.0  ;;  %v6204_v14 = vmul.f32 %v10934_v58, %v6165_v26  ;;  %v6166_v16 = vadd.f32 %v10931_v41, %v6143_v12 }
 0x44b   : > { %6267 = vst [vmem:[%s10953_s18 + $0x8] sm:$0xff] %v6251_v21  ;;  %v6222_v57 = vsel %vm6183_vm10, %v6167_v38, %v6206_v31  ;;  %vm6184_vm1 = vcmp.gt.f32.partialorder %v6168_v8, 0.0  ;;  %v6207_v47 = vmul.f32 %v10934_v58, %v6168_v8 }
 0x44c   : > { %v6238_v20 = vadd.f32 %v6222_v57, %v10535_v39  ;;  %v6220_v48 = vsel %vm6181_vm2, %v6165_v26, %v6204_v14  ;;  %vm6182_vm4 = vcmp.gt.f32.partialorder %v6166_v16, 0.0  ;;  %v6205_v13 = vmul.f32 %v10934_v58, %v6166_v16  ;;  %v8047_v10 = vpop.f32.mrb[28].mxu1 }
 0x44d   : > { %v6236_v40 = vadd.f32 %v6220_v48, %v10816_v36  ;;  %v6223_v59 = vsel %vm6184_vm1, %v6168_v8, %v6207_v47  ;;  %v6148_v6 = vmul.f32 %v8047_v10, %v10924_v23  ;;  %v6084_v54 = vpop.f32.mrb[29].mxu1 }
 0x44e   : > { %v6256_v27 = vmul.f32 %v10945_v55, %v6238_v20  ;;  %v6239_v44 = vadd.f32 %v6223_v59, %v10563_v15  ;;  %v6221_v4 = vsel %vm6182_vm4, %v6166_v16, %v6205_v13  ;;  %v6146_v39 = vmul.f32 %v10924_v23, %v6084_v54  ;;  %v8048_v62 = vpop.f32.mrb[30].mxu1  ;;  %v8634_v13 = vld [vmem:[#allocation2 + $0xa9] sm:$0xff] }
 0x44f   : > { %v6254_v50 = vmul.f32 %v10945_v55, %v6236_v40  ;;  %v6237_v17 = vadd.f32 %v6221_v4, %v10814_v43  ;;  %v6171_v36 = vadd.f32 %v10931_v41, %v6148_v6  ;;  %v6149_v49 = vmul.f32 %v8048_v62, %v10924_v23  ;;  %v6087_v19 = vpop.f32.mrb[31].mxu1 }
 0x450   : > { %6272 = vst [vmem:[%s10953_s18 + $0x30] sm:$0xff] %v6256_v27  ;;  %v6257_v25 = vmul.f32 %v10945_v55, %v6239_v44  ;;  %v6169_v15 = vadd.f32 %v10931_v41, %v6146_v39  ;;  %v6147_v34 = vmul.f32 %v10924_v23, %v6087_v19  ;;  %v8635_v27 = vld [vmem:[#allocation2 + $0xb1] sm:$0xff] }
 0x451   : > { %6270 = vst [vmem:[%s10953_s18 + $0x20] sm:$0xff] %v6254_v50  ;;  %v6255_v9 = vmul.f32 %v10945_v55, %v6237_v17  ;;  %vm6187_vm6 = vcmp.gt.f32.partialorder %v6171_v36, 0.0  ;;  %v6210_v37 = vmul.f32 %v10934_v58, %v6171_v36  ;;  %v6172_v43 = vadd.f32 %v10931_v41, %v6149_v49 }
 0x452   : > { %6273 = vst [vmem:[%s10953_s18 + $0x38] sm:$0xff] %v6257_v25  ;;  %vm6185_vm14 = vcmp.gt.f32.partialorder %v6169_v15, 0.0  ;;  %v6208_v42 = vmul.f32 %v10934_v58, %v6169_v15  ;;  %v6170_v52 = vadd.f32 %v10931_v41, %v6147_v34 }
 0x453   : > { %6271 = vst [vmem:[%s10953_s18 + $0x28] sm:$0xff] %v6255_v9  ;;  %v6226_v51 = vsel %vm6187_vm6, %v6171_v36, %v6210_v37  ;;  %vm6188_vm15 = vcmp.gt.f32.partialorder %v6172_v43, 0.0  ;;  %v6211_v33 = vmul.f32 %v10934_v58, %v6172_v43 }
 0x454   : > { %v6242_v30 = vadd.f32 %v6226_v51, %v10614_v22  ;;  %v6224_v7 = vsel %vm6185_vm14, %v6169_v15, %v6208_v42  ;;  %vm6186_vm0 = vcmp.gt.f32.partialorder %v6170_v52, 0.0  ;;  %v6209_v56 = vmul.f32 %v10934_v58, %v6170_v52  ;;  %v8051_v0 = vpop.f32.mrb[32].mxu1 }
 0x455   : > { %v6240_v24 = vadd.f32 %v8632_v61, %v6224_v7  ;;  %v6227_v45 = vsel %vm6188_vm15, %v6172_v43, %v6211_v33  ;;  %v6152_v46 = vmul.f32 %v8051_v0, %v10924_v23  ;;  %v6100_v32 = vpop.f32.mrb[33].mxu1 }
 0x456   : > { %v6260_v60 = vmul.f32 %v10945_v55, %v6242_v30  ;;  %v6243_v5 = vadd.f32 %v6227_v45, %v10642_v2  ;;  %v6225_v1 = vsel %vm6186_vm0, %v6170_v52, %v6209_v56  ;;  %v6150_v22 = vmul.f32 %v10924_v23, %v6100_v32  ;;  %v8052_v3 = vpop.f32.mrb[34].mxu1 }
 0x457   : > { %v6258_v63 = vmul.f32 %v10945_v55, %v6240_v24  ;;  %v6241_v38 = vadd.f32 %v8633_v29, %v6225_v1  ;;  %v6175_v18 = vadd.f32 %v10931_v41, %v6152_v46  ;;  %v6153_v53 = vmul.f32 %v8052_v3, %v10924_v23  ;;  %v6103_v35 = vpop.f32.mrb[35].mxu1 }
 0x458   : > { %6276 = vst [vmem:[%s10953_s18 + $0x50] sm:$0xff] %v6260_v60  ;;  %v6261_v26 = vmul.f32 %v10945_v55, %v6243_v5  ;;  %v6173_v2 = vadd.f32 %v10931_v41, %v6150_v22  ;;  %v6151_v12 = vmul.f32 %v10924_v23, %v6103_v35 }
 0x459   : > { %6274 = vst [vmem:[%s10953_s18 + $0x40] sm:$0xff] %v6258_v63  ;;  %v6259_v21 = vmul.f32 %v10945_v55, %v6241_v38  ;;  %vm6191_vm5 = vcmp.gt.f32.partialorder %v6175_v18, 0.0  ;;  %v6214_v31 = vmul.f32 %v10934_v58, %v6175_v18  ;;  %v6176_v8 = vadd.f32 %v10931_v41, %v6153_v53 }
 0x45a   : > { %6277 = vst [vmem:[%s10953_s18 + $0x58] sm:$0xff] %v6261_v26  ;;  %vm6189_vm13 = vcmp.gt.f32.partialorder %v6173_v2, 0.0  ;;  %v6212_v14 = vmul.f32 %v10934_v58, %v6173_v2  ;;  %v6174_v16 = vadd.f32 %v10931_v41, %v6151_v12 }
 0x45b   : > { %6275 = vst [vmem:[%s10953_s18 + $0x48] sm:$0xff] %v6259_v21  ;;  %v6230_v57 = vsel %vm6191_vm5, %v6175_v18, %v6214_v31  ;;  %vm6192_vm7 = vcmp.gt.f32.partialorder %v6176_v8, 0.0  ;;  %v6215_v23 = vmul.f32 %v10934_v58, %v6176_v8 }
 0x45c   : > { %v6246_v47 = vadd.f32 %v6230_v57, %v10693_v28  ;;  %v6228_v20 = vsel %vm6189_vm13, %v6173_v2, %v6212_v14  ;;  %vm6190_vm12 = vcmp.gt.f32.partialorder %v6174_v16, 0.0  ;;  %v6213_v48 = vmul.f32 %v10934_v58, %v6174_v16 }
 0x45d   : > { %v6244_v10 = vadd.f32 %v8634_v13, %v6228_v20  ;;  %v6231_v40 = vsel %vm6192_vm7, %v6176_v8, %v6215_v23 }
 0x45e   : > { %v6264_v41 = vmul.f32 %v10945_v55, %v6246_v47  ;;  %v6247_v59 = vadd.f32 %v6231_v40, %v10714_v11  ;;  %v6229_v6 = vsel %vm6190_vm12, %v6174_v16, %v6213_v48 }
 0x45f   : > { %v6262_v54 = vmul.f32 %v10945_v55, %v6244_v10  ;;  %v6245_v44 = vadd.f32 %v8635_v27, %v6229_v6 }
 0x460   : > { %6280 = vst [vmem:[%s10953_s18 + $0x70] sm:$0xff] %v6264_v41  ;;  %v6265_v28 = vmul.f32 %v10945_v55, %v6247_v59 }
 0x461   : > { %6278 = vst [vmem:[%s10953_s18 + $0x60] sm:$0xff] %v6262_v54  ;;  %v6263_v4 = vmul.f32 %v10945_v55, %v6245_v44 }
 0x462   : > { %6281 = vst [vmem:[%s10953_s18 + $0x78] sm:$0xff] %v6265_v28 }
 0x463   : > { %6279 = vst [vmem:[%s10953_s18 + $0x68] sm:$0xff] %v6263_v4 }
 0x464 PF: > { %s28_s25 = sadd.s32 1, %s8749_s25   ;;  %s11191_s22 = smov %s8741_s24 }
 0x465   : > { %p25_p4 = scmp.ge.s32.totalorder %s28_s25, 6   ;;  %s11192_s23 = smov %s8745_s0 }
 0x466   : > { %s11193_s24 = smov %s11196_s27  ;;  %s11194_s0 = smov %s11200_s28 }
 0x467   :  { %27 = sbr.rel (!%p25_p4) target bundleno = 19 (0x13), region = 139 }
 0x46e   :  { %6314 = vsyncpa [#allocation6], 1 }
 0x46f   :  { %6316 = vsyncpa [#allocation6 + $0x1], 1 }

</bundles_post_ra>
